<compile_context>
chip_gen: v7x
topology: tpu7x:2x2x1
jax: 0.10.0
libtpu: 0.0.40
codegen_flags: <defaults>
</compile_context>

<pallas_src>
import jax
import jax.numpy as jnp
import numpy as np
from jax import lax
from jax.experimental import pallas as pl
from jax.experimental.pallas import tpu as pltpu


# ---------------------------------------------------------------------------
# Kernel
# ---------------------------------------------------------------------------
def _im2col_3x3(pad_ref, H, W):
    """pad_ref: (C, H+2, W+2) bf16 Ref -> (9*C, H*W) bf16 patch matrix.

    Row ordering is (kh, kw, cin); matches the wrapper's weight flattening.
    Taps are read as Ref slices so only the window is loaded per tap.
    """
    C = pad_ref.shape[0]
    taps = []
    for kh in range(3):
        for kw in range(3):
            taps.append(pad_ref[:, kh:kh + H, kw:kw + W].reshape(C, H * W))
    return jnp.concatenate(taps, axis=0)


def basic_block_kernel(x_ref, w1_ref, s1_ref, b1_ref, w2_ref, s2_ref, b2_ref,
                       o_ref, pad_ref):
    """Whole BasicBlock for one batch element, fully resident in VMEM.

    x_ref : (1, C, H, W)  f32   (native NCHW)
    w1_ref: (C, 9*C)      bf16  (conv1 weights, (kh,kw,cin) flattened)
    s1_ref: (C, 1)        f32   (BN1 scale)
    b1_ref: (C, 1)        f32   (BN1 bias)
    w2_ref: (C, 9*C)      bf16
    s2_ref: (C, 1)        f32
    b2_ref: (C, 1)        f32
    o_ref : (1, C, H*W)   f32   (lane-dense spatial output)
    pad_ref: (C, H+2, W+2) bf16 scratch, shared by conv1 and conv2
    """
    C, H, W = x_ref.shape[1], x_ref.shape[2], x_ref.shape[3]
    HW = H * W

    # --- zero only the 1-pixel border strips (interior is overwritten) -----
    # Done every grid step: a one-time pl.when(program_id==0) init would be
    # wrong under the megacore-parallel batch axis.
    zdt = pad_ref.dtype
    pad_ref[:, 0:1, :] = jnp.zeros((C, 1, W + 2), dtype=zdt)
    pad_ref[:, H + 1:H + 2, :] = jnp.zeros((C, 1, W + 2), dtype=zdt)
    pad_ref[:, :, 0:1] = jnp.zeros((C, H + 2, 1), dtype=zdt)
    pad_ref[:, :, W + 1:W + 2] = jnp.zeros((C, H + 2, 1), dtype=zdt)

    x = x_ref[0]                                          # (C, H, W) f32
    pad_ref[:, 1:H + 1, 1:W + 1] = x.astype(zdt)          # single bf16 cast

    # --- conv1: one MXU matmul with K = 9*C, then BN1 (f32) + ReLU ---------
    patch1 = _im2col_3x3(pad_ref, H, W)                   # (9C, HW) bf16
    acc1 = jnp.dot(w1_ref[...], patch1,
                   preferred_element_type=jnp.float32)    # (C, HW) f32
    mid = jnp.maximum(acc1 * s1_ref[...] + b1_ref[...], 0.0)

    # --- intermediate stays in VMEM; reuse padded scratch (borders zero) ---
    pad_ref[:, 1:H + 1, 1:W + 1] = mid.reshape(C, H, W).astype(zdt)

    # --- conv2 + BN2 (f32) + residual add + ReLU ---------------------------
    patch2 = _im2col_3x3(pad_ref, H, W)
    acc2 = jnp.dot(w2_ref[...], patch2,
                   preferred_element_type=jnp.float32)    # (C, HW) f32
    out = acc2 * s2_ref[...] + b2_ref[...] + x.reshape(C, HW)
    o_ref[0] = jnp.maximum(out, 0.0).astype(o_ref.dtype)  # lane-dense store


# ---------------------------------------------------------------------------
# Pallas wrapper
# ---------------------------------------------------------------------------
def _basic_block_pallas(x_nchw, w1, s1, b1, w2, s2, b2):
    N, C, H, W = x_nchw.shape
    HW = H * W
    assert w1.shape == (C, 9 * C) and w2.shape == (C, 9 * C), \
        "identity residual requires Cout == Cmid == Cin (no downsample)"

    # Size the VMEM limit to actual need (double-buffered in/out blocks,
    # weights, padded scratch) plus headroom for im2col / matmul temporaries.
    blk_in = C * H * W * 4
    blk_out = C * HW * 4
    wts = 2 * (C * 9 * C * 2) + 4 * (C * 4)
    scratch = C * (H + 2) * (W + 2) * 2
    need = 2 * (blk_in + blk_out) + 2 * wts + scratch
    vmem_limit = int(min(max(4 * need, 1 << 20), 32 << 20))

    out_flat = pl.pallas_call(
        basic_block_kernel,
        out_shape=jax.ShapeDtypeStruct((N, C, HW), x_nchw.dtype),
        grid_spec=pltpu.PrefetchScalarGridSpec(
            num_scalar_prefetch=0,
            grid=(N,),
            in_specs=[
                pl.BlockSpec((1, C, H, W), lambda n: (n, 0, 0, 0)),
                pl.BlockSpec((C, 9 * C), lambda n: (0, 0)),
                pl.BlockSpec((C, 1), lambda n: (0, 0)),
                pl.BlockSpec((C, 1), lambda n: (0, 0)),
                pl.BlockSpec((C, 9 * C), lambda n: (0, 0)),
                pl.BlockSpec((C, 1), lambda n: (0, 0)),
                pl.BlockSpec((C, 1), lambda n: (0, 0)),
            ],
            out_specs=pl.BlockSpec((1, C, HW), lambda n: (n, 0, 0)),
            scratch_shapes=[
                pltpu.VMEM((C, H + 2, W + 2), jnp.bfloat16),  # shared padded buf
            ],
        ),
        compiler_params=pltpu.CompilerParams(
            dimension_semantics=("parallel",),   # megacore / v7x 2 TCs
            vmem_limit_bytes=vmem_limit,
        ),
    )(x_nchw, w1, s1, b1, w2, s2, b2)

    # Free metadata reshape (row-major contiguous) back to NCHW.
    return out_flat.reshape(N, C, H, W)


def _fold_bn(gamma, beta, mean, var, eps=1e-5):
    scale = gamma / jnp.sqrt(var + eps)
    bias = beta - mean * scale
    return scale.reshape(-1, 1), bias.reshape(-1, 1)


def _prep_weight(w_oihw):
    """PyTorch OIHW (Cout, Cin, 3, 3) -> (Cout, 9*Cin) bf16, (kh,kw,cin) order."""
    cout, cin = w_oihw.shape[0], w_oihw.shape[1]
    return jnp.transpose(w_oihw, (0, 2, 3, 1)).reshape(cout, 9 * cin).astype(
        jnp.bfloat16)


@jax.jit
def basic_block_forward(x_nchw, params):
    """BasicBlock forward. x_nchw: (N, C, H, W), exactly as in PyTorch."""
    s1, b1 = _fold_bn(params["bn1_gamma"], params["bn1_beta"],
                      params["bn1_mean"], params["bn1_var"])
    s2, b2 = _fold_bn(params["bn2_gamma"], params["bn2_beta"],
                      params["bn2_mean"], params["bn2_var"])
    w1 = _prep_weight(params["w1"])   # raw weights in bf16; BN applied in f32
    w2 = _prep_weight(params["w2"])
    return _basic_block_pallas(x_nchw, w1, s1, b1, w2, s2, b2)
    # TODO(synk): optional bf16 output (halves writeback) if the next layer
    #             consumes bf16; kept f32 to match the PyTorch module.


# ---------------------------------------------------------------------------
# Pure-JAX f32 reference for verification (NCHW throughout)
# ---------------------------------------------------------------------------
def _ref_forward(x_nchw, params, eps=1e-5):
    dn = lax.conv_dimension_numbers(x_nchw.shape, params["w1"].shape,
                                    ("NCHW", "OIHW", "NCHW"))

    def conv(y, w):
        return lax.conv_general_dilated(y, w, (1, 1), ((1, 1), (1, 1)),
                                        dimension_numbers=dn)

    def bn(y, g, b, m, v):
        g = g.reshape(1, -1, 1, 1); b = b.reshape(1, -1, 1, 1)
        m = m.reshape(1, -1, 1, 1); v = v.reshape(1, -1, 1, 1)
        return (y - m) / jnp.sqrt(v + eps) * g + b

    out = conv(x_nchw, params["w1"])
    out = bn(out, params["bn1_gamma"], params["bn1_beta"],
             params["bn1_mean"], params["bn1_var"])
    out = jnp.maximum(out, 0.0)
    out = conv(out, params["w2"])
    out = bn(out, params["bn2_gamma"], params["bn2_beta"],
             params["bn2_mean"], params["bn2_var"])
    return jnp.maximum(out + x_nchw, 0.0)


# ---------------------------------------------------------------------------
if __name__ == "__main__":
    # BasicBlock(inplanes=4, planes=4), input (N=2, C=4, 16, 16)
    N, C, H, W = 2, 4, 16, 16
    key = jax.random.PRNGKey(0)
    keys = jax.random.split(key, 8)

    x = jax.random.normal(keys[0], (N, C, H, W), jnp.float32)

    params = {
        # PyTorch-layout conv weights: (Cout, Cin, 3, 3)
        "w1": jax.random.normal(keys[1], (C, C, 3, 3), jnp.float32) * 0.1,
        "w2": jax.random.normal(keys[2], (C, C, 3, 3), jnp.float32) * 0.1,
        "bn1_gamma": 1.0 + 0.1 * jax.random.normal(keys[3], (C,), jnp.float32),
        "bn1_beta": 0.1 * jax.random.normal(keys[4], (C,), jnp.float32),
        "bn1_mean": 0.05 * jax.random.normal(keys[5], (C,), jnp.float32),
        "bn1_var": 0.5 + jnp.abs(jax.random.normal(keys[6], (C,), jnp.float32)),
        "bn2_gamma": 1.0 + 0.1 * jax.random.normal(keys[7], (C,), jnp.float32),
        "bn2_beta": jnp.linspace(-0.1, 0.1, C, dtype=jnp.float32),
        "bn2_mean": jnp.linspace(-0.05, 0.05, C, dtype=jnp.float32),
        "bn2_var": jnp.linspace(0.8, 1.2, C, dtype=jnp.float32),
    }

    out = jax.block_until_ready(basic_block_forward(x, params))
    ref = jax.block_until_ready(_ref_forward(x, params))

    # bf16 MXU operands (f32 accumulation, f32 BN/bias/residual) -> slightly
    # looser tolerance vs. the pure-f32 reference.
    np.testing.assert_allclose(np.asarray(out), np.asarray(ref),
                               rtol=5e-2, atol=5e-2)
    assert out.shape == (N, C, H, W) and out.dtype == jnp.float32
    print("KERNEL_OK")
</pallas_src>

<mosaic_0001>
module attributes {stable_mosaic.version = 11 : i64} {
  func.func @basic_block_kernel(%arg0: i32, %arg1: memref<1x4x16x16xf32, #tpu.memory_space<vmem>>, %arg2: memref<4x36xbf16, #tpu.memory_space<vmem>>, %arg3: memref<4x1xf32, #tpu.memory_space<vmem>>, %arg4: memref<4x1xf32, #tpu.memory_space<vmem>>, %arg5: memref<4x36xbf16, #tpu.memory_space<vmem>>, %arg6: memref<4x1xf32, #tpu.memory_space<vmem>>, %arg7: memref<4x1xf32, #tpu.memory_space<vmem>>, %arg8: memref<1x4x256xf32, #tpu.memory_space<vmem>>, %arg9: memref<4x18x18xbf16, #tpu.memory_space<vmem>>) attributes {dimension_semantics = [#tpu.dimension_semantics<parallel>], iteration_bounds = array<i64: 2>, scalar_prefetch = 0 : i64, scratch_operands = 1 : i64, tpu.core_type = #tpu.core_type<tc>, window_params = [{transform_indices = @transform_0, window_bounds = array<i64: 1, 4, 16, 16>}, {pipeline_mode = #tpu.pipeline_mode<synchronous>, transform_indices = @transform_1, window_bounds = array<i64: 4, 36>}, {pipeline_mode = #tpu.pipeline_mode<synchronous>, transform_indices = @transform_2, window_bounds = array<i64: 4, 1>}, {pipeline_mode = #tpu.pipeline_mode<synchronous>, transform_indices = @transform_3, window_bounds = array<i64: 4, 1>}, {pipeline_mode = #tpu.pipeline_mode<synchronous>, transform_indices = @transform_4, window_bounds = array<i64: 4, 36>}, {pipeline_mode = #tpu.pipeline_mode<synchronous>, transform_indices = @transform_5, window_bounds = array<i64: 4, 1>}, {pipeline_mode = #tpu.pipeline_mode<synchronous>, transform_indices = @transform_6, window_bounds = array<i64: 4, 1>}, {transform_indices = @transform_7, window_bounds = array<i64: 1, 4, 256>}]} {
    %cst = arith.constant 0.000000e+00 : bf16
    %0 = vector.broadcast %cst : bf16 to vector<4x1x18xbf16>
    %c0 = arith.constant 0 : index
    %c0_0 = arith.constant 0 : index
    %c0_1 = arith.constant 0 : index
    %1 = vector.load %arg9[%c0, %c0_0, %c0_1] : memref<4x18x18xbf16, #tpu.memory_space<vmem>>, vector<4x1x18xbf16>
    tpu.vector_store %arg9[%c0, %c0_0, %c0_1], %0 {strides = array<i32>} : memref<4x18x18xbf16, #tpu.memory_space<vmem>>, vector<4x1x18xbf16>,
    %cst_2 = arith.constant 0.000000e+00 : bf16
    %2 = vector.broadcast %cst_2 : bf16 to vector<4x1x18xbf16>
    %c0_3 = arith.constant 0 : index
    %c17 = arith.constant 17 : index
    %c0_4 = arith.constant 0 : index
    %3 = vector.load %arg9[%c0_3, %c17, %c0_4] : memref<4x18x18xbf16, #tpu.memory_space<vmem>>, vector<4x1x18xbf16>
    tpu.vector_store %arg9[%c0_3, %c17, %c0_4], %2 {strides = array<i32>} : memref<4x18x18xbf16, #tpu.memory_space<vmem>>, vector<4x1x18xbf16>,
    %cst_5 = arith.constant 0.000000e+00 : bf16
    %4 = vector.broadcast %cst_5 : bf16 to vector<4x18x1xbf16>
    %c0_6 = arith.constant 0 : index
    %c0_7 = arith.constant 0 : index
    %c0_8 = arith.constant 0 : index
    %5 = vector.load %arg9[%c0_6, %c0_7, %c0_8] : memref<4x18x18xbf16, #tpu.memory_space<vmem>>, vector<4x18x1xbf16>
    tpu.vector_store %arg9[%c0_6, %c0_7, %c0_8], %4 {strides = array<i32>} : memref<4x18x18xbf16, #tpu.memory_space<vmem>>, vector<4x18x1xbf16>,
    %cst_9 = arith.constant 0.000000e+00 : bf16
    %6 = vector.broadcast %cst_9 : bf16 to vector<4x18x1xbf16>
    %c0_10 = arith.constant 0 : index
    %c0_11 = arith.constant 0 : index
    %c17_12 = arith.constant 17 : index
    %7 = vector.load %arg9[%c0_10, %c0_11, %c17_12] : memref<4x18x18xbf16, #tpu.memory_space<vmem>>, vector<4x18x1xbf16>
    tpu.vector_store %arg9[%c0_10, %c0_11, %c17_12], %6 {strides = array<i32>} : memref<4x18x18xbf16, #tpu.memory_space<vmem>>, vector<4x18x1xbf16>,
    %c0_13 = arith.constant 0 : index
    %c0_14 = arith.constant 0 : index
    %c0_15 = arith.constant 0 : index
    %c0_16 = arith.constant 0 : index
    %8 = vector.load %arg1[%c0_13, %c0_14, %c0_15, %c0_16] : memref<1x4x16x16xf32, #tpu.memory_space<vmem>>, vector<1x4x16x16xf32>
    %9 = vector.shape_cast %8 : vector<1x4x16x16xf32> to vector<4x16x16xf32>
    %10 = arith.truncf %9 : vector<4x16x16xf32> to vector<4x16x16xbf16>
    %c0_17 = arith.constant 0 : index
    %c1 = arith.constant 1 : index
    %c1_18 = arith.constant 1 : index
    %11 = vector.load %arg9[%c0_17, %c1, %c1_18] : memref<4x18x18xbf16, #tpu.memory_space<vmem>>, vector<4x16x16xbf16>
    tpu.vector_store %arg9[%c0_17, %c1, %c1_18], %10 {strides = array<i32>} : memref<4x18x18xbf16, #tpu.memory_space<vmem>>, vector<4x16x16xbf16>,
    %c0_19 = arith.constant 0 : index
    %c0_20 = arith.constant 0 : index
    %c0_21 = arith.constant 0 : index
    %12 = vector.load %arg9[%c0_19, %c0_20, %c0_21] : memref<4x18x18xbf16, #tpu.memory_space<vmem>>, vector<4x16x16xbf16>
    %13 = vector.shape_cast %12 : vector<4x16x16xbf16> to vector<4x256xbf16>
    %c0_22 = arith.constant 0 : index
    %c0_23 = arith.constant 0 : index
    %c1_24 = arith.constant 1 : index
    %14 = vector.load %arg9[%c0_22, %c0_23, %c1_24] : memref<4x18x18xbf16, #tpu.memory_space<vmem>>, vector<4x16x16xbf16>
    %15 = vector.shape_cast %14 : vector<4x16x16xbf16> to vector<4x256xbf16>
    %c0_25 = arith.constant 0 : index
    %c0_26 = arith.constant 0 : index
    %c2 = arith.constant 2 : index
    %16 = vector.load %arg9[%c0_25, %c0_26, %c2] : memref<4x18x18xbf16, #tpu.memory_space<vmem>>, vector<4x16x16xbf16>
    %17 = vector.shape_cast %16 : vector<4x16x16xbf16> to vector<4x256xbf16>
    %c0_27 = arith.constant 0 : index
    %c1_28 = arith.constant 1 : index
    %c0_29 = arith.constant 0 : index
    %18 = vector.load %arg9[%c0_27, %c1_28, %c0_29] : memref<4x18x18xbf16, #tpu.memory_space<vmem>>, vector<4x16x16xbf16>
    %19 = vector.shape_cast %18 : vector<4x16x16xbf16> to vector<4x256xbf16>
    %c0_30 = arith.constant 0 : index
    %c1_31 = arith.constant 1 : index
    %c1_32 = arith.constant 1 : index
    %20 = vector.load %arg9[%c0_30, %c1_31, %c1_32] : memref<4x18x18xbf16, #tpu.memory_space<vmem>>, vector<4x16x16xbf16>
    %21 = vector.shape_cast %20 : vector<4x16x16xbf16> to vector<4x256xbf16>
    %c0_33 = arith.constant 0 : index
    %c1_34 = arith.constant 1 : index
    %c2_35 = arith.constant 2 : index
    %22 = vector.load %arg9[%c0_33, %c1_34, %c2_35] : memref<4x18x18xbf16, #tpu.memory_space<vmem>>, vector<4x16x16xbf16>
    %23 = vector.shape_cast %22 : vector<4x16x16xbf16> to vector<4x256xbf16>
    %c0_36 = arith.constant 0 : index
    %c2_37 = arith.constant 2 : index
    %c0_38 = arith.constant 0 : index
    %24 = vector.load %arg9[%c0_36, %c2_37, %c0_38] : memref<4x18x18xbf16, #tpu.memory_space<vmem>>, vector<4x16x16xbf16>
    %25 = vector.shape_cast %24 : vector<4x16x16xbf16> to vector<4x256xbf16>
    %c0_39 = arith.constant 0 : index
    %c2_40 = arith.constant 2 : index
    %c1_41 = arith.constant 1 : index
    %26 = vector.load %arg9[%c0_39, %c2_40, %c1_41] : memref<4x18x18xbf16, #tpu.memory_space<vmem>>, vector<4x16x16xbf16>
    %27 = vector.shape_cast %26 : vector<4x16x16xbf16> to vector<4x256xbf16>
    %c0_42 = arith.constant 0 : index
    %c2_43 = arith.constant 2 : index
    %c2_44 = arith.constant 2 : index
    %28 = vector.load %arg9[%c0_42, %c2_43, %c2_44] : memref<4x18x18xbf16, #tpu.memory_space<vmem>>, vector<4x16x16xbf16>
    %29 = vector.shape_cast %28 : vector<4x16x16xbf16> to vector<4x256xbf16>
    %30 = tpu.concatenate %13, %15, %17, %19, %21, %23, %25, %27, %29 in 0 : vector<4x256xbf16>, vector<4x256xbf16>, vector<4x256xbf16>, vector<4x256xbf16>, vector<4x256xbf16>, vector<4x256xbf16>, vector<4x256xbf16>, vector<4x256xbf16>, vector<4x256xbf16> -> vector<36x256xbf16>
    %c0_45 = arith.constant 0 : index
    %c0_46 = arith.constant 0 : index
    %31 = vector.load %arg2[%c0_45, %c0_46] : memref<4x36xbf16, #tpu.memory_space<vmem>>, vector<4x36xbf16>
    %cst_47 = arith.constant dense<0.000000e+00> : vector<4x256xf32>
    %32 = tpu.matmul %31, %30, %cst_47 {dimension_numbers = #tpu.dot_dimension_numbers<[1], [0], [0], [1], [0, 0, 1, 1], [], []>} : vector<4x36xbf16>, vector<36x256xbf16>, vector<4x256xf32> -> vector<4x256xf32>
    %c0_48 = arith.constant 0 : index
    %c0_49 = arith.constant 0 : index
    %33 = vector.load %arg3[%c0_48, %c0_49] : memref<4x1xf32, #tpu.memory_space<vmem>>, vector<4x1xf32>
    %34 = vector.broadcast %33 : vector<4x1xf32> to vector<4x256xf32>
    %35 = arith.mulf %32, %34 : vector<4x256xf32>
    %c0_50 = arith.constant 0 : index
    %c0_51 = arith.constant 0 : index
    %36 = vector.load %arg4[%c0_50, %c0_51] : memref<4x1xf32, #tpu.memory_space<vmem>>, vector<4x1xf32>
    %37 = vector.broadcast %36 : vector<4x1xf32> to vector<4x256xf32>
    %38 = arith.addf %35, %37 : vector<4x256xf32>
    %cst_52 = arith.constant 0.000000e+00 : f32
    %39 = vector.broadcast %cst_52 : f32 to vector<4x256xf32>
    %40 = arith.maximumf %38, %39 : vector<4x256xf32>
    %41 = vector.shape_cast %40 : vector<4x256xf32> to vector<4x16x16xf32>
    %42 = arith.truncf %41 : vector<4x16x16xf32> to vector<4x16x16xbf16>
    %c0_53 = arith.constant 0 : index
    %c1_54 = arith.constant 1 : index
    %c1_55 = arith.constant 1 : index
    %43 = vector.load %arg9[%c0_53, %c1_54, %c1_55] : memref<4x18x18xbf16, #tpu.memory_space<vmem>>, vector<4x16x16xbf16>
    tpu.vector_store %arg9[%c0_53, %c1_54, %c1_55], %42 {strides = array<i32>} : memref<4x18x18xbf16, #tpu.memory_space<vmem>>, vector<4x16x16xbf16>,
    %c0_56 = arith.constant 0 : index
    %c0_57 = arith.constant 0 : index
    %c0_58 = arith.constant 0 : index
    %44 = vector.load %arg9[%c0_56, %c0_57, %c0_58] : memref<4x18x18xbf16, #tpu.memory_space<vmem>>, vector<4x16x16xbf16>
    %45 = vector.shape_cast %44 : vector<4x16x16xbf16> to vector<4x256xbf16>
    %c0_59 = arith.constant 0 : index
    %c0_60 = arith.constant 0 : index
    %c1_61 = arith.constant 1 : index
    %46 = vector.load %arg9[%c0_59, %c0_60, %c1_61] : memref<4x18x18xbf16, #tpu.memory_space<vmem>>, vector<4x16x16xbf16>
    %47 = vector.shape_cast %46 : vector<4x16x16xbf16> to vector<4x256xbf16>
    %c0_62 = arith.constant 0 : index
    %c0_63 = arith.constant 0 : index
    %c2_64 = arith.constant 2 : index
    %48 = vector.load %arg9[%c0_62, %c0_63, %c2_64] : memref<4x18x18xbf16, #tpu.memory_space<vmem>>, vector<4x16x16xbf16>
    %49 = vector.shape_cast %48 : vector<4x16x16xbf16> to vector<4x256xbf16>
    %c0_65 = arith.constant 0 : index
    %c1_66 = arith.constant 1 : index
    %c0_67 = arith.constant 0 : index
    %50 = vector.load %arg9[%c0_65, %c1_66, %c0_67] : memref<4x18x18xbf16, #tpu.memory_space<vmem>>, vector<4x16x16xbf16>
    %51 = vector.shape_cast %50 : vector<4x16x16xbf16> to vector<4x256xbf16>
    %c0_68 = arith.constant 0 : index
    %c1_69 = arith.constant 1 : index
    %c1_70 = arith.constant 1 : index
    %52 = vector.load %arg9[%c0_68, %c1_69, %c1_70] : memref<4x18x18xbf16, #tpu.memory_space<vmem>>, vector<4x16x16xbf16>
    %53 = vector.shape_cast %52 : vector<4x16x16xbf16> to vector<4x256xbf16>
    %c0_71 = arith.constant 0 : index
    %c1_72 = arith.constant 1 : index
    %c2_73 = arith.constant 2 : index
    %54 = vector.load %arg9[%c0_71, %c1_72, %c2_73] : memref<4x18x18xbf16, #tpu.memory_space<vmem>>, vector<4x16x16xbf16>
    %55 = vector.shape_cast %54 : vector<4x16x16xbf16> to vector<4x256xbf16>
    %c0_74 = arith.constant 0 : index
    %c2_75 = arith.constant 2 : index
    %c0_76 = arith.constant 0 : index
    %56 = vector.load %arg9[%c0_74, %c2_75, %c0_76] : memref<4x18x18xbf16, #tpu.memory_space<vmem>>, vector<4x16x16xbf16>
    %57 = vector.shape_cast %56 : vector<4x16x16xbf16> to vector<4x256xbf16>
    %c0_77 = arith.constant 0 : index
    %c2_78 = arith.constant 2 : index
    %c1_79 = arith.constant 1 : index
    %58 = vector.load %arg9[%c0_77, %c2_78, %c1_79] : memref<4x18x18xbf16, #tpu.memory_space<vmem>>, vector<4x16x16xbf16>
    %59 = vector.shape_cast %58 : vector<4x16x16xbf16> to vector<4x256xbf16>
    %c0_80 = arith.constant 0 : index
    %c2_81 = arith.constant 2 : index
    %c2_82 = arith.constant 2 : index
    %60 = vector.load %arg9[%c0_80, %c2_81, %c2_82] : memref<4x18x18xbf16, #tpu.memory_space<vmem>>, vector<4x16x16xbf16>
    %61 = vector.shape_cast %60 : vector<4x16x16xbf16> to vector<4x256xbf16>
    %62 = tpu.concatenate %45, %47, %49, %51, %53, %55, %57, %59, %61 in 0 : vector<4x256xbf16>, vector<4x256xbf16>, vector<4x256xbf16>, vector<4x256xbf16>, vector<4x256xbf16>, vector<4x256xbf16>, vector<4x256xbf16>, vector<4x256xbf16>, vector<4x256xbf16> -> vector<36x256xbf16>
    %c0_83 = arith.constant 0 : index
    %c0_84 = arith.constant 0 : index
    %63 = vector.load %arg5[%c0_83, %c0_84] : memref<4x36xbf16, #tpu.memory_space<vmem>>, vector<4x36xbf16>
    %cst_85 = arith.constant dense<0.000000e+00> : vector<4x256xf32>
    %64 = tpu.matmul %63, %62, %cst_85 {dimension_numbers = #tpu.dot_dimension_numbers<[1], [0], [0], [1], [0, 0, 1, 1], [], []>} : vector<4x36xbf16>, vector<36x256xbf16>, vector<4x256xf32> -> vector<4x256xf32>
    %c0_86 = arith.constant 0 : index
    %c0_87 = arith.constant 0 : index
    %65 = vector.load %arg6[%c0_86, %c0_87] : memref<4x1xf32, #tpu.memory_space<vmem>>, vector<4x1xf32>
    %66 = vector.broadcast %65 : vector<4x1xf32> to vector<4x256xf32>
    %67 = arith.mulf %64, %66 : vector<4x256xf32>
    %c0_88 = arith.constant 0 : index
    %c0_89 = arith.constant 0 : index
    %68 = vector.load %arg7[%c0_88, %c0_89] : memref<4x1xf32, #tpu.memory_space<vmem>>, vector<4x1xf32>
    %69 = vector.broadcast %68 : vector<4x1xf32> to vector<4x256xf32>
    %70 = arith.addf %67, %69 : vector<4x256xf32>
    %71 = vector.shape_cast %9 : vector<4x16x16xf32> to vector<4x256xf32>
    %72 = arith.addf %70, %71 : vector<4x256xf32>
    %cst_90 = arith.constant 0.000000e+00 : f32
    %73 = vector.broadcast %cst_90 : f32 to vector<4x256xf32>
    %74 = arith.maximumf %72, %73 : vector<4x256xf32>
    %c0_91 = arith.constant 0 : index
    %c0_92 = arith.constant 0 : index
    %c0_93 = arith.constant 0 : index
    %75 = vector.load %arg8[%c0_91, %c0_92, %c0_93] : memref<1x4x256xf32, #tpu.memory_space<vmem>>, vector<1x4x256xf32>
    %76 = vector.shape_cast %75 : vector<1x4x256xf32> to vector<4x256xf32>
    %77 = vector.shape_cast %74 : vector<4x256xf32> to vector<1x4x256xf32>
    tpu.vector_store %arg8[%c0_91, %c0_92, %c0_93], %77 {strides = array<i32>} : memref<1x4x256xf32, #tpu.memory_space<vmem>>, vector<1x4x256xf32>,
    return
  }
  func.func @transform_0(%arg0: i32) -> (i32, i32, i32, i32) {
    %c0_i32 = arith.constant 0 : i32
    %c0_i32_0 = arith.constant 0 : i32
    %c0_i32_1 = arith.constant 0 : i32
    %c0_i32_2 = arith.constant 0 : i32
    return %arg0, %c0_i32, %c0_i32_0, %c0_i32_1 : i32, i32, i32, i32
  }
  func.func @transform_1(%arg0: i32) -> (i32, i32) {
    %c0_i32 = arith.constant 0 : i32
    %c0_i32_0 = arith.constant 0 : i32
    %c0_i32_1 = arith.constant 0 : i32
    return %c0_i32, %c0_i32_0 : i32, i32
  }
  func.func @transform_2(%arg0: i32) -> (i32, i32) {
    %c0_i32 = arith.constant 0 : i32
    %c0_i32_0 = arith.constant 0 : i32
    %c0_i32_1 = arith.constant 0 : i32
    return %c0_i32, %c0_i32_0 : i32, i32
  }
  func.func @transform_3(%arg0: i32) -> (i32, i32) {
    %c0_i32 = arith.constant 0 : i32
    %c0_i32_0 = arith.constant 0 : i32
    %c0_i32_1 = arith.constant 0 : i32
    return %c0_i32, %c0_i32_0 : i32, i32
  }
  func.func @transform_4(%arg0: i32) -> (i32, i32) {
    %c0_i32 = arith.constant 0 : i32
    %c0_i32_0 = arith.constant 0 : i32
    %c0_i32_1 = arith.constant 0 : i32
    return %c0_i32, %c0_i32_0 : i32, i32
  }
  func.func @transform_5(%arg0: i32) -> (i32, i32) {
    %c0_i32 = arith.constant 0 : i32
    %c0_i32_0 = arith.constant 0 : i32
    %c0_i32_1 = arith.constant 0 : i32
    return %c0_i32, %c0_i32_0 : i32, i32
  }
  func.func @transform_6(%arg0: i32) -> (i32, i32) {
    %c0_i32 = arith.constant 0 : i32
    %c0_i32_0 = arith.constant 0 : i32
    %c0_i32_1 = arith.constant 0 : i32
    return %c0_i32, %c0_i32_0 : i32, i32
  }
  func.func @transform_7(%arg0: i32) -> (i32, i32, i32) {
    %c0_i32 = arith.constant 0 : i32
    %c0_i32_0 = arith.constant 0 : i32
    %c0_i32_1 = arith.constant 0 : i32
    return %arg0, %c0_i32, %c0_i32_0 : i32, i32, i32
  }
}

</mosaic_0001>

<bundles_post_ra>
// kernel: basic_block_forward.1
= control target key start
LH: loop header
LB: loop body
LE: loop exit
PB: predicated region body
PF: predicated region fallthrough
CT: control target
= control target key end

     0   :  { %s7060_s24 = smov 0   ;;  %s10453_s0 = inlined_call_operand.vmem [shape: f32[2,4,16,16], index: 0, kind: input, shape index: {}]   ;;  %s10454_s1 = inlined_call_operand.vmem [shape: bf16[4,36], index: 1, kind: input, shape index: {}]   ;;  %s10455_s2 = inlined_call_operand.vmem [shape: f32[4,1], index: 2, kind: input, shape index: {}]   ;;  %s10456_s3 = inlined_call_operand.vmem [shape: f32[4,1], index: 3, kind: input, shape index: {}]   ;;  %s10457_s4 = inlined_call_operand.vmem [shape: bf16[4,36], index: 4, kind: input, shape index: {}]   ;;  %s10458_s5 = inlined_call_operand.vmem [shape: f32[4,1], index: 5, kind: input, shape index: {}]   ;;  %s10459_s6 = inlined_call_operand.vmem [shape: f32[4,1], index: 6, kind: input, shape index: {}]   ;;  %s10460_s7 = inlined_call_operand.vmem [shape: f32[2,4,256], index: 7, kind: output, shape index: {}]  }
   0x1 LB: > { %s6519_s25 = sadd.s32 4294967295, %s7004_s24   ;;  %p6523_p0 = scmp.ge.s32.totalorder %s7004_s24, 1  ;;  %s7004_s24 = sphi %s7060_s24, %s17_s24  }
   0x2   : > { %p237_p1 = scmp.lt.s32.totalorder %s7004_s24, 3 }
   0x4   : > { %p238_p2 = pnand %p6523_p0, %p237_p1 }
   0x6   : > { %241 = sbr.rel (%p238_p2) target bundleno = 1820 (0x71c), region = 48 }
   0xd   : > { %p269_p3 = scmp.lt.s32.totalorder %s6519_s25, 1  ;;  %vm281_vm0 = vsmask.f32 256  ;;  %vm280_vm1 = vcmask 139264   ;;  %v286_v0 = vld [vmem:[#allocation2 + $0xc] sm:$0x1] }
   0xe   : > { %vm295_vm2 = vsmask.f32 7938  ;;  %vm309_vm3 = vcmask 3072   ;;  %vm7072_vm4 = vmand %vm280_vm1, %vm281_vm0  ;;  %vm323_vm5 = vcmask 142472   ;;  %v7006_v2 = vmov 0   ;;  %s7007_s30 = smov 1  }
   0xf   : > { %s10723_s25 = smov (!%p269_p3, %s6519_s25), 1  ;;  %311 = vst.msk [vmem:[#allocation2 + $0x4] sm:$0xf] %vm309_vm3, %v7006_v2  ;;  %315 = vst.msk [vmem:[#allocation2 + $0x10] sm:$0xf] %vm309_vm3, %v7006_v2  ;;  %3193 = vmatprep.mubr.bf16.mxu0 %v7006_v2  ;;  %6994 = vset.pattern.permute.xlu0 %v7006_v2  ;;  %v287_v5 = vsel %vm7072_vm4, 0, %v286_v0 }
  0x10   : > { %318 = vst.msk [vmem:[#allocation2 + $0x1c] sm:$0xf] %vm309_vm3, %v7006_v2  ;;  %321 = vst.msk [vmem:[#allocation2 + $0x28] sm:$0xf] %vm309_vm3, %v7006_v2  ;;  %v283_v3 = vld [vmem:[#allocation2] sm:$0x1]  ;;  %6995 = vset.pattern.permute.xlu1 %v7006_v2  ;;  %6224 = vmatprep.mubr.bf16.mxu1 %v7006_v2 }
  0x11   : > { %v300_v4 = vld [vmem:[#allocation2 + $0x14] sm:$0x1]  ;;  %s6810_s26 = sshll.u32 %s10723_s25, 6  ;;  %vm7091_vm6 = vmand %vm280_vm1, %vm295_vm2  ;;  %v284_v7 = vsel %vm7072_vm4, 0, %v283_v3  ;;  %325 = vst.msk [vmem:[#allocation2 + $0x4] sm:$0xf] %vm323_vm5, %v7006_v2 }
  0x12   : > { %329 = vst.msk [vmem:[#allocation2 + $0x10] sm:$0xf] %vm323_vm5, %v7006_v2  ;;  %332 = vst.msk [vmem:[#allocation2 + $0x1c] sm:$0xf] %vm323_vm5, %v7006_v2  ;;  %vm312_vm7 = vcmask 0   ;;  %s7110_s29 = scalar_lea.vmem %s10453_s0, %s6810_s26  ;;  %v301_v8 = vsel %vm7091_vm6, 0, %v300_v4 }
  0x13   : > { %335 = vst.msk [vmem:[#allocation2 + $0x28] sm:$0xf] %vm323_vm5, %v7006_v2  ;;  %288 = vst [vmem:[#allocation2 + $0xc] sm:$0x1] %v287_v5  ;;  %vm326_vm8 = vcmask 139400   ;;  %v7115_v11 = vld [vmem:[%s7110_s29 + $0x10] sm:$0xff] }
  0x14   : > { %285 = vst [vmem:[#allocation2] sm:$0x1] %v284_v7  ;;  %v289_v9 = vld [vmem:[#allocation2 + $0x18] sm:$0x1]  ;;  %v292_v10 = vld [vmem:[#allocation2 + $0x24] sm:$0x1]  ;;  %v6814_v16 = vpack.c.bf16 %v7115_v11, %v7115_v11 }
  0x15   : > { %10522 = vst [vmem:[#allocation3_spill] sm:$0xff] %v7115_v11  ;;  %v7118_v12 = vld [vmem:[%s7110_s29 + $0x30] sm:$0xff]  ;;  %v7121_v13 = vld [vmem:[%s7110_s29] sm:$0xff]  ;;  %314 = vst.msk [vmem:[#allocation2 + $0xc] sm:$0xf] %vm309_vm3, %v7006_v2  ;;  %v290_v14 = vsel %vm7072_vm4, 0, %v289_v9 }
  0x16   : > { %10523 = vst [vmem:[#allocation4_spill] sm:$0xff] %v7118_v12  ;;  %10524 = vst [vmem:[#allocation5_spill] sm:$0xff] %v7121_v13  ;;  %v293_v15 = vsel %vm7072_vm4, 0, %v292_v10  ;;  %v7138_v19 = vld [vmem:[%s7110_s29 + $0x20] sm:$0xff]  ;;  %v6812_v20 = vpack.c.bf16 %v7121_v13, %v7121_v13  ;;  %v340_v21 = vld [vmem:[%s7110_s29 + $0x18] sm:$0xff]  ;;  %v389_v26 = vshrl.u32 %v6814_v16, 16  ;;  %v6818_v39 = vpack.c.bf16 %v7118_v12, %v7118_v12 }
  0x17   : > { %310 = vst.msk [vmem:[#allocation2] sm:$0xf] %vm309_vm3, %v7006_v2  ;;  %302 = vst [vmem:[#allocation2 + $0x14] sm:$0x1] %v301_v8  ;;  %v6815_v24 = vpack.c.bf16 %v340_v21, %v340_v21  ;;  %v6816_v25 = vpack.c.bf16 %v7138_v19, %v7138_v19  ;;  %v392_v27 = vshll.u32 %v6814_v16, 16  ;;  %v7162_v29 = vld [vmem:[%s7110_s29 + $0x28] sm:$0xff] }
  0x18   : > { %10525 = vst [vmem:[#allocation6_spill] sm:$0xff] %v7138_v19  ;;  %328 = vst.msk [vmem:[#allocation2 + $0xc] sm:$0xf] %vm323_vm5, %v7006_v2  ;;  %v372_v28 = vshrl.u32 %v6812_v20, 16  ;;  %v375_v30 = vshll.u32 %v6812_v20, 16  ;;  %v391_v33 = vrot.slane %v389_v26, 7  ;;  %v6817_v40 = vpack.c.bf16 %v7162_v29, %v7162_v29 }
  0x19   : > { %324 = vst.msk [vmem:[#allocation2] sm:$0xf] %vm323_vm5, %v7006_v2  ;;  %291 = vst [vmem:[#allocation2 + $0x18] sm:$0x1] %v290_v14  ;;  %v397_v31 = vshrl.u32 %v6815_v24, 16  ;;  %v406_v32 = vshrl.u32 %v6816_v25, 16 }
  0x1a   : > { %316 = vst.msk [vmem:[#allocation2 + $0x14] sm:$0x1] %vm312_vm7, %v7006_v2  ;;  %294 = vst [vmem:[#allocation2 + $0x24] sm:$0x1] %v293_v15  ;;  %vm369_vm9 = vsmask.f32 4368  ;;  %v394_v41 = vor.u32 %v392_v27, %v391_v33 }
  0x1b   : > { %330 = vst.msk [vmem:[#allocation2 + $0x14] sm:$0x1] %vm326_vm8, %v7006_v2  ;;  %10526 = vst [vmem:[#allocation7_spill] sm:$0xff] %v7162_v29  ;;  %v7168_v34 = vrot.slane %v372_v28, 7  ;;  %v409_v35 = vshll.u32 %v6816_v25, 16  ;;  %v400_v36 = vshll.u32 %v6815_v24, 16 }
  0x1c   : > { %317 = vst.msk [vmem:[#allocation2 + $0x18] sm:$0xf] %vm309_vm3, %v7006_v2  ;;  %320 = vst.msk [vmem:[#allocation2 + $0x24] sm:$0xf] %vm309_vm3, %v7006_v2  ;;  %v399_v37 = vrot.slane %v397_v31, 7  ;;  %v408_v38 = vrot.slane %v406_v32, 7  ;;  %445 = vrot.lane.b32.xlu1 %v394_v41, %s7007_s30 }
  0x1d   : > { %331 = vst.msk [vmem:[#allocation2 + $0x18] sm:$0xf] %vm323_vm5, %v7006_v2  ;;  %334 = vst.msk [vmem:[#allocation2 + $0x24] sm:$0xf] %vm323_vm5, %v7006_v2  ;;  %v377_v42 = vor.u32 %v375_v30, %v7168_v34  ;;  %v7176_v43 = vld [vmem:[%s7110_s29 + $0x8] sm:$0xff]  ;;  %v395_v44 = vrot.slane %v391_v33, 4 }
  0x1e   : > { %10527 = vst [vmem:[#allocation8_spill] sm:$0xff] %v7176_v43  ;;  %v404_v45 = vrot.slane %v399_v37, 4  ;;  %v402_v46 = vor.u32 %v400_v36, %v399_v37  ;;  %v423_v47 = vshrl.u32 %v6818_v39, 16  ;;  %v344_v48 = vld [vmem:[%s7110_s29 + $0x38] sm:$0xff]  ;;  %v411_v49 = vor.u32 %v409_v35, %v408_v38  ;;  %vm7183_vm10 = vmor %vm281_vm0, %vm369_vm9  ;;  %v297_v57 = vld [vmem:[#allocation2 + $0x8] sm:$0x1] }
  0x1f   : > { %439 = vrot.lane.b32.xlu0 %v377_v42, %s7007_s30  ;;  %v10528_v50 = vmov 0  ;;  %v426_v51 = vshll.u32 %v6818_v39, 16  ;;  %v414_v52 = vshrl.u32 %v6817_v40, 16  ;;  %v417_v53 = vshll.u32 %v6817_v40, 16  ;;  %v306_v61 = vld [vmem:[#allocation2 + $0x2c] sm:$0x1] }
  0x20   : > { %v10529_v50 = vsel %vm7183_vm10, 4294967295, %v10528_v50  ;;  %v425_v54 = vrot.slane %v423_v47, 7  ;;  %v6813_v55 = vpack.c.bf16 %v7176_v43, %v7176_v43  ;;  %v6819_v60 = vpack.c.bf16 %v344_v48, %v344_v48  ;;  %v303_v62 = vld [vmem:[#allocation2 + $0x20] sm:$0x1]  ;;  %449 = vrot.lane.b32.xlu1 %v404_v45, %s7007_s30  ;;  %v487_v32 = vld [vmem:[#allocation2 + $0xc] sm:$0xf] }
  0x21   : > { %10530 = vst [vmem:[#allocation9_spill] sm:$0xff] %v10529_v50  ;;  %v416_v58 = vrot.slane %v414_v52, 7  ;;  %v403_v63 = vsel %vm7183_vm10, %v395_v44, %v402_v46  ;;  %v412_v1 = vrot.slane %v408_v38, 4  ;;  %v298_v10 = vsel %vm7091_vm6, 0, %v297_v57  ;;  %v477_v33 = vld [vmem:[#allocation2] sm:$0xf] }
  0x22   : > { %v428_v0 = vor.u32 %v426_v51, %v425_v54  ;;  %v380_v3 = vshrl.u32 %v6813_v55, 16  ;;  %v431_v5 = vshrl.u32 %v6819_v60, 16  ;;  %v434_v7 = vshll.u32 %v6819_v60, 16  ;;  %299 = vst [vmem:[#allocation2 + $0x8] sm:$0x1] %v298_v10  ;;  %s7008_s8 = smov 127  }
  0x23   : > { %451 = vrot.lane.b32.xlu0 %v411_v49, %s7007_s30  ;;  %v419_v4 = vor.u32 %v417_v53, %v416_v58  ;;  %v383_v8 = vshll.u32 %v6813_v55, 16  ;;  %v307_v14 = vsel %vm7091_vm6, 0, %v306_v61  ;;  %v304_v15 = vsel %vm7091_vm6, 0, %v303_v62  ;;  %313 = vst.msk [vmem:[#allocation2 + $0x8] sm:$0x1] %vm312_vm7, %v7006_v2  ;;  %s7009_s9 = smov 126  }
  0x24   : > { %v382_v9 = vrot.slane %v380_v3, 7  ;;  %v433_v16 = vrot.slane %v431_v5, 7  ;;  %308 = vst [vmem:[#allocation2 + $0x2c] sm:$0x1] %v307_v14  ;;  %305 = vst [vmem:[#allocation2 + $0x20] sm:$0x1] %v304_v15  ;;  %447 = vrot.lane.b32.xlu1 %v403_v63, %s7007_s30 }
  0x25   : > { %322 = vst.msk [vmem:[#allocation2 + $0x2c] sm:$0x1] %vm312_vm7, %v7006_v2  ;;  %319 = vst.msk [vmem:[#allocation2 + $0x20] sm:$0x1] %vm312_vm7, %v7006_v2  ;;  %v378_v20 = vrot.slane %v7168_v34, 4  ;;  %v420_v21 = vsel %vm7183_vm10, %v412_v1, %v419_v4  ;;  %v429_v24 = vrot.slane %v425_v54, 4 }
  0x26   : > { %v387_v6 = vrot.slane %v382_v9, 4  ;;  %327 = vst.msk [vmem:[#allocation2 + $0x8] sm:$0x1] %vm326_vm8, %v7006_v2  ;;  %336 = vst.msk [vmem:[#allocation2 + $0x2c] sm:$0x1] %vm326_vm8, %v7006_v2  ;;  %v436_v25 = vor.u32 %v434_v7, %v433_v16  ;;  %v385_v26 = vor.u32 %v383_v8, %v382_v9  ;;  %v421_v30 = vrot.slane %v416_v58, 4 }
  0x27   : > { %457 = vrot.lane.b32.xlu0 %v428_v0, %s7007_s30  ;;  %333 = vst.msk [vmem:[#allocation2 + $0x20] sm:$0x1] %vm326_vm8, %v7006_v2  ;;  %v438_v2 = vrot.slane %v433_v16, 4  ;;  %vm475_vm11 = vcmask 134152   ;;  %v10531_v31 = vmov 0  ;;  %vm482_vm13 = vcmask 131080  }
  0x28   : > { %453 = vrot.lane.b32.xlu1 %v420_v21, %s7007_s30  ;;  %v437_v27 = vsel %vm7183_vm10, %v429_v24, %v436_v25  ;;  %v386_v28 = vsel %vm7183_vm10, %v378_v20, %v385_v26  ;;  %vm7232_vm12 = vmand %vm475_vm11, %vm295_vm2  ;;  %v10534_v38 = vmov 0  ;;  %v491_v39 = vld [vmem:[#allocation2 + $0x14] sm:$0x1]  ;;  %v494_v40 = vld [vmem:[#allocation2 + $0x18] sm:$0xf]  ;;  %vm2254_vm15 = vcmask 1042432  }
  0x29   : > { %v10532_v31 = vsel %vm7232_vm12, 4294967295, %v10531_v31  ;;  %vm7241_vm14 = vmand %vm482_vm13, %vm281_vm0  ;;  %v501_v46 = vld [vmem:[#allocation2 + $0x24] sm:$0xf]  ;;  %vm2255_vm0 = vcmask 1046532   ;;  %v10537_v9 = vmov 0  ;;  %s7012_s10 = smov 32  }
  0x2a   : > { %10533 = vst [vmem:[#allocation10_spill] sm:$0xff] %v10532_v31  ;;  %v10535_v38 = vsel %vm7241_vm14, 4294967295, %v10534_v38  ;;  %vm7268_vm1 = vmor %vm2254_vm15, %vm2255_vm0  ;;  %vm1347_vm2 = vsmask.f32 3328  ;;  %vm1348_vm3 = vsmask.f32 7440 }
  0x2b   : > { %443 = vrot.lane.b32.xlu0 %v387_v6, %s7007_s30  ;;  %10536 = vst [vmem:[#allocation11_spill] sm:$0xff] %v10535_v38  ;;  %v10538_v9 = vsel %vm7268_vm1, 4294967295, %v10537_v9  ;;  %vm7481_vm4 = vmor %vm1347_vm2, %vm1348_vm3  ;;  %s7013_s11 = smov 48   ;;  %s7014_s12 = smov 64   ;;  %vm746_vm5 = vcmask 130048   ;;  %vm750_vm6 = vcmask 261120  }
  0x2c   : > { %459 = vrot.lane.b32.xlu1 %v437_v27, %s7007_s30  ;;  %10539 = vst [vmem:[#allocation12_spill] sm:$0xff] %v10538_v9  ;;  %s7015_s13 = smov 80   ;;  %s7016_s14 = smov 16   ;;  %vm753_vm7 = vcmask 392192   ;;  %vm756_vm8 = vcmask 523264   ;;  %vm759_vm9 = vcmask 654336  }
  0x2d   : > { %v484_v51 = vld [vmem:[#allocation2 + $0x8] sm:$0x1]  ;;  %v505_v60 = vld [vmem:[#allocation2 + $0x2c] sm:$0x1]  ;;  %s7017_s15 = smov 96   ;;  %s7018_s16 = smov 112  }
  0x2e   : > { %v498_v61 = vld [vmem:[#allocation2 + $0x20] sm:$0x1]  ;;  %vm762_vm13 = vcmask 785408   ;;  %vm765_vm15 = vcmask 916480   ;;  %vm3121_vm0 = vcmask 1041408   ;;  %vm3126_vm2 = vcmask 1043456  }
  0x2f   : > { %441 = vrot.lane.b32.xlu0 %v386_v28, %s7007_s30  ;;  %vm10504_vm3 = vcmask 1045504  }
  0x30   : > { %461 = vrot.lane.b32.xlu1 %v438_v2, %s7007_s30 }
  0x33   : > { %455 = vrot.lane.b32.xlu0 %v421_v30, %s7007_s30 }
  0x8e   : > { %v446_v34 = vpop.permute.xlu1 %445 }
  0x8f   : > { %v488_v36 = vsel %vm7232_vm12, %v446_v34, %v487_v32 }
  0x90   : > { %489 = vst [vmem:[#allocation2 + $0xc] sm:$0xf] %v488_v36 }
  0x91   : > { %v440_v35 = vpop.permute.xlu0 %439 }
  0x92   : > { %v478_v37 = vsel %vm7232_vm12, %v440_v35, %v477_v33  ;;  %v450_v41 = vpop.permute.xlu1 %449 }
  0x93   : > { %479 = vst [vmem:[#allocation2] sm:$0xf] %v478_v37  ;;  %v492_v44 = vsel %vm7241_vm14, %v450_v41, %v491_v39 }
  0x94   : > { %493 = vst [vmem:[#allocation2 + $0x14] sm:$0x1] %v492_v44 }
  0x95   : > { %v452_v42 = vpop.permute.xlu0 %451 }
  0x96   : > { %v495_v45 = vsel %vm7232_vm12, %v452_v42, %v494_v40  ;;  %v448_v47 = vpop.permute.xlu1 %447 }
  0x97   : > { %496 = vst [vmem:[#allocation2 + $0x18] sm:$0xf] %v495_v45  ;;  %490 = vst.msk [vmem:[#allocation2 + $0x10] sm:$0xf] %vm475_vm11, %v448_v47  ;;  %v2243_v1 = vld [vmem:[#allocation2 + $0xc] sm:$0xe] }
  0x98   : > { %v6621_v14 = vrot.slane %v2243_v1, 9  ;;  %v7305_v39 = vld [vmem:[#allocation2 + $0xc] sm:$0xf] }
  0x99   : > { %v458_v48 = vpop.permute.xlu0 %457 }
  0x9a   : > { %v502_v49 = vsel %vm7232_vm12, %v458_v48, %v501_v46  ;;  %v454_v52 = vpop.permute.xlu1 %453  ;;  %v2242_v7 = vld [vmem:[#allocation2] sm:$0xe] }
  0x9b   : > { %503 = vst [vmem:[#allocation2 + $0x24] sm:$0xf] %v502_v49  ;;  %497 = vst.msk [vmem:[#allocation2 + $0x1c] sm:$0xf] %vm475_vm11, %v454_v52  ;;  %v7272_v15 = vld [vmem:[#allocation2 + $0x14] sm:$0x1] }
  0x9c   : > { %v6620_v24 = vrot.slane %v2242_v7, 9  ;;  %v2269_v32 = vrot.slane %v7272_v15, 5 }
  0x9d   : > { %v444_v53 = vpop.permute.xlu0 %443 }
  0x9e   : > { %v485_v54 = vsel %vm7241_vm14, %v444_v53, %v484_v51  ;;  %v460_v55 = vpop.permute.xlu1 %459  ;;  %v7255_v58 = vld [vmem:[#allocation2 + $0x10] sm:$0xf]  ;;  %v2244_v8 = vld [vmem:[#allocation2 + $0x18] sm:$0xe]  ;;  %v7329_v51 = vld [vmem:[#allocation2] sm:$0xf] }
  0x9f   : > { %486 = vst [vmem:[#allocation2 + $0x8] sm:$0x1] %v485_v54  ;;  %504 = vst.msk [vmem:[#allocation2 + $0x28] sm:$0xf] %vm475_vm11, %v460_v55  ;;  %797 = vrot.lane.b32.xlu1 %v7255_v58, %s7008_s8  ;;  %v2266_v5 = vrot.slane %v7255_v58, 5  ;;  %v6622_v25 = vrot.slane %v2244_v8, 9 }
  0xa0   : > { %v7335_v52 = vld [vmem:[#allocation2 + $0x18] sm:$0xf] }
  0xa1   : > { %v442_v57 = vpop.permute.xlu0 %441  ;;  %v7287_v26 = vsel %vm7268_vm1, %v6621_v14, %v2266_v5  ;;  %v2268_v30 = vrot.slane %v2266_v5, 4 }
  0xa2   : > { %481 = vst.msk [vmem:[#allocation2 + $0x4] sm:$0xf] %vm475_vm11, %v442_v57  ;;  %v462_v62 = vpop.permute.xlu1 %461  ;;  %v7261_v0 = vld [vmem:[#allocation2 + $0x1c] sm:$0xf]  ;;  %v2245_v10 = vld [vmem:[#allocation2 + $0x24] sm:$0xe] }
  0xa3   : > { %v506_v3 = vsel %vm7241_vm14, %v462_v62, %v505_v60  ;;  %v2273_v16 = vrot.slane %v7261_v0, 5  ;;  %v6623_v27 = vrot.slane %v2245_v10, 9  ;;  %v2289_v40 = vshrl.u32 %v7287_v26, 16  ;;  %v7327_v49 = vld [vmem:[#allocation2 + $0x24] sm:$0xf] }
  0xa4   : > { %507 = vst [vmem:[#allocation2 + $0x2c] sm:$0x1] %v506_v3  ;;  %v7323_v47 = vsel %vm7268_vm1, %v2268_v30, %v2269_v32  ;;  %v526_v17 = vshrl.u32 %v7327_v49, 16 }
  0xa5   : > { %v456_v63 = vpop.permute.xlu0 %455  ;;  %v7303_v36 = vsel %vm7268_vm1, %v6622_v25, %v2273_v16  ;;  %v2275_v1 = vrot.slane %v2273_v16, 4 }
  0xa6   : > { %v499_v4 = vsel %vm7241_vm14, %v456_v63, %v498_v61  ;;  %v7275_v20 = vld [vmem:[#allocation2 + $0x8] sm:$0x1]  ;;  %v7010_v61 = vmov 1983009808   ;;  %v544_v63 = vlaneseq  ;;  %v2294_v10 = vshrl.u32 %v7303_v36, 16 }
  0xa7   : > { %500 = vst [vmem:[#allocation2 + $0x20] sm:$0x1] %v499_v4  ;;  %v7277_v6 = vld [vmem:[#allocation2 + $0x28] sm:$0xf]  ;;  %v2262_v33 = vrot.slane %v7275_v20, 5  ;;  %v542_v62 = vunpack.c.l.s4 %v7010_v61  ;;  %v1377_v61 = vshll.u32 %v7255_v58, 16 }
  0xa8   : > { %805 = vrot.lane.b32.xlu1 %v7277_v6, %s7008_s8  ;;  %v2280_v28 = vrot.slane %v7277_v6, 5  ;;  %v7364_v8 = vshrl.u32 %v544_v63, 7 }
  0xa9   : > { %v7279_v21 = vld [vmem:[#allocation2 + $0x4] sm:$0xf]  ;;  %v543_v7 = vunpack.c.0.s8 %v542_v62 }
  0xaa   : > { %793 = vrot.lane.b32.xlu0 %v7279_v21, %s7008_s8  ;;  %v2259_v2 = vrot.slane %v7279_v21, 5  ;;  %v7295_v34 = vsel %vm7268_vm1, %v6623_v27, %v2280_v28  ;;  %v2282_v55 = vrot.slane %v2280_v28, 4 }
  0xab   : > { %v2293_v44 = vpack.i.b16 %v7295_v34, %v7303_v36  ;;  %v7341_v53 = vld [vmem:[#allocation2 + $0x2c] sm:$0x1]  ;;  %v2295_v3 = vshrl.u32 %v7295_v34, 16 }
  0xac   : > { %v7299_v35 = vsel %vm7268_vm1, %v6620_v24, %v2259_v2  ;;  %v2261_v37 = vrot.slane %v2259_v2, 4  ;;  %795 = vrot.lane.b32.xlu1 %v7305_v39, %s7008_s8  ;;  %v2283_v57 = vrot.slane %v7341_v53, 5  ;;  %v7374_v24 = vsub.s32 %v543_v7, %v7364_v8 }
  0xad   : > { %v2287_v41 = vpack.i.b16 %v7287_v26, %v7299_v35  ;;  %v2288_v42 = vshrl.u32 %v7299_v35, 16  ;;  %v2296_v14 = vpack.i.b16 %v2295_v3, %v2294_v10  ;;  %v7438_v3 = vrot.slane %v1377_v61, 5 }
  0xae   : > { %801 = vrot.lane.b32.xlu0 %v7261_v0, %s7008_s8  ;;  %v7319_v45 = vsel %vm7268_vm1, %v2261_v37, %v2262_v33  ;;  %v7343_v54 = vld [vmem:[#allocation2 + $0x20] sm:$0x1]  ;;  %v7358_v4 = vsel %vm7268_vm1, %v2282_v55, %v2283_v57 }
  0xaf   : > { %v2290_v46 = vpack.i.b16 %v2289_v40, %v2288_v42  ;;  %v2299_v48 = vpack.i.b16 %v7323_v47, %v7319_v45  ;;  %v2276_v60 = vrot.slane %v7343_v54, 5  ;;  %v7383_v28 = vrot.slane %v2296_v14, %v7374_v24 }
  0xb0   : > { %803 = vrot.lane.b32.xlu1 %v7327_v49, %s7008_s8  ;;  %v2307_v33 = vshrl.u32 %v7358_v4, 16  ;;  %v2300_v40 = vshrl.u32 %v7319_v45, 16  ;;  %v7404_v42 = vrot.slane %v2287_v41, %v7374_v24  ;;  %v538_v14 = vshrl.u32 %v7277_v6, 16 }
  0xb1   : > { %v7362_v5 = vsel %vm7268_vm1, %v2275_v1, %v2276_v60  ;;  %v7380_v27 = vrot.slane %v2290_v46, %v7374_v24  ;;  %v7390_v2 = vrot.slane %v2299_v48, %v7374_v24  ;;  %v7409_v46 = vrot.slane %v2293_v44, %v7374_v24 }
  0xb2   : > { %791 = vrot.lane.b32.xlu0 %v7329_v51, %s7008_s8  ;;  %v2305_v16 = vpack.i.b16 %v7358_v4, %v7362_v5  ;;  %v2306_v37 = vshrl.u32 %v7362_v5, 16  ;;  %v2301_v48 = vshrl.u32 %v7323_v47, 16  ;;  %v532_v44 = vshrl.u32 %v7255_v58, 16 }
  0xb3   : > { %v2359_v30 = vcombine.low %v7380_v27, %v7383_v28  ;;  %v1406_v41 = vshll.u32 %v7343_v54, 16 }
  0xb4   : > { %1073 = vrot.lane.b32.xlu1 %v7255_v58, %s7009_s9  ;;  %v7377_v25 = vrot.slane %v2305_v16, %v7374_v24  ;;  %v2308_v55 = vpack.i.b16 %v2307_v33, %v2306_v37  ;;  %v2302_v57 = vpack.i.b16 %v2301_v48, %v2300_v40  ;;  %v1382_v7 = vrot.slane %v532_v44, 4 }
  0xb5   : > { %v531_v16 = vshrl.u32 %v7279_v21, 16  ;;  %v1357_v33 = vshll.u32 %v7279_v21, 16  ;;  %v1372_v40 = vshll.u32 %v7305_v39, 16  ;;  %v537_v48 = vshrl.u32 %v7261_v0, 16 }
  0xb6   : > { %799 = vrot.lane.b32.xlu0 %v7335_v52, %s7008_s8  ;;  %v2393_v32 = vcombine.low %v7390_v2, %v7377_v25  ;;  %v7421_v60 = vrot.slane %v2308_v55, %v7374_v24  ;;  %v7426_v62 = vrot.slane %v2302_v57, %v7374_v24  ;;  %v1383_v37 = vor.u32 %v1382_v7, %v7438_v3 }
  0xb7   : > { %v1422_v57 = vrot.slane %v538_v14, 4  ;;  %v1359_v61 = vrot.slane %v1357_v33, 5  ;;  %v1362_v59 = vrot.slane %v531_v16, 4  ;;  %v1397_v7 = vshll.u32 %v7261_v0, 16 }
  0xb8   : > { %1081 = vrot.lane.b32.xlu1 %v7277_v6, %s7009_s9  ;;  %v1426_v33 = vshll.u32 %v7341_v53, 16  ;;  %v1374_v23 = vrot.slane %v1372_v40, 5  ;;  %v1402_v22 = vrot.slane %v537_v48, 4  ;;  %v1352_v53 = vshll.u32 %v7329_v51, 16 }
  0xb9   : > { %v1363_v56 = vor.u32 %v1362_v59, %v1359_v61  ;;  %v10540_v40 = vmov 0  ;;  %v1366_v59 = vshll.u32 %v7275_v20, 16  ;;  %v10550_v13 = vcombine.high %v7390_v2, %v7377_v25 }
  0xba   : > { %1069 = vrot.lane.b32.xlu0 %v7279_v21, %s7009_s9  ;;  %v10541_v40 = vsel %vm7481_vm4, 4294967295, %v10540_v40 }
  0xbb   : > { %10542 = vst [vmem:[#allocation13_spill] sm:$0xff] %v10541_v40  ;;  %v1364_v63 = vrot.slane %v1363_v56, 4 }
  0xbc   : > { %1071 = vrot.lane.b32.xlu1 %v7305_v39, %s7009_s9 }
  0xbe   : > { %1077 = vrot.lane.b32.xlu0 %v7261_v0, %s7009_s9 }
  0xc0   : > { %1079 = vrot.lane.b32.xlu1 %v7327_v49, %s7009_s9 }
  0xc2   : > { %1067 = vrot.lane.b32.xlu0 %v7329_v51, %s7009_s9 }
  0xc4   : > { %2549 = vrot.lane.b32.xlu1 %v7287_v26, %s7008_s8 }
  0xc6   : > { %1075 = vrot.lane.b32.xlu0 %v7335_v52, %s7009_s9 }
  0xc8   : > { %2557 = vrot.lane.b32.xlu1 %v7295_v34, %s7008_s8 }
  0xca   : > { %2545 = vrot.lane.b32.xlu0 %v7299_v35, %s7008_s8 }
  0xcc   : > { %2551 = vrot.lane.b32.xlu1 %v7323_v47, %s7008_s8 }
  0xce   : > { %2553 = vrot.lane.b32.xlu0 %v7303_v36, %s7008_s8 }
  0xd0   : > { %2559 = vrot.lane.b32.xlu1 %v7358_v4, %s7008_s8 }
  0xd2   : > { %2821 = vrot.lane.b32.xlu0 %v7299_v35, %s7009_s9 }
  0xd4   : > { %2823 = vrot.lane.b32.xlu1 %v7319_v45, %s7009_s9 }
  0xd6   : > { %2825 = vrot.lane.b32.xlu0 %v7287_v26, %s7009_s9  ;;  %v1417_v26 = vshll.u32 %v7277_v6, 16 }
  0xd8   : > { %2827 = vrot.lane.b32.xlu1 %v7323_v47, %s7009_s9  ;;  %v7455_v55 = vrot.slane %v1417_v26, 5  ;;  %v520_v47 = vshrl.u32 %v7305_v39, 16  ;;  %v1384_v26 = vrot.slane %v1383_v37, 4  ;;  %v519_v37 = vshrl.u32 %v7329_v51, 16 }
  0xda   : > { %2829 = vrot.lane.b32.xlu0 %v7303_v36, %s7009_s9  ;;  %v1386_v36 = vshll.u32 %v7272_v15, 16  ;;  %v1371_v18 = vrot.slane %v520_v47, 4  ;;  %v1351_v20 = vrot.slane %v519_v37, 4 }
  0xdc   : > { %2831 = vrot.lane.b32.xlu1 %v7362_v5, %s7009_s9  ;;  %v1388_v15 = vrot.slane %v1386_v36, 5  ;;  %v1428_v36 = vrot.slane %v1426_v33, 5  ;;  %v1375_v10 = vor.u32 %v1374_v23, %v1371_v18  ;;  %v1411_v33 = vrot.slane %v526_v17, 4 }
  0xdd   : > { %v1392_v23 = vshll.u32 %v7335_v52, 16 }
  0xde   : > { %2833 = vrot.lane.b32.xlu0 %v7295_v34, %s7009_s9  ;;  %v1423_v34 = vor.u32 %v1422_v57, %v7455_v55  ;;  %v1399_v57 = vrot.slane %v1397_v7, 5  ;;  %v1354_v7 = vrot.slane %v1352_v53, 5 }
  0xe0   : > { %2835 = vrot.lane.b32.xlu1 %v7358_v4, %s7009_s9  ;;  %v7490_v4 = vsel %vm7481_vm4, %v1384_v26, %v1388_v15  ;;  %v1424_v1 = vrot.slane %v1423_v34, 4  ;;  %v1403_v35 = vor.u32 %v1402_v22, %v1399_v57  ;;  %v525_v26 = vshrl.u32 %v7335_v52, 16 }
  0xe1   : > { %v1368_v15 = vrot.slane %v1366_v59, 5  ;;  %v1376_v22 = vrot.slane %v1375_v10, 4  ;;  %v1408_v34 = vrot.slane %v1406_v41, 5  ;;  %v1355_v59 = vor.u32 %v1354_v7, %v1351_v20 }
  0xe2   : > { %2547 = vrot.lane.b32.xlu0 %v7319_v45, %s7008_s8  ;;  %v1412_v45 = vshll.u32 %v7327_v49, 16  ;;  %v7503_v56 = vsel %vm7481_vm4, %v1424_v1, %v1428_v36  ;;  %v1394_v10 = vrot.slane %v1392_v23, 5  ;;  %v524_v23 = vpack.i.b16 %v7327_v49, %v7335_v52 }
  0xe3   : > { %v7507_v54 = vsel %vm7481_vm4, %v1364_v63, %v1368_v15  ;;  %v7516_v1 = vsel %vm7481_vm4, %v1376_v22, %v7438_v3  ;;  %v530_v15 = vpack.i.b16 %v7255_v58, %v7279_v21 }
  0xe4   : > { %1972 = vrot.lane.b32.xlu1 %v7490_v4, %s7009_s9  ;;  %v1414_v18 = vrot.slane %v1412_v45, 5  ;;  %v1391_v45 = vrot.slane %v525_v26, 4  ;;  %v555_v21 = vrot.slane %v524_v23, %v7374_v24 }
  0xe5   : > { %v615_v22 = vrot.slane %v530_v15, %v7374_v24 }
  0xe6   : > { %2555 = vrot.lane.b32.xlu0 %v7362_v5, %s7008_s8  ;;  %v1404_v5 = vrot.slane %v1403_v35, 4  ;;  %v1415_v53 = vor.u32 %v1414_v18, %v1411_v33  ;;  %v1356_v35 = vrot.slane %v1355_v59, 4  ;;  %v1395_v36 = vor.u32 %v1394_v10, %v1391_v45 }
  0xe7   : > { %v536_v33 = vpack.i.b16 %v7277_v6, %v7261_v0 }
  0xe8   : > { %1980 = vrot.lane.b32.xlu1 %v7503_v56, %s7009_s9  ;;  %v7520_v63 = vsel %vm7481_vm4, %v1404_v5, %v1408_v34  ;;  %v1416_v41 = vrot.slane %v1415_v53, 4  ;;  %v7533_v3 = vsel %vm7481_vm4, %v1356_v35, %v1359_v61  ;;  %v1396_v7 = vrot.slane %v1395_v36, 4 }
  0xe9   : > { %v7011_v61 = vmov 1934713408   ;;  %v623_v5 = vrot.slane %v536_v33, %v7374_v24  ;;  %v539_v34 = vpack.i.b16 %v538_v14, %v537_v48  ;;  %v518_v53 = vpack.i.b16 %v7305_v39, %v7329_v51 }
  0xea   : > { %1968 = vrot.lane.b32.xlu0 %v7507_v54, %s7009_s9  ;;  %v7529_v20 = vsel %vm7481_vm4, %v1416_v41, %v7455_v55  ;;  %v7545_v55 = vsel %vm7481_vm4, %v1396_v7, %v1399_v57  ;;  %v559_v18 = vunpack.c.l.s4 %v7011_v61  ;;  %v533_v57 = vpack.i.b16 %v532_v44, %v531_v16 }
  0xeb   : > { %v624_v52 = vcombine.low %v615_v22, %v623_v5  ;;  %v657_v0 = vrot.slane %v539_v34, %v7374_v24  ;;  %v527_v44 = vpack.i.b16 %v526_v17, %v525_v26  ;;  %v547_v6 = vrot.slane %v518_v53, %v7374_v24 }
  0xec   : > { %1970 = vrot.lane.b32.xlu1 %v7516_v1, %s7009_s9  ;;  %v560_v49 = vunpack.c.0.s8 %v559_v18  ;;  %v649_v58 = vrot.slane %v533_v57, %v7374_v24  ;;  %v521_v16 = vpack.i.b16 %v520_v47, %v519_v37  ;;  %v625_v51 = vcombine.high %v615_v22, %v623_v5 }
  0xed   : > { %v556_v48 = vcombine.low %v547_v6, %v555_v21  ;;  %v7588_v26 = vrot.slane %v527_v44, %v7374_v24  ;;  %v557_v15 = vcombine.high %v547_v6, %v555_v21  ;;  %v1452_v33 = vshrl.u32 %v7503_v56, 16 }
  0xee   : > { %1976 = vrot.lane.b32.xlu0 %v7520_v63, %s7009_s9  ;;  %v7578_v14 = vsub.s32 %v560_v49, %v7364_v8  ;;  %v658_v17 = vcombine.low %v649_v58, %v657_v0  ;;  %v7595_v8 = vrot.slane %v521_v16, %v7374_v24  ;;  %v659_v7 = vcombine.high %v649_v58, %v657_v0 }
  0xef   : > { %v1444_v61 = vpack.i.b16 %v7490_v4, %v7507_v54  ;;  %v1445_v18 = vshrl.u32 %v7507_v54, 16  ;;  %v1450_v23 = vpack.i.b16 %v7503_v56, %v7520_v63  ;;  %v1451_v22 = vshrl.u32 %v7520_v63, 16 }
  0xf0   : > { %1978 = vrot.lane.b32.xlu1 %v7529_v20, %s7009_s9  ;;  %v7585_v59 = vrot.slane %v624_v52, %v7578_v14  ;;  %v7598_v39 = vrot.slane %v556_v48, %v7578_v14  ;;  %v666_v37 = vrot.slane %v658_v17, %v7578_v14  ;;  %v590_v45 = vcombine.low %v7595_v8, %v7588_v26 }
  0xf1   : > { %v7611_v41 = vrot.slane %v625_v51, %v7578_v14  ;;  %v7626_v34 = vrot.slane %v659_v7, %v7578_v14  ;;  %v7629_v53 = vrot.slane %v557_v15, %v7578_v14  ;;  %v1446_v49 = vshrl.u32 %v7490_v4, 16 }
  0xf2   : > { %1966 = vrot.lane.b32.xlu0 %v7533_v3, %s7009_s9  ;;  %10543 = vst [vmem:[#allocation14_spill] sm:$0xff] %v7585_v59  ;;  %10544 = vst [vmem:[#allocation15_spill] sm:$0xff] %v7598_v39  ;;  %v6824_v47 = vcombine.high %v7585_v59, %v7585_v59  ;;  %v6820_v10 = vcombine.high %v7598_v39, %v7598_v39  ;;  %v6825_v35 = vcombine.high %v666_v37, %v666_v37 }
  0xf3   : > { %v598_v36 = vrot.slane %v590_v45, %v7578_v14  ;;  %v6546_v57 = vcombine.low %v7611_v41, %v7611_v41  ;;  %v1537_v21 = vrot.slane %v1450_v23, %v7374_v24  ;;  %v6547_v52 = vcombine.low %v7626_v34, %v7626_v34 }
  0xf4   : > { %1696 = vrot.lane.b32.xlu1 %v7490_v4, %s7008_s8  ;;  %v6539_v58 = vcombine.low %v7629_v53, %v7629_v53  ;;  %v7644_v4 = vrot.slane %v2359_v30, %v7578_v14  ;;  %v2427_v0 = vcombine.low %v7426_v62, %v7421_v60  ;;  %v1434_v44 = vshrl.u32 %v7516_v1, 16 }
  0xf5   : > { %v6821_v5 = vcombine.high %v598_v36, %v598_v36  ;;  %v1440_v6 = vshrl.u32 %v7529_v20, 16  ;;  %v1432_v16 = vpack.i.b16 %v7516_v1, %v7533_v3  ;;  %v1433_v48 = vshrl.u32 %v7533_v3, 16 }
  0xf6   : > { %1974 = vrot.lane.b32.xlu0 %v7545_v55, %s7009_s9  ;;  %v1438_v30 = vpack.i.b16 %v7529_v20, %v7545_v55  ;;  %v6543_v17 = vcombine.low %v666_v37, %v666_v37  ;;  %v591_v51 = vcombine.high %v7595_v8, %v7588_v26  ;;  %v6624_v45 = vcombine.low %v7644_v4, %v7644_v4 }
  0xf7   : > { %v1435_v7 = vpack.i.b16 %v1434_v44, %v1433_v48  ;;  %v1461_v26 = vrot.slane %v1432_v16, %v7374_v24 }
  0xf8   : > { %1704 = vrot.lane.b32.xlu1 %v7503_v56, %s7008_s8  ;;  %v1447_v56 = vpack.i.b16 %v1446_v49, %v1445_v18  ;;  %v1469_v37 = vrot.slane %v1438_v30, %v7374_v24  ;;  %v7674_v15 = vrot.slane %v591_v51, %v7578_v14 }
  0xfa   : > { %1692 = vrot.lane.b32.xlu0 %v7507_v54, %s7008_s8  ;;  %v1529_v54 = vrot.slane %v1444_v61, %v7374_v24  ;;  %v6540_v23 = vcombine.low %v7674_v15, %v7674_v15 }
  0xfc   : > { %1694 = vrot.lane.b32.xlu1 %v7516_v1, %s7008_s8  ;;  %v7662_v1 = vrot.slane %v2427_v0, %v7578_v14 }
  0xfe   : > { %1700 = vrot.lane.b32.xlu0 %v7520_v63, %s7008_s8  ;;  %v1453_v63 = vpack.i.b16 %v1452_v33, %v1451_v22  ;;  %v6631_v33 = vcombine.low %v7662_v1, %v7662_v1  ;;  %v7689_v22 = vrot.slane %v2393_v32, %v7578_v14  ;;  %v1539_v32 = vcombine.high %v1529_v54, %v1537_v21 }
 0x100   : > { %1702 = vrot.lane.b32.xlu1 %v7529_v20, %s7008_s8  ;;  %10546 = vst [vmem:[#allocation17_spill] sm:$0xff] %v7689_v22  ;;  %v6872_v44 = vcombine.high %v7689_v22, %v7689_v22  ;;  %v1553_v30 = vrot.slane %v1539_v32, %v7578_v14 }
 0x102   : > { %1690 = vrot.lane.b32.xlu0 %v7533_v3, %s7008_s8  ;;  %v1563_v3 = vrot.slane %v1447_v56, %v7374_v24 }
 0x104   : > { %719 = vrot.lane.b32.xlu1 %v6824_v47, %s7012_s10  ;;  %v1538_v47 = vcombine.low %v1529_v54, %v1537_v21 }
 0x106   : > { %1698 = vrot.lane.b32.xlu0 %v7545_v55, %s7008_s8  ;;  %v7679_v61 = vrot.slane %v1538_v47, %v7578_v14 }
 0x108   : > { %724 = vrot.lane.b32.xlu1 %v6825_v35, %s7013_s11  ;;  %v1439_v35 = vshrl.u32 %v7545_v55, 16  ;;  %v6536_v55 = vcombine.low %v598_v36, %v598_v36  ;;  %10545 = vst [vmem:[#allocation16_spill] sm:$0xff] %v7679_v61  ;;  %v6848_v49 = vcombine.high %v7679_v61, %v7679_v61 }
 0x10a   : > { %684 = vrot.lane.b32.xlu0 %v6820_v10, %s7012_s10  ;;  %v1571_v10 = vrot.slane %v1453_v63, %v7374_v24  ;;  %v1441_v8 = vpack.i.b16 %v1440_v6, %v1439_v35  ;;  %v1495_v63 = vrot.slane %v1435_v7, %v7374_v24 }
 0x10c   : > { %689 = vrot.lane.b32.xlu1 %v6821_v5, %s7013_s11  ;;  %v1572_v18 = vcombine.low %v1563_v3, %v1571_v10  ;;  %v1470_v5 = vcombine.low %v1461_v26, %v1469_v37  ;;  %v1573_v35 = vcombine.high %v1563_v3, %v1571_v10 }
 0x10e   : > { %729 = vrot.lane.b32.xlu0 %v6546_v57, %s7014_s12  ;;  %v1580_v56 = vrot.slane %v1572_v18, %v7578_v14  ;;  %v7709_v16 = vrot.slane %v1470_v5, %v7578_v14 }
 0x110   : > { %734 = vrot.lane.b32.xlu1 %v6547_v52, %s7015_s13  ;;  %v1503_v52 = vrot.slane %v1441_v8, %v7374_v24  ;;  %v6585_v6 = vcombine.low %v1580_v56, %v1580_v56  ;;  %10547 = vst [vmem:[#allocation18_spill] sm:$0xff] %v7709_v16  ;;  %v6844_v51 = vcombine.high %v7709_v16, %v7709_v16 }
 0x111   : > { %v7669_v20 = vpop.permute.xlu1 %797  ;;  %v6849_v47 = vcombine.high %v1580_v56, %v1580_v56 }
 0x112   : > { %694 = vrot.lane.b32.xlu0 %v6539_v58, %s7014_s12  ;;  %v1504_v48 = vcombine.low %v1495_v63, %v1503_v52  ;;  %v1505_v5 = vcombine.high %v1495_v63, %v1503_v52 }
 0x114   : > { %2448 = vrot.lane.b32.xlu1 %v6624_v45, %s7016_s14  ;;  %v1512_v45 = vrot.slane %v1504_v48, %v7578_v14  ;;  %v6850_v48 = vcombine.high %v1553_v30, %v1553_v30 }
 0x116   : > { %714 = vrot.lane.b32.xlu0 %v6543_v17, %s7016_s14  ;;  %v1471_v17 = vcombine.high %v1461_v26, %v1469_v37  ;;  %v6588_v26 = vcombine.low %v1553_v30, %v1553_v30  ;;  %v6845_v37 = vcombine.high %v1512_v45, %v1512_v45  ;;  %v6578_v32 = vcombine.low %v1512_v45, %v1512_v45 }
 0x118   : > { %2483 = vrot.lane.b32.xlu1 %v6631_v33, %s7016_s14  ;;  %v7728_v33 = vrot.slane %v1471_v17, %v7578_v14 }
 0x11a   : > { %679 = vrot.lane.b32.xlu0 %v6536_v55, %s7016_s14  ;;  %v7691_v57 = vpop.permute.xlu1 %805  ;;  %v7731_v55 = vrot.slane %v1573_v35, %v7578_v14  ;;  %v6581_v18 = vcombine.low %v7728_v33, %v7728_v33 }
 0x11c   : > { %v7693_v36 = vpop.permute.xlu0 %793  ;;  %1633 = vrot.lane.b32.xlu1 %v6848_v49, %s7012_s10 }
 0x11e   : > { %699 = vrot.lane.b32.xlu0 %v6540_v23, %s7015_s13  ;;  %v7702_v58 = vpop.permute.xlu1 %795  ;;  %v6589_v23 = vcombine.low %v7731_v55, %v7731_v55 }
 0x120   : > { %v7704_v0 = vpop.permute.xlu0 %801  ;;  %1628 = vrot.lane.b32.xlu1 %v6585_v6, %s7016_s14  ;;  %v7752_v6 = vrot.slane %v1505_v5, %v7578_v14 }
 0x122   : > { %2488 = vrot.lane.b32.xlu0 %v6872_v44, %s7012_s10  ;;  %v7714_v54 = vpop.permute.xlu1 %803  ;;  %v6826_v44 = vcombine.high %v7611_v41, %v7611_v41  ;;  %v6582_v17 = vcombine.low %v7752_v6, %v7752_v6  ;;  %v10548_v41 = vcombine.low %v7404_v42, %v7409_v46 }
 0x124   : > { %v7716_v21 = vpop.permute.xlu0 %791  ;;  %1638 = vrot.lane.b32.xlu1 %v6849_v47, %s7013_s11  ;;  %v827_v47 = vpack.i.b16 %v7691_v57, %v7704_v0 }
 0x126   : > { %1598 = vrot.lane.b32.xlu0 %v6844_v51, %s7012_s10  ;;  %v7723_v7 = vpop.permute.xlu1 %1073  ;;  %v7766_v51 = vrot.slane %v10548_v41, %v7578_v14  ;;  %v914_v5 = vrot.slane %v827_v47, %v7374_v24  ;;  %v6822_v41 = vcombine.high %v7629_v53, %v7629_v53  ;;  %v6846_v53 = vcombine.high %v7728_v33, %v7728_v33 }
 0x127   : > { %v7829_v33 = vrot.slane %v10550_v13, %v7578_v14  ;;  %v6869_v13 = vcombine.high %v7644_v4, %v7644_v4 }
 0x128   : > { %v7725_v8 = vpop.permute.xlu0 %799  ;;  %1603 = vrot.lane.b32.xlu1 %v6845_v37, %s7013_s11  ;;  %10549 = vst [vmem:[#allocation19_spill] sm:$0xff] %v7766_v51  ;;  %v6868_v37 = vcombine.high %v7766_v51, %v7766_v51 }
 0x129   : > { %v815_v45 = vpack.i.b16 %v7714_v54, %v7725_v8 }
 0x12a   : > { %1643 = vrot.lane.b32.xlu0 %v6588_v26, %s7014_s12  ;;  %v7735_v3 = vpop.permute.xlu1 %1081  ;;  %v6873_v26 = vcombine.high %v7662_v1, %v7662_v1 }
 0x12c   : > { %v7737_v10 = vpop.permute.xlu0 %1069  ;;  %1648 = vrot.lane.b32.xlu1 %v6589_v23, %s7015_s13  ;;  %v809_v23 = vpack.i.b16 %v7702_v58, %v7716_v21 }
 0x12e   : > { %1608 = vrot.lane.b32.xlu0 %v6581_v18, %s7014_s12  ;;  %v7745_v49 = vpop.permute.xlu1 %1071  ;;  %v821_v18 = vpack.i.b16 %v7669_v20, %v7693_v36  ;;  %v7804_v47 = vrot.slane %v809_v23, %v7374_v24 }
 0x130   : > { %v7747_v56 = vpop.permute.xlu0 %1077  ;;  %739 = vrot.lane.b32.xlu1 %v6826_v44, %s7017_s15 }
 0x131   : > { %v1103_v1 = vpack.i.b16 %v7735_v3, %v7747_v56 }
 0x132   : > { %1593 = vrot.lane.b32.xlu0 %v6578_v32, %s7016_s14  ;;  %v7756_v63 = vpop.permute.xlu1 %1079  ;;  %v7790_v32 = vrot.slane %v815_v45, %v7374_v24  ;;  %v1097_v45 = vpack.i.b16 %v7723_v7, %v7737_v10 }
 0x133   : > { %v1190_v43 = vrot.slane %v1103_v1, %v7374_v24 }
 0x134   : > { %v7758_v52 = vpop.permute.xlu0 %1067  ;;  %1613 = vrot.lane.b32.xlu1 %v6582_v17, %s7015_s13  ;;  %v6827_v17 = vcombine.high %v7626_v34, %v7626_v34  ;;  %v847_v23 = vcombine.low %v7804_v47, %v7790_v32  ;;  %v1182_v1 = vrot.slane %v1097_v45, %v7374_v24 }
 0x135   : > { %v1085_v40 = vpack.i.b16 %v7745_v49, %v7758_v52 }
 0x136   : > { %1653 = vrot.lane.b32.xlu0 %v6850_v48, %s7017_s15  ;;  %v7774_v30 = vpop.permute.xlu1 %2549  ;;  %v1191_v2 = vcombine.low %v1182_v1, %v1190_v43 }
 0x137   : > { %v2565_v34 = vshrl.u32 %v7774_v30, 16 }
 0x138   : > { %v7776_v35 = vpop.permute.xlu0 %1075  ;;  %2453 = vrot.lane.b32.xlu1 %v6868_v37, %s7012_s10 }
 0x139   : > { %v1091_v19 = vpack.i.b16 %v7756_v63, %v7776_v35 }
 0x13a   : > { %2493 = vrot.lane.b32.xlu0 %v6873_v26, %s7013_s11  ;;  %v7794_v44 = vpop.permute.xlu1 %2557  ;;  %v906_v26 = vrot.slane %v821_v18, %v7374_v24  ;;  %v6851_v18 = vcombine.high %v7731_v55, %v7731_v55 }
 0x13b   : > { %v2571_v55 = vshrl.u32 %v7794_v44, 16 }
 0x13c   : > { %v7796_v48 = vpop.permute.xlu0 %2545  ;;  %704 = vrot.lane.b32.xlu1 %v6822_v41, %s7017_s15  ;;  %v915_v29 = vcombine.low %v906_v26, %v914_v5  ;;  %v916_v9 = vcombine.high %v906_v26, %v914_v5 }
 0x13d   : > { %v2564_v37 = vshrl.u32 %v7796_v48, 16 }
 0x13e   : > { %744 = vrot.lane.b32.xlu0 %v6827_v17, %s7018_s16  ;;  %v7821_v17 = vpop.permute.xlu1 %2551  ;;  %v7841_v25 = vrot.slane %v915_v29, %v7578_v14  ;;  %v1114_v29 = vrot.slane %v1085_v40, %v7374_v24  ;;  %v7867_v26 = vrot.slane %v916_v9, %v7578_v14  ;;  %v828_v9 = vshrl.u32 %v7704_v0, 16 }
 0x13f   : > { %v2566_v12 = vpack.i.b16 %v2565_v34, %v2564_v37  ;;  %v1122_v37 = vrot.slane %v1091_v19, %v7374_v24 }
 0x140   : > { %v7823_v41 = vpop.permute.xlu0 %2553  ;;  %1658 = vrot.lane.b32.xlu1 %v6851_v18, %s7018_s16  ;;  %10551 = vst [vmem:[#allocation20_spill] sm:$0xff] %v7841_v25  ;;  %v7851_v18 = vrot.slane %v847_v23, %v7578_v14  ;;  %v6832_v5 = vcombine.high %v7841_v25, %v7841_v25  ;;  %v6560_v19 = vcombine.low %v7867_v26, %v7867_v26 }
 0x141   : > { %v2570_v11 = vshrl.u32 %v7823_v41, 16  ;;  %v1123_v23 = vcombine.low %v1114_v29, %v1122_v37  ;;  %v1124_v31 = vcombine.high %v1114_v29, %v1122_v37  ;;  %v823_v37 = vshrl.u32 %v7669_v20, 16 }
 0x142   : > { %1618 = vrot.lane.b32.xlu0 %v6846_v53, %s7017_s15  ;;  %v7844_v34 = vpop.permute.xlu1 %2559  ;;  %v6634_v53 = vcombine.low %v7829_v33, %v7829_v33  ;;  %10553 = vst [vmem:[#allocation22_spill] sm:$0xff] %v7851_v18  ;;  %v6828_v40 = vcombine.high %v7851_v18, %v7851_v18  ;;  %v811_v29 = vshrl.u32 %v7702_v58, 16  ;;  %v1098_v58 = vshrl.u32 %v7737_v10, 16 }
 0x143   : > { %v2572_v38 = vpack.i.b16 %v2571_v55, %v2570_v11  ;;  %v7854_v11 = vrot.slane %v2566_v12, %v7374_v24  ;;  %v1192_v12 = vcombine.high %v1182_v1, %v1190_v43  ;;  %v816_v43 = vshrl.u32 %v7725_v8, 16 }
 0x144   : > { %v7846_v45 = vpop.permute.xlu0 %2821  ;;  %2498 = vrot.lane.b32.xlu1 %v6634_v53, %s7014_s12  ;;  %v829_v53 = vshrl.u32 %v7691_v57, 16  ;;  %v848_v1 = vcombine.high %v7804_v47, %v7790_v32  ;;  %v7895_v0 = vrot.slane %v1123_v23, %v7578_v14  ;;  %v822_v8 = vshrl.u32 %v7693_v36, 16 }
 0x145   : > { %10552 = vst [vmem:[#allocation21_spill] sm:$0xff] %v7846_v45  ;;  %v7857_v4 = vrot.slane %v2572_v38, %v7374_v24  ;;  %v817_v32 = vshrl.u32 %v7714_v54, 16  ;;  %v810_v47 = vshrl.u32 %v7716_v21, 16  ;;  %v1104_v23 = vshrl.u32 %v7747_v56, 16 }
 0x146   : > { %2458 = vrot.lane.b32.xlu0 %v6869_v13, %s7013_s11  ;;  %v7869_v55 = vpop.permute.xlu1 %2823  ;;  %v7876_v13 = vrot.slane %v1191_v2, %v7578_v14  ;;  %10558 = vst [vmem:[#allocation27_spill] sm:$0xff] %v7895_v0  ;;  %v6836_v20 = vcombine.high %v7895_v0, %v7895_v0  ;;  %v1138_v21 = vrot.slane %v1124_v31, %v7578_v14  ;;  %v1092_v31 = vshrl.u32 %v7776_v35, 16 }
 0x147   : > { %10554 = vst [vmem:[#allocation23_spill] sm:$0xff] %v7869_v55  ;;  %v818_v51 = vpack.i.b16 %v817_v32, %v816_v43 }
 0x148   : > { %v7871_v38 = vpop.permute.xlu0 %2825  ;;  %10556 = vst [vmem:[#allocation25_spill] sm:$0xff] %v7876_v13  ;;  %975 = vrot.lane.b32.xlu1 %v6828_v40, %s7012_s10  ;;  %v6840_v57 = vcombine.high %v7876_v13, %v7876_v13  ;;  %v830_v40 = vpack.i.b16 %v829_v53, %v828_v9  ;;  %v1105_v53 = vshrl.u32 %v7735_v3, 16  ;;  %v1099_v9 = vshrl.u32 %v7723_v7, 16 }
 0x149   : > { %10555 = vst [vmem:[#allocation24_spill] sm:$0xff] %v7871_v38  ;;  %v7922_v43 = vrot.slane %v818_v51, %v7374_v24  ;;  %v6567_v3 = vcombine.low %v1138_v21, %v1138_v21  ;;  %v1093_v7 = vshrl.u32 %v7756_v63, 16  ;;  %v1086_v51 = vshrl.u32 %v7758_v52, 16 }
 0x14a   : > { %1010 = vrot.lane.b32.xlu0 %v6832_v5, %s7012_s10  ;;  %v7887_v50 = vpop.permute.xlu1 %2827  ;;  %v1206_v5 = vrot.slane %v1192_v12, %v7578_v14  ;;  %v862_v12 = vrot.slane %v848_v1, %v7578_v14  ;;  %v7918_v56 = vrot.slane %v830_v40, %v7374_v24  ;;  %v1106_v1 = vpack.i.b16 %v1105_v53, %v1104_v23 }
 0x14b   : > { %v1094_v52 = vpack.i.b16 %v1093_v7, %v1092_v31 }
 0x14c   : > { %v7889_v2 = vpop.permute.xlu0 %2829  ;;  %1020 = vrot.lane.b32.xlu1 %v6560_v19, %s7014_s12  ;;  %v6574_v54 = vcombine.low %v1206_v5, %v1206_v5  ;;  %v824_v19 = vpack.i.b16 %v823_v37, %v822_v8  ;;  %v6553_v32 = vcombine.low %v862_v12, %v862_v12  ;;  %v1224_v63 = vrot.slane %v1106_v1, %v7374_v24 }
 0x14d   : > { %10557 = vst [vmem:[#allocation26_spill] sm:$0xff] %v7889_v2  ;;  %v6842_v53 = vcombine.high %v1206_v5, %v1206_v5  ;;  %v1156_v5 = vrot.slane %v1094_v52, %v7374_v24 }
 0x14e   : > { %1286 = vrot.lane.b32.xlu0 %v6840_v57, %s7012_s10  ;;  %v7906_v22 = vpop.permute.xlu1 %2831  ;;  %v812_v57 = vpack.i.b16 %v811_v29, %v810_v47  ;;  %v7930_v47 = vrot.slane %v824_v19, %v7374_v24  ;;  %v1100_v29 = vpack.i.b16 %v1099_v9, %v1098_v58  ;;  %v2577_v19 = vshrl.u32 %v7821_v17, 16 }
 0x150   : > { %v7908_v36 = vpop.permute.xlu0 %2833  ;;  %1296 = vrot.lane.b32.xlu1 %v6574_v54, %s7014_s12  ;;  %v7933_v37 = vrot.slane %v812_v57, %v7374_v24  ;;  %v949_v35 = vcombine.low %v7930_v47, %v7918_v56  ;;  %v1087_v54 = vshrl.u32 %v7745_v49, 16  ;;  %v1216_v9 = vrot.slane %v1100_v29, %v7374_v24 }
 0x151   : > { %10559 = vst [vmem:[#allocation28_spill] sm:$0xff] %v7908_v36 }
 0x152   : > { %1251 = vrot.lane.b32.xlu0 %v6836_v20, %s7012_s10  ;;  %v7925_v8 = vpop.permute.xlu1 %2835  ;;  %v881_v23 = vcombine.low %v7933_v37, %v7922_v43  ;;  %v6834_v20 = vcombine.high %v7867_v26, %v7867_v26  ;;  %v6830_v26 = vcombine.high %v862_v12, %v862_v12  ;;  %v957_v31 = vrot.slane %v949_v35, %v7578_v14 }
 0x153   : > { %v1225_v7 = vcombine.low %v1216_v9, %v1224_v63 }
 0x154   : > { %v7927_v10 = vpop.permute.xlu0 %2547  ;;  %1261 = vrot.lane.b32.xlu1 %v6567_v3, %s7014_s12  ;;  %v1088_v3 = vpack.i.b16 %v1087_v54, %v1086_v51  ;;  %v889_v1 = vrot.slane %v881_v23, %v7578_v14  ;;  %v6557_v35 = vcombine.low %v957_v31, %v957_v31 }
 0x155   : > { %v2576_v40 = vshrl.u32 %v7927_v10, 16 }
 0x156   : > { %985 = vrot.lane.b32.xlu0 %v6553_v32, %s7014_s12  ;;  %v7949_v57 = vpop.permute.xlu1 %1972  ;;  %v2583_v32 = vshrl.u32 %v7844_v34, 16  ;;  %v1148_v54 = vrot.slane %v1088_v3, %v7374_v24  ;;  %v6829_v18 = vcombine.high %v889_v1, %v889_v1 }
 0x157   : > { %v2578_v39 = vpack.i.b16 %v2577_v19, %v2576_v40  ;;  %v6838_v40 = vcombine.high %v1138_v21, %v1138_v21 }
 0x158   : > { %v7951_v58 = vpop.permute.xlu0 %2555  ;;  %1306 = vrot.lane.b32.xlu1 %v6842_v53, %s7017_s15  ;;  %v1157_v23 = vcombine.low %v1148_v54, %v1156_v5  ;;  %v6550_v53 = vcombine.low %v889_v1, %v889_v1 }
 0x159   : > { %v2582_v49 = vshrl.u32 %v7951_v58, 16  ;;  %v7967_v19 = vrot.slane %v2578_v39, %v7374_v24  ;;  %v1233_v39 = vrot.slane %v1225_v7, %v7578_v14  ;;  %v1226_v7 = vcombine.high %v1216_v9, %v1224_v63 }
 0x15a   : > { %1030 = vrot.lane.b32.xlu0 %v6834_v20, %s7017_s15  ;;  %v7961_v29 = vpop.permute.xlu1 %1980  ;;  %v2581_v9 = vpack.i.b16 %v7844_v34, %v7951_v58 }
 0x15b   : > { %v2584_v0 = vpack.i.b16 %v2583_v32, %v2582_v49  ;;  %v6571_v32 = vcombine.low %v1233_v39, %v1233_v39  ;;  %v6833_v49 = vcombine.high %v957_v31, %v957_v31  ;;  %v882_v31 = vcombine.high %v7933_v37, %v7922_v43 }
 0x15c   : > { %v7963_v51 = vpop.permute.xlu0 %1968  ;;  %1271 = vrot.lane.b32.xlu1 %v6838_v40, %s7017_s15  ;;  %v950_v40 = vcombine.high %v7930_v47, %v7918_v56  ;;  %v6841_v56 = vcombine.high %v1233_v39, %v1233_v39  ;;  %v1240_v63 = vrot.slane %v1226_v7, %v7578_v14  ;;  %v2575_v43 = vpack.i.b16 %v7821_v17, %v7927_v10 }
 0x15d   : > { %v7970_v12 = vrot.slane %v2584_v0, %v7374_v24  ;;  %v2635_v17 = vcombine.low %v7854_v11, %v7857_v4 }
 0x15e   : > { %995 = vrot.lane.b32.xlu0 %v6830_v26, %s7017_s15  ;;  %v7976_v52 = vpop.permute.xlu1 %1970  ;;  %v1165_v26 = vrot.slane %v1157_v23, %v7578_v14  ;;  %v964_v23 = vrot.slane %v950_v40, %v7578_v14  ;;  %v8026_v10 = vrot.slane %v2575_v43, %v7374_v24 }
 0x15f   : > { %v8047_v59 = vrot.slane %v2635_v17, %v7578_v14  ;;  %v2703_v25 = vcombine.low %v7967_v19, %v7970_v12 }
 0x160   : > { %v7978_v21 = vpop.permute.xlu0 %1976  ;;  %970 = vrot.lane.b32.xlu1 %v6550_v53, %s7016_s14  ;;  %v6837_v47 = vcombine.high %v1165_v26, %v1165_v26  ;;  %v6835_v61 = vcombine.high %v964_v23, %v964_v23 }
 0x161   : > { %v2002_v34 = vpack.i.b16 %v7961_v29, %v7978_v21 }
 0x162   : > { %1005 = vrot.lane.b32.xlu0 %v6557_v35, %s7016_s14  ;;  %v7983_v0 = vpop.permute.xlu1 %1978  ;;  %v6564_v35 = vcombine.low %v1165_v26, %v1165_v26  ;;  %v8017_v26 = vrot.slane %v2581_v9, %v7374_v24 }
 0x164   : > { %v7985_v3 = vpop.permute.xlu0 %1966  ;;  %1281 = vrot.lane.b32.xlu1 %v6571_v32, %s7016_s14  ;;  %v1158_v32 = vcombine.high %v1148_v54, %v1156_v5  ;;  %v6575_v5 = vcombine.low %v1240_v63, %v1240_v63  ;;  %v896_v54 = vrot.slane %v882_v31, %v7578_v14  ;;  %v1996_v31 = vpack.i.b16 %v7949_v57, %v7963_v51 }
 0x166   : > { %1015 = vrot.lane.b32.xlu0 %v6833_v49, %s7013_s11  ;;  %v7992_v20 = vpop.permute.xlu1 %1696  ;;  %v1172_v39 = vrot.slane %v1158_v32, %v7578_v14  ;;  %v6554_v7 = vcombine.low %v896_v54, %v896_v54  ;;  %v2669_v32 = vcombine.low %v8026_v10, %v8017_v26  ;;  %v6831_v13 = vcombine.high %v896_v54, %v896_v54 }
 0x168   : > { %v1975_v53 = vpop.permute.xlu0 %1974  ;;  %1246 = vrot.lane.b32.xlu1 %v6564_v35, %s7016_s14  ;;  %v6568_v35 = vcombine.low %v1172_v39, %v1172_v39  ;;  %v8063_v54 = vrot.slane %v2669_v32, %v7578_v14  ;;  %v6843_v32 = vcombine.high %v1240_v63, %v1240_v63  ;;  %v8091_v63 = vrot.slane %v2703_v25, %v7578_v14 }
 0x169   : > { %v1991_v9 = vshrl.u32 %v1975_v53, 16 }
 0x16a   : > { %980 = vrot.lane.b32.xlu0 %v6829_v18, %s7013_s11  ;;  %v7999_v49 = vpop.permute.xlu1 %1704  ;;  %v6561_v18 = vcombine.low %v964_v23, %v964_v23  ;;  %10561 = vst [vmem:[#allocation30_spill] sm:$0xff] %v8063_v54 }
 0x16c   : > { %v8001_v16 = vpop.permute.xlu0 %1692  ;;  %1291 = vrot.lane.b32.xlu1 %v6841_v56, %s7013_s11  ;;  %v8039_v56 = vrot.slane %v2002_v34, %v7374_v24  ;;  %v1992_v34 = vshrl.u32 %v7983_v0, 16 }
 0x16d   : > { %v1720_v23 = vpack.i.b16 %v7992_v20, %v8001_v16 }
 0x16e   : > { %1256 = vrot.lane.b32.xlu0 %v6837_v47, %s7013_s11  ;;  %v8010_v37 = vpop.permute.xlu1 %1694  ;;  %v1990_v47 = vpack.i.b16 %v7983_v0, %v1975_v53  ;;  %v1985_v53 = vshrl.u32 %v7985_v3, 16  ;;  %v1986_v0 = vshrl.u32 %v7976_v52, 16 }
 0x170   : > { %v8012_v1 = vpop.permute.xlu0 %1700  ;;  %1025 = vrot.lane.b32.xlu1 %v6561_v18, %s7015_s13  ;;  %v1987_v38 = vpack.i.b16 %v1986_v0, %v1985_v53  ;;  %v6880_v53 = vcombine.high %v8063_v54, %v8063_v54  ;;  %v1710_v0 = vshrl.u32 %v8010_v37, 16 }
 0x171   : > { %v1726_v18 = vpack.i.b16 %v7999_v49, %v8012_v1 }
 0x172   : > { %1301 = vrot.lane.b32.xlu0 %v6575_v5, %s7015_s13  ;;  %v8028_v58 = vpop.permute.xlu1 %1702  ;;  %v8113_v55 = vrot.slane %v1987_v38, %v7374_v24 }
 0x174   : > { %v8030_v40 = vpop.permute.xlu0 %1690  ;;  %990 = vrot.lane.b32.xlu1 %v6554_v7, %s7015_s13  ;;  %v8050_v7 = vrot.slane %v1996_v31, %v7374_v24  ;;  %v1993_v31 = vpack.i.b16 %v1992_v34, %v1991_v9  ;;  %v6638_v9 = vcombine.low %v8047_v59, %v8047_v59 }
 0x175   : > { %v1709_v34 = vshrl.u32 %v8030_v40, 16  ;;  %v1708_v54 = vpack.i.b16 %v8010_v37, %v8030_v40  ;;  %v1727_v37 = vshrl.u32 %v8012_v1, 16  ;;  %v1728_v1 = vshrl.u32 %v7999_v49, 16 }
 0x176   : > { %1266 = vrot.lane.b32.xlu0 %v6568_v35, %s7015_s13  ;;  %v8044_v43 = vpop.permute.xlu1 %719  ;;  %v1984_v35 = vpack.i.b16 %v7976_v52, %v7985_v3  ;;  %v2090_v17 = vcombine.low %v8050_v7, %v8039_v56  ;;  %v8069_v3 = vrot.slane %v1990_v47, %v7374_v24  ;;  %v8084_v47 = vrot.slane %v1720_v23, %v7374_v24 }
 0x177   : > { %10560 = vst [vmem:[#allocation29_spill] sm:$0xff] %v8044_v43  ;;  %v8072_v43 = vrot.slane %v1726_v18, %v7374_v24  ;;  %v1716_v18 = vshrl.u32 %v8028_v58, 16  ;;  %v1711_v36 = vpack.i.b16 %v1710_v0, %v1709_v34  ;;  %v1997_v34 = vshrl.u32 %v7963_v51, 16 }
 0x178   : > { %v1699_v5 = vpop.permute.xlu0 %1698  ;;  %1035 = vrot.lane.b32.xlu1 %v6835_v61, %s7018_s16  ;;  %v8079_v52 = vrot.slane %v1984_v35, %v7374_v24  ;;  %v8096_v35 = vrot.slane %v1993_v31, %v7374_v24  ;;  %v8101_v23 = vrot.slane %v2090_v17, %v7578_v14  ;;  %v2003_v31 = vshrl.u32 %v7978_v21, 16 }
 0x179   : > { %v1715_v45 = vshrl.u32 %v1699_v5, 16  ;;  %v1714_v25 = vpack.i.b16 %v8028_v58, %v1699_v5  ;;  %v2004_v17 = vshrl.u32 %v7961_v29, 16  ;;  %v2091_v58 = vcombine.high %v8050_v7, %v8039_v56 }
 0x17a   : > { %1000 = vrot.lane.b32.xlu0 %v6831_v13, %s7018_s16  ;;  %v8074_v2 = vpop.permute.xlu1 %724  ;;  %v6839_v13 = vcombine.high %v1172_v39, %v1172_v39  ;;  %v2022_v39 = vcombine.low %v8079_v52, %v8069_v3  ;;  %10564 = vst [vmem:[#allocation33_spill] sm:$0xff] %v8101_v23  ;;  %v2056_v38 = vcombine.low %v8113_v55, %v8096_v35 }
 0x17b   : > { %10562 = vst [vmem:[#allocation31_spill] sm:$0xff] %v8074_v2  ;;  %v6864_v29 = vcombine.high %v8101_v23, %v8101_v23  ;;  %v8133_v40 = vrot.slane %v1714_v25, %v7374_v24  ;;  %v8150_v0 = vrot.slane %v1708_v54, %v7374_v24  ;;  %v8153_v25 = vrot.slane %v1711_v36, %v7374_v24  ;;  %v10590_v23 = vld [vmem:[#allocation24_spill] sm:$0xff] }
 0x17c   : > { %v8076_v61 = vpop.permute.xlu0 %684  ;;  %1276 = vrot.lane.b32.xlu1 %v6839_v13, %s7018_s16  ;;  %v1814_v13 = vcombine.low %v8084_v47, %v8072_v43  ;;  %v8129_v21 = vrot.slane %v2022_v39, %v7578_v14  ;;  %v2005_v39 = vpack.i.b16 %v2004_v17, %v2003_v31  ;;  %v2064_v51 = vrot.slane %v2056_v38, %v7578_v14 }
 0x17d   : > { %10563 = vst [vmem:[#allocation32_spill] sm:$0xff] %v8076_v61  ;;  %v8162_v49 = vrot.slane %v2091_v58, %v7578_v14  ;;  %v1746_v54 = vcombine.low %v8150_v0, %v8133_v40  ;;  %v2023_v38 = vcombine.high %v8079_v52, %v8069_v3 }
 0x17e   : > { %1311 = vrot.lane.b32.xlu0 %v6843_v32, %s7018_s16  ;;  %v1717_v32 = vpack.i.b16 %v1716_v18, %v1715_v45  ;;  %v8107_v61 = vpop.permute.xlu1 %689  ;;  %v6645_v45 = vcombine.low %v8091_v63, %v8091_v63  ;;  %10565 = vst [vmem:[#allocation34_spill] sm:$0xff] %v8129_v21  ;;  %v8143_v7 = vrot.slane %v1814_v13, %v7578_v14  ;;  %v1998_v18 = vshrl.u32 %v7949_v57, 16 }
 0x17f   : > { %v1722_v13 = vshrl.u32 %v7992_v20, 16  ;;  %v6860_v57 = vcombine.high %v8129_v21, %v8129_v21  ;;  %v2123_v58 = vrot.slane %v2005_v39, %v7374_v24 }
 0x180   : > { %v8109_v2 = vpop.permute.xlu0 %729  ;;  %2724 = vrot.lane.b32.xlu1 %v6638_v9, %s7016_s14  ;;  %v8136_v5 = vrot.slane %v1717_v32, %v7374_v24  ;;  %10567 = vst [vmem:[#allocation36_spill] sm:$0xff] %v8143_v7  ;;  %v6856_v20 = vcombine.high %v8143_v7, %v8143_v7  ;;  %v1999_v17 = vpack.i.b16 %v1998_v18, %v1997_v34 }
 0x181   : > { %v6606_v18 = vcombine.low %v2064_v51, %v2064_v51 }
 0x182   : > { %2764 = vrot.lane.b32.xlu0 %v6880_v53, %s7012_s10  ;;  %v8138_v9 = vpop.permute.xlu1 %734  ;;  %v1721_v53 = vshrl.u32 %v8001_v16, 16  ;;  %v1729_v16 = vpack.i.b16 %v1728_v1, %v1727_v37  ;;  %v1780_v36 = vcombine.low %v8153_v25, %v8136_v5  ;;  %v2115_v39 = vrot.slane %v1999_v17, %v7374_v24 }
 0x183   : > { %v2569_v17 = vpack.i.b16 %v7794_v44, %v7823_v41 }
 0x184   : > { %v8140_v56 = vpop.permute.xlu0 %694  ;;  %2759 = vrot.lane.b32.xlu1 %v6645_v45, %s7016_s14  ;;  %v1723_v45 = vpack.i.b16 %v1722_v13, %v1721_v53  ;;  %v8182_v37 = vrot.slane %v1729_v16, %v7374_v24  ;;  %v8189_v34 = vrot.slane %v1780_v36, %v7578_v14  ;;  %v8192_v53 = vrot.slane %v1746_v54, %v7578_v14 }
 0x185   : > { %10566 = vst [vmem:[#allocation35_spill] sm:$0xff] %v8140_v56  ;;  %v2124_v52 = vcombine.low %v2115_v39, %v2123_v58  ;;  %v8230_v44 = vrot.slane %v2569_v17, %v7374_v24  ;;  %v1815_v17 = vcombine.high %v8084_v47, %v8072_v43  ;;  %v6847_v43 = vcombine.high %v7752_v6, %v7752_v6 }
 0x186   : > { %2185 = vrot.lane.b32.xlu0 %v6864_v29, %s7012_s10  ;;  %v8168_v32 = vpop.permute.xlu1 %2448  ;;  %v6616_v29 = vcombine.low %v8162_v49, %v8162_v49  ;;  %10570 = vst [vmem:[#allocation39_spill] sm:$0xff] %v8192_v53  ;;  %v8196_v3 = vrot.slane %v1723_v45, %v7374_v24  ;;  %v6592_v54 = vcombine.low %v8189_v34, %v8189_v34 }
 0x187   : > { %10568 = vst [vmem:[#allocation37_spill] sm:$0xff] %v8168_v32  ;;  %v6852_v36 = vcombine.high %v8192_v53, %v8192_v53  ;;  %v2125_v45 = vcombine.high %v2115_v39, %v2123_v58  ;;  %v6861_v32 = vcombine.high %v2064_v51, %v2064_v51 }
 0x188   : > { %v8170_v31 = vpop.permute.xlu0 %714  ;;  %2150 = vrot.lane.b32.xlu1 %v6860_v57, %s7012_s10  ;;  %v1848_v13 = vcombine.low %v8196_v3, %v8182_v37 }
 0x18a   : > { %1909 = vrot.lane.b32.xlu0 %v6856_v20, %s7012_s10  ;;  %v8184_v1 = vpop.permute.xlu1 %2483  ;;  %v8211_v20 = vrot.slane %v2023_v38, %v7578_v14  ;;  %v1856_v53 = vrot.slane %v1848_v13, %v7578_v14  ;;  %v2132_v38 = vrot.slane %v2124_v52, %v7578_v14  ;;  %v8237_v13 = vrot.slane %v2125_v45, %v7578_v14 }
 0x18b   : > { %10569 = vst [vmem:[#allocation38_spill] sm:$0xff] %v8184_v1 }
 0x18c   : > { %v8186_v21 = vpop.permute.xlu0 %679  ;;  %2145 = vrot.lane.b32.xlu1 %v6606_v18, %s7016_s14  ;;  %v6609_v1 = vcombine.low %v8211_v20, %v8211_v20  ;;  %v6857_v58 = vcombine.high %v1856_v53, %v1856_v53  ;;  %v6613_v39 = vcombine.low %v2132_v38, %v2132_v38 }
 0x18e   : > { %2195 = vrot.lane.b32.xlu0 %v6616_v29, %s7014_s12  ;;  %v8202_v57 = vpop.permute.xlu1 %1633 }
 0x190   : > { %v8204_v16 = vpop.permute.xlu0 %699  ;;  %1869 = vrot.lane.b32.xlu1 %v6592_v54, %s7016_s14  ;;  %v2563_v54 = vpack.i.b16 %v7774_v30, %v7796_v48 }
 0x191   : > { %10571 = vst [vmem:[#allocation40_spill] sm:$0xff] %v8204_v16  ;;  %v10591_v16 = vld [vmem:[#allocation26_spill] sm:$0xff] }
 0x192   : > { %1874 = vrot.lane.b32.xlu0 %v6852_v36, %s7012_s10  ;;  %v8217_v29 = vpop.permute.xlu1 %1628  ;;  %v8240_v52 = vrot.slane %v2563_v54, %v7374_v24  ;;  %v6599_v36 = vcombine.low %v1856_v53, %v1856_v53 }
 0x194   : > { %v8219_v18 = vpop.permute.xlu0 %2488  ;;  %2155 = vrot.lane.b32.xlu1 %v6861_v32, %s7013_s11  ;;  %v2601_v30 = vcombine.low %v8240_v52, %v8230_v44 }
 0x195   : > { %10572 = vst [vmem:[#allocation41_spill] sm:$0xff] %v8219_v18 }
 0x196   : > { %2160 = vrot.lane.b32.xlu0 %v6609_v1, %s7014_s12  ;;  %v8232_v41 = vpop.permute.xlu1 %1638  ;;  %v6617_v1 = vcombine.low %v8237_v13, %v8237_v13  ;;  %v8263_v18 = vrot.slane %v2601_v30, %v7578_v14 }
 0x198   : > { %v8234_v51 = vpop.permute.xlu0 %1598  ;;  %1914 = vrot.lane.b32.xlu1 %v6857_v58, %s7013_s11  ;;  %v6881_v58 = vcombine.high %v8091_v63, %v8091_v63  ;;  %10573 = vst [vmem:[#allocation42_spill] sm:$0xff] %v8263_v18  ;;  %v6876_v47 = vcombine.high %v8263_v18, %v8263_v18  ;;  %v8276_v63 = vrot.slane %v1815_v17, %v7578_v14 }
 0x199   : > { %v10575_v17 = vcombine.high %v7426_v62, %v7421_v60  ;;  %v10578_v60 = vcombine.high %v7404_v42, %v7409_v46  ;;  %v1747_v42 = vcombine.high %v8150_v0, %v8133_v40  ;;  %v6877_v0 = vcombine.high %v8047_v59, %v8047_v59 }
 0x19a   : > { %2180 = vrot.lane.b32.xlu0 %v6613_v39, %s7016_s14  ;;  %v8246_v48 = vpop.permute.xlu1 %1603  ;;  %v6865_v39 = vcombine.high %v2132_v38, %v2132_v38  ;;  %v2057_v38 = vcombine.high %v8113_v55, %v8096_v35  ;;  %v6602_v6 = vcombine.low %v8276_v63, %v8276_v63  ;;  %v2670_v55 = vcombine.high %v8026_v10, %v8017_v26 }
 0x19b   : > { %v2340_v62 = vrot.slane %v10578_v60, %v7578_v14  ;;  %v1849_v26 = vcombine.high %v8196_v3, %v8182_v37  ;;  %v1761_v60 = vrot.slane %v1747_v42, %v7578_v14  ;;  %v6874_v59 = vcombine.high %v7829_v33, %v7829_v33 }
 0x19c   : > { %v8248_v32 = vpop.permute.xlu0 %1643  ;;  %2200 = vrot.lane.b32.xlu1 %v6617_v1, %s7015_s13  ;;  %v2602_v42 = vcombine.high %v8240_v52, %v8230_v44  ;;  %v10584_v33 = vcombine.high %v7380_v27, %v7383_v28  ;;  %v1781_v44 = vcombine.high %v8153_v25, %v8136_v5  ;;  %v6858_v5 = vcombine.high %v8276_v63, %v8276_v63 }
 0x19d   : > { %v10585_v63 = vcombine.high %v7854_v11, %v7857_v4  ;;  %v10588_v11 = vld [vmem:[#allocation28_spill] sm:$0xff]  ;;  %v6854_v7 = vcombine.high %v1761_v60, %v1761_v60 }
 0x19e   : > { %1904 = vrot.lane.b32.xlu0 %v6599_v36, %s7016_s14  ;;  %v8256_v45 = vpop.permute.xlu1 %1648  ;;  %v2847_v4 = vshrl.u32 %v10588_v11, 16 }
 0x1a0   : > { %v8258_v54 = vpop.permute.xlu0 %1608  ;;  %2769 = vrot.lane.b32.xlu1 %v6881_v58, %s7013_s11  ;;  %v6823_v58 = vcombine.high %v7674_v15, %v7674_v15  ;;  %v6866_v15 = vcombine.high %v8162_v49, %v8162_v49 }
 0x1a2   : > { %2190 = vrot.lane.b32.xlu0 %v6865_v39, %s7013_s11  ;;  %v8267_v53 = vpop.permute.xlu1 %739  ;;  %v8296_v39 = vrot.slane %v10575_v17, %v7578_v14  ;;  %v6627_v17 = vcombine.low %v2340_v62, %v2340_v62 }
 0x1a4   : > { %v8269_v1 = vpop.permute.xlu0 %1593  ;;  %1623 = vrot.lane.b32.xlu1 %v6847_v43, %s7018_s16 }
 0x1a6   : > { %2729 = vrot.lane.b32.xlu0 %v6876_v47, %s7012_s10  ;;  %v8282_v30 = vpop.permute.xlu1 %1613  ;;  %v6853_v47 = vcombine.high %v8189_v34, %v8189_v34  ;;  %v6635_v34 = vcombine.low %v8296_v39, %v8296_v39 }
 0x1a7   : > { %10574 = vst [vmem:[#allocation43_spill] sm:$0xff] %v8282_v30 }
 0x1a8   : > { %v8284_v36 = vpop.permute.xlu0 %1653  ;;  %1919 = vrot.lane.b32.xlu1 %v6602_v6, %s7014_s12  ;;  %v8309_v6 = vrot.slane %v2057_v38, %v7578_v14 }
 0x1aa   : > { %709 = vrot.lane.b32.xlu0 %v6823_v58, %s7018_s16  ;;  %v8300_v35 = vpop.permute.xlu1 %2453  ;;  %v6610_v38 = vcombine.low %v8309_v6, %v8309_v6  ;;  %v8328_v58 = vrot.slane %v2670_v55, %v7578_v14 }
 0x1ab   : > { %10576 = vst [vmem:[#allocation44_spill] sm:$0xff] %v8300_v35 }
 0x1ac   : > { %v8302_v43 = vpop.permute.xlu0 %2493  ;;  %2205 = vrot.lane.b32.xlu1 %v6866_v15, %s7017_s15  ;;  %v6648_v3 = vcombine.low %v8328_v58, %v8328_v58  ;;  %v8341_v15 = vrot.slane %v1849_v26, %v7578_v14  ;;  %v6882_v56 = vcombine.high %v8328_v58, %v8328_v58 }
 0x1ad   : > { %10577 = vst [vmem:[#allocation45_spill] sm:$0xff] %v8302_v43 }
 0x1ae   : > { %1879 = vrot.lane.b32.xlu0 %v6853_v47, %s7013_s11  ;;  %v8319_v10 = vpop.permute.xlu1 %704  ;;  %v6603_v40 = vcombine.low %v8341_v15, %v8341_v15 }
 0x1af   : > { %10579 = vst [vmem:[#allocation46_spill] sm:$0xff] %v8319_v10  ;;  %v2841_v10 = vshrl.u32 %v10590_v23, 16 }
 0x1b0   : > { %v8321_v49 = vpop.permute.xlu0 %744  ;;  %2503 = vrot.lane.b32.xlu1 %v6635_v34, %s7015_s13 }
 0x1b2   : > { %2165 = vrot.lane.b32.xlu0 %v6610_v38, %s7015_s13  ;;  %v8334_v46 = vpop.permute.xlu1 %1658  ;;  %v6867_v38 = vcombine.high %v8237_v13, %v8237_v13  ;;  %v10583_v13 = vcombine.high %v7967_v19, %v7970_v12 }
 0x1b4   : > { %v8336_v37 = vpop.permute.xlu0 %1618  ;;  %2774 = vrot.lane.b32.xlu1 %v6648_v3, %s7014_s12  ;;  %v6595_v3 = vcombine.low %v1761_v60, %v1761_v60 }
 0x1b5   : > { %10580 = vst [vmem:[#allocation47_spill] sm:$0xff] %v8336_v37  ;;  %v2846_v37 = vshrl.u32 %v10591_v16, 16 }
 0x1b6   : > { %2463 = vrot.lane.b32.xlu0 %v6627_v17, %s7014_s12  ;;  %v8345_v55 = vpop.permute.xlu1 %2498 }
 0x1b7   : > { %10581 = vst [vmem:[#allocation48_spill] sm:$0xff] %v8345_v55  ;;  %v2858_v55 = vshrl.u32 %v7906_v22, 16  ;;  %v2848_v30 = vpack.i.b16 %v2847_v4, %v2846_v37 }
 0x1b8   : > { %v8347_v47 = vpop.permute.xlu0 %2458  ;;  %1924 = vrot.lane.b32.xlu1 %v6603_v40, %s7015_s13 }
 0x1b9   : > { %10582 = vst [vmem:[#allocation49_spill] sm:$0xff] %v8347_v47  ;;  %v2853_v47 = vshrl.u32 %v7887_v50, 16 }
 0x1ba   : > { %2734 = vrot.lane.b32.xlu0 %v6877_v0, %s7013_s11  ;;  %v8356_v26 = vpop.permute.xlu1 %975  ;;  %v6862_v0 = vcombine.high %v8211_v20, %v8211_v20 }
 0x1bc   : > { %v8358_v34 = vpop.permute.xlu0 %1010  ;;  %2210 = vrot.lane.b32.xlu1 %v6867_v38, %s7018_s16  ;;  %v8378_v38 = vrot.slane %v10583_v13, %v7578_v14  ;;  %v8395_v13 = vrot.slane %v2602_v42, %v7578_v14 }
 0x1be   : > { %1884 = vrot.lane.b32.xlu0 %v6595_v3, %s7014_s12  ;;  %v8368_v17 = vpop.permute.xlu1 %1020  ;;  %v2374_v3 = vrot.slane %v10584_v33, %v7578_v14  ;;  %v6649_v19 = vcombine.low %v8378_v38, %v8378_v38  ;;  %v6641_v25 = vcombine.low %v8395_v13, %v8395_v13  ;;  %v6870_v33 = vcombine.high %v2340_v62, %v2340_v62 }
 0x1bf   : > { %v6863_v62 = vcombine.high %v8309_v6, %v8309_v6  ;;  %v6875_v6 = vcombine.high %v8296_v39, %v8296_v39 }
 0x1c0   : > { %v8370_v40 = vpop.permute.xlu0 %1286  ;;  %2508 = vrot.lane.b32.xlu1 %v6874_v59, %s7017_s15  ;;  %v6628_v12 = vcombine.low %v2374_v3, %v2374_v3  ;;  %v8408_v59 = vrot.slane %v1781_v44, %v7578_v14  ;;  %v2859_v44 = vshrl.u32 %v7925_v8, 16 }
 0x1c2   : > { %2170 = vrot.lane.b32.xlu0 %v6862_v0, %s7017_s15  ;;  %v8388_v52 = vpop.permute.xlu1 %1296 }
 0x1c4   : > { %v8390_v20 = vpop.permute.xlu0 %1251  ;;  %2779 = vrot.lane.b32.xlu1 %v6649_v19, %s7015_s13  ;;  %v6596_v19 = vcombine.low %v8408_v59, %v8408_v59 }
 0x1c6   : > { %2468 = vrot.lane.b32.xlu0 %v6628_v12, %s7015_s13  ;;  %v8399_v27 = vpop.permute.xlu1 %1261  ;;  %v2650_v12 = vrot.slane %v10585_v63, %v7578_v14  ;;  %v2860_v63 = vpack.i.b16 %v2859_v44, %v2858_v55  ;;  %v2857_v55 = vpack.i.b16 %v7925_v8, %v7906_v22  ;;  %v2845_v22 = vpack.i.b16 %v10588_v11, %v10591_v16 }
 0x1c7   : > { %v8463_v8 = vrot.slane %v2848_v30, %v7374_v24 }
 0x1c8   : > { %v8401_v28 = vpop.permute.xlu0 %985  ;;  %1929 = vrot.lane.b32.xlu1 %v6858_v5, %s7017_s15  ;;  %v6642_v18 = vcombine.low %v2650_v12, %v2650_v12  ;;  %v8449_v60 = vrot.slane %v2860_v63, %v7374_v24  ;;  %v2944_v37 = vrot.slane %v2857_v55, %v7374_v24 }
 0x1ca   : > { %2739 = vrot.lane.b32.xlu0 %v6641_v25, %s7014_s12  ;;  %v8412_v42 = vpop.permute.xlu1 %1306 }
 0x1cc   : > { %v8414_v0 = vpop.permute.xlu0 %1030  ;;  %2473 = vrot.lane.b32.xlu1 %v6870_v33, %s7017_s15  ;;  %v10589_v33 = vld [vmem:[#allocation23_spill] sm:$0xff] }
 0x1ce   : > { %1889 = vrot.lane.b32.xlu0 %v6596_v19, %s7015_s13  ;;  %v8425_v5 = vpop.permute.xlu1 %1271  ;;  %v2852_v19 = vshrl.u32 %v10589_v33, 16 }
 0x1cf   : > { %10586 = vst [vmem:[#allocation50_spill] sm:$0xff] %v8425_v5 }
 0x1d0   : > { %v8427_v25 = vpop.permute.xlu0 %995  ;;  %2744 = vrot.lane.b32.xlu1 %v6642_v18, %s7015_s13  ;;  %v2854_v5 = vpack.i.b16 %v2853_v47, %v2852_v19  ;;  %v10592_v18 = vld [vmem:[#allocation21_spill] sm:$0xff] }
 0x1d1   : > { %10587 = vst [vmem:[#allocation51_spill] sm:$0xff] %v8427_v25  ;;  %v6871_v25 = vcombine.high %v2374_v3, %v2374_v3  ;;  %v6883_v3 = vcombine.high %v8378_v38, %v8378_v38  ;;  %v2839_v16 = vpack.i.b16 %v10590_v23, %v10592_v18  ;;  %v6879_v23 = vcombine.high %v2650_v12, %v2650_v12 }
 0x1d2   : > { %2175 = vrot.lane.b32.xlu0 %v6863_v62, %s7018_s16  ;;  %v8437_v43 = vpop.permute.xlu1 %970  ;;  %v2840_v62 = vshrl.u32 %v10592_v18, 16  ;;  %v8456_v19 = vrot.slane %v2854_v5, %v7374_v24  ;;  %v10593_v18 = vld [vmem:[#allocation20_spill] sm:$0xff] }
 0x1d4   : > { %v1006_v35 = vpop.permute.xlu0 %1005  ;;  %1894 = vrot.lane.b32.xlu1 %v6854_v7, %s7017_s15  ;;  %v2842_v47 = vpack.i.b16 %v2841_v10, %v2840_v62  ;;  %v2851_v7 = vpack.i.b16 %v7887_v50, %v10589_v33  ;;  %v2979_v10 = vcombine.low %v8456_v19, %v8449_v60  ;;  %v6878_v33 = vcombine.high %v8395_v13, %v8395_v13 }
 0x1d5   : > { %v1054_v62 = vsel %vm746_vm5, %v10593_v18, %v1006_v35 }
 0x1d6   : > { %2513 = vrot.lane.b32.xlu0 %v6875_v6, %s7018_s16  ;;  %v1282_v44 = vpop.permute.xlu1 %1281  ;;  %v8479_v30 = vrot.slane %v2842_v47, %v7374_v24  ;;  %v2936_v5 = vrot.slane %v2851_v7, %v7374_v24  ;;  %v2987_v63 = vrot.slane %v2979_v10, %v7578_v14  ;;  %v2868_v6 = vrot.slane %v2839_v16, %v7374_v24  ;;  %v10594_v47 = vld [vmem:[#allocation14_spill] sm:$0xff]  ;;  %v10595_v16 = vld [vmem:[#allocation25_spill] sm:$0xff] }
 0x1d7   : > { %v770_v7 = vsel %vm746_vm5, %v10594_v47, %v8170_v31  ;;  %v1056_v35 = vsel %vm750_vm6, %v1054_v62, %v8358_v34  ;;  %v10596_v31 = vld [vmem:[#allocation29_spill] sm:$0xff] }
 0x1d8   : > { %v1016_v39 = vpop.permute.xlu0 %1015  ;;  %2478 = vrot.lane.b32.xlu1 %v6871_v25, %s7018_s16  ;;  %v8485_v25 = vrot.slane %v2845_v22, %v7374_v24  ;;  %v2911_v38 = vcombine.low %v8479_v30, %v8463_v8  ;;  %v2945_v11 = vcombine.low %v2936_v5, %v2944_v37  ;;  %v772_v34 = vsel %vm750_vm6, %v770_v7, %v10596_v31 }
 0x1da   : > { %2784 = vrot.lane.b32.xlu0 %v6882_v56, %s7017_s15  ;;  %v8468_v58 = vpop.permute.xlu1 %1246  ;;  %v6859_v56 = vcombine.high %v8341_v15, %v8341_v15  ;;  %v2877_v55 = vcombine.low %v2868_v6, %v8485_v25  ;;  %v8501_v12 = vrot.slane %v2945_v11, %v7578_v14  ;;  %v8504_v13 = vrot.slane %v2911_v38, %v7578_v14 }
 0x1db   : > { %v1330_v11 = vsel %vm746_vm5, %v10595_v16, %v1282_v44  ;;  %v2946_v38 = vcombine.high %v2936_v5, %v2944_v37  ;;  %v10597_v44 = vld [vmem:[#allocation16_spill] sm:$0xff] }
 0x1dc   : > { %v8470_v50 = vpop.permute.xlu0 %980  ;;  %2789 = vrot.lane.b32.xlu1 %v6883_v3, %s7018_s16  ;;  %v6659_v3 = vcombine.low %v2987_v63, %v2987_v63  ;;  %v1332_v37 = vsel %vm750_vm6, %v1330_v11, %v8370_v40  ;;  %v6888_v47 = vcombine.high %v8501_v12, %v8501_v12 }
 0x1de   : > { %1934 = vrot.lane.b32.xlu0 %v6859_v56, %s7018_s16  ;;  %v1292_v15 = vpop.permute.xlu1 %1291  ;;  %v6855_v56 = vcombine.high %v8408_v59, %v8408_v59  ;;  %v8523_v59 = vrot.slane %v2877_v55, %v7578_v14 }
 0x1df   : > { %v1334_v55 = vsel %vm753_vm7, %v1332_v37, %v1292_v15  ;;  %v2980_v15 = vcombine.high %v8456_v19, %v8449_v60 }
 0x1e0   : > { %v8489_v4 = vpop.permute.xlu0 %1256  ;;  %2754 = vrot.lane.b32.xlu1 %v6879_v23, %s7018_s16  ;;  %v1058_v23 = vsel %vm753_vm7, %v1056_v35, %v1016_v39  ;;  %v1677_v39 = vsel %vm746_vm5, %v10597_v44, %v8217_v29  ;;  %v2878_v29 = vcombine.high %v2868_v6, %v8485_v25  ;;  %v10598_v35 = vld [vmem:[#allocation31_spill] sm:$0xff]  ;;  %v6884_v25 = vcombine.high %v8523_v59, %v8523_v59 }
 0x1e1   : > { %v1060_v5 = vsel %vm756_vm8, %v1058_v23, %v8368_v17  ;;  %v774_v40 = vsel %vm753_vm7, %v772_v34, %v10598_v35  ;;  %v2960_v17 = vrot.slane %v2946_v38, %v7578_v14 }
 0x1e2   : > { %2749 = vrot.lane.b32.xlu0 %v6878_v33, %s7017_s15  ;;  %v1026_v22 = vpop.permute.xlu1 %1025  ;;  %v6652_v33 = vcombine.low %v8504_v13, %v8504_v13 }
 0x1e3   : > { %v1062_v7 = vsel %vm759_vm9, %v1060_v5, %v1026_v22  ;;  %v1679_v22 = vsel %vm750_vm6, %v1677_v39, %v8202_v57  ;;  %v776_v57 = vsel %vm756_vm8, %v774_v40, %v8109_v2  ;;  %v6885_v2 = vcombine.high %v8504_v13, %v8504_v13 }
 0x1e4   : > { %v1302_v10 = vpop.permute.xlu0 %1301  ;;  %3035 = vrot.lane.b32.xlu1 %v6659_v3, %s7016_s14  ;;  %v2912_v3 = vcombine.high %v8479_v30, %v8463_v8  ;;  %v1681_v6 = vsel %vm753_vm7, %v1679_v22, %v8232_v41  ;;  %v1064_v11 = vsel %vm762_vm13, %v1062_v7, %v8414_v0  ;;  %v6889_v30 = vcombine.high %v2987_v63, %v2987_v63 }
 0x1e5   : > { %v1683_v60 = vsel %vm756_vm8, %v1681_v6, %v8248_v32  ;;  %v6662_v0 = vcombine.low %v2960_v17, %v2960_v17  ;;  %v2892_v63 = vrot.slane %v2878_v29, %v7578_v14  ;;  %v778_v38 = vsel %vm759_vm9, %v776_v57, %v8138_v9  ;;  %v3210_v6 = vld [vmem:[%s10456_s3] sm:$0xf] }
 0x1e6   : > { %1899 = vrot.lane.b32.xlu0 %v6855_v56, %s7018_s16  ;;  %v8532_v18 = vpop.permute.xlu1 %990  ;;  %v1336_v56 = vsel %vm756_vm8, %v1334_v55, %v8388_v52  ;;  %v1685_v52 = vsel %vm759_vm9, %v1683_v60, %v8256_v45  ;;  %v2926_v55 = vrot.slane %v2912_v3, %v7578_v14  ;;  %v6890_v35 = vcombine.high %v2960_v17, %v2960_v17 }
 0x1e7   : > { %v1338_v19 = vsel %vm759_vm9, %v1336_v56, %v1302_v10  ;;  %v1687_v32 = vsel %vm762_vm13, %v1685_v52, %v8284_v36  ;;  %v2994_v10 = vrot.slane %v2980_v15, %v7578_v14  ;;  %v780_v36 = vsel %vm762_vm13, %v778_v38, %v8267_v53  ;;  %v10602_v38 = vld [vmem:[#allocation15_spill] sm:$0xff] }
 0x1e8   : > { %v8534_v62 = vpop.permute.xlu0 %1266  ;;  %3040 = vrot.lane.b32.xlu1 %v6888_v47, %s7012_s10  ;;  %v1689_v45 = vsel %vm765_vm15, %v1687_v32, %v8334_v46  ;;  %v1340_v34 = vsel %vm762_vm13, %v1338_v19, %v8412_v42  ;;  %v782_v44 = vsel %vm765_vm15, %v780_v36, %v8321_v49  ;;  %v6655_v5 = vcombine.low %v2892_v63, %v2892_v63  ;;  %v10600_v32 = vld [vmem:[#allocation22_spill] sm:$0xff] }
 0x1e9   : > { %v3108_v46 = vrot.slane %v1689_v45, 2  ;;  %v6663_v53 = vcombine.low %v2994_v10, %v2994_v10  ;;  %v6656_v40 = vcombine.low %v2926_v55, %v2926_v55  ;;  %v6891_v22 = vcombine.high %v2994_v10, %v2994_v10 }
 0x1ea   : > { %3000 = vrot.lane.b32.xlu0 %v6652_v33, %s7016_s14  ;;  %v1036_v16 = vpop.permute.xlu1 %1035  ;;  %v749_v45 = vsel %vm746_vm5, %v10602_v38, %v8186_v21 }
 0x1eb   : > { %v1066_v41 = vsel %vm765_vm15, %v1064_v11, %v1036_v16  ;;  %v6887_v16 = vcombine.high %v2926_v55, %v2926_v55  ;;  %v3202_v11 = vld [vmem:[%s10455_s2] sm:$0xf] }
 0x1ec   : > { %v8560_v8 = vpop.permute.xlu0 %1000  ;;  %3045 = vrot.lane.b32.xlu1 %v6889_v30, %s7013_s11  ;;  %v3100_v23 = vrot.slane %v1066_v41, 6 }
 0x1ee   : > { %3005 = vrot.lane.b32.xlu0 %v6884_v25, %s7012_s10  ;;  %v8582_v31 = vpop.permute.xlu1 %1276  ;;  %v3125_v42 = vsel %vm3121_vm0, %v782_v44, %v3100_v23  ;;  %v6886_v25 = vcombine.high %v2892_v63, %v2892_v63  ;;  %v1039_v23 = vsel %vm746_vm5, %v10600_v32, %v8437_v43 }
 0x1f0   : > { %v1312_v33 = vpop.permute.xlu0 %1311  ;;  %3050 = vrot.lane.b32.xlu1 %v6662_v0, %s7014_s12  ;;  %v10599_v0 = vld [vmem:[#allocation18_spill] sm:$0xff] }
 0x1f1   : > { %v1342_v13 = vsel %vm765_vm15, %v1340_v34, %v1312_v33  ;;  %v1662_v63 = vsel %vm746_vm5, %v10599_v0, %v8269_v1  ;;  %v1041_v33 = vsel %vm750_vm6, %v1039_v23, %v8356_v26 }
 0x1f2   : > { %v3104_v9 = vrot.slane %v1342_v13, 4  ;;  %3010 = vrot.lane.b32.xlu0 %v6885_v2, %s7013_s11  ;;  %v8594_v39 = vpop.permute.xlu1 %2724  ;;  %v10601_v2 = vld [vmem:[#allocation27_spill] sm:$0xff]  ;;  %v1664_v34 = vsel %vm750_vm6, %v1662_v63, %v8234_v51  ;;  %v1043_v43 = vsel %vm753_vm7, %v1041_v33, %v8470_v50 }
 0x1f3   : > { %v1315_v10 = vsel %vm746_vm5, %v10601_v2, %v8468_v58  ;;  %v10603_v58 = vld [vmem:[#allocation32_spill] sm:$0xff]  ;;  %v1666_v51 = vsel %vm753_vm7, %v1664_v34, %v8246_v48  ;;  %v1045_v26 = vsel %vm756_vm8, %v1043_v43, %v8401_v28 }
 0x1f4   : > { %v8596_v37 = vpop.permute.xlu0 %2764  ;;  %v3130_v47 = vsel %vm3126_vm2, %v3125_v42, %v3104_v9  ;;  %3055 = vrot.lane.b32.xlu1 %v6663_v53, %s7015_s13  ;;  %v1317_v13 = vsel %vm750_vm6, %v1315_v10, %v8390_v20  ;;  %v752_v44 = vsel %vm750_vm6, %v749_v45, %v10603_v58  ;;  %v1047_v20 = vsel %vm759_vm9, %v1045_v26, %v8532_v18  ;;  %v10604_v53 = vld [vmem:[#allocation35_spill] sm:$0xff] }
 0x1f5   : > { %v3136_v49 = vsel %vm10504_vm3, %v3130_v47, %v3108_v46  ;;  %v1319_v21 = vsel %vm753_vm7, %v1317_v13, %v8489_v4  ;;  %v755_v50 = vsel %vm753_vm7, %v752_v44, %v8107_v61  ;;  %v1668_v4 = vsel %vm756_vm8, %v1666_v51, %v8258_v54 }
 0x1f6   : > { %3015 = vrot.lane.b32.xlu0 %v6655_v5, %s7014_s12  ;;  %3161 = vmatprep.subr.bf16.mxu0 %v3136_v49  ;;  %v8603_v7 = vpop.permute.xlu1 %2759  ;;  %v1321_v42 = vsel %vm756_vm8, %v1319_v21, %v8399_v27  ;;  %v758_v28 = vsel %vm756_vm8, %v755_v50, %v10604_v53  ;;  %v10605_v5 = vld [vmem:[#allocation51_spill] sm:$0xff] }
 0x1f7   : > { %v1323_v48 = vsel %vm759_vm9, %v1321_v42, %v8534_v62  ;;  %v1049_v47 = vsel %vm762_vm13, %v1047_v20, %v10605_v5  ;;  %v10606_v49 = vld [vmem:[#allocation43_spill] sm:$0xff] }
 0x1f8   : > { %v8605_v29 = vpop.permute.xlu0 %2185  ;;  %3060 = vrot.lane.b32.xlu1 %v6890_v35, %s7017_s15  ;;  %v1670_v18 = vsel %vm759_vm9, %v1668_v4, %v10606_v49  ;;  %v1051_v27 = vsel %vm765_vm15, %v1049_v47, %v8560_v8  ;;  %v10607_v35 = vld [vmem:[#allocation50_spill] sm:$0xff] }
 0x1f9   : > { %v1325_v54 = vsel %vm762_vm13, %v1323_v48, %v10607_v35  ;;  %v3099_v63 = vrot.slane %v1051_v27, 6 }
 0x1fa   : > { %3020 = vrot.lane.b32.xlu0 %v6656_v40, %s7015_s13  ;;  %v8609_v15 = vpop.permute.xlu1 %2150  ;;  %v10608_v40 = vld [vmem:[#allocation47_spill] sm:$0xff] }
 0x1fb   : > { %v1672_v62 = vsel %vm762_vm13, %v1670_v18, %v10608_v40  ;;  %v10612_v40 = vld [vmem:[#allocation36_spill] sm:$0xff] }
 0x1fc   : > { %v8611_v3 = vpop.permute.xlu0 %1909  ;;  %3065 = vrot.lane.b32.xlu1 %v6891_v22, %s7018_s16  ;;  %v1327_v22 = vsel %vm765_vm15, %v1325_v54, %v8582_v31 }
 0x1fd   : > { %v3103_v23 = vrot.slane %v1327_v22, 4  ;;  %v10613_v22 = vld [vmem:[#allocation38_spill] sm:$0xff] }
 0x1fe   : > { %3025 = vrot.lane.b32.xlu0 %v6886_v25, %s7017_s15  ;;  %v8618_v17 = vpop.permute.xlu1 %2145  ;;  %v10609_v25 = vld [vmem:[#allocation40_spill] sm:$0xff] }
 0x200   : > { %v8620_v56 = vpop.permute.xlu0 %2195  ;;  %3213 = vperm.xlu1 %6995, %v3210_v6   ;;  %v761_v6 = vsel %vm759_vm9, %v758_v28, %v10609_v25  ;;  %v10614_v25 = vld [vmem:[#allocation17_spill] sm:$0xff] }
 0x202   : > { %3030 = vrot.lane.b32.xlu0 %v6887_v16, %s7018_s16  ;;  %v8626_v30 = vpop.permute.xlu1 %1869 }
 0x204   : > { %v8628_v60 = vpop.permute.xlu0 %1874 }
 0x206   : > { %3205 = vperm.xlu0 %6994, %v3202_v11   ;;  %v8630_v57 = vpop.permute.xlu1 %2155  ;;  %v10610_v11 = vld [vmem:[#allocation46_spill] sm:$0xff] }
 0x207   : > { %v764_v0 = vsel %vm762_vm13, %v761_v6, %v10610_v11  ;;  %v2532_v6 = vsel %vm746_vm5, %v10614_v25, %v10613_v22  ;;  %v10624_v22 = vld [vmem:[#allocation39_spill] sm:$0xff] }
 0x208   : > { %v8632_v19 = vpop.permute.xlu0 %2160  ;;  %v1938_v25 = vsel %vm746_vm5, %v10624_v22, %v8626_v30 }
 0x20a   : > { %v8634_v41 = vpop.permute.xlu1 %1914 }
 0x20c   : > { %v8636_v52 = vpop.permute.xlu0 %2180 }
 0x20e   : > { %v8654_v36 = vpop.permute.xlu1 %2200 }
 0x210   : > { %v1905_v1 = vpop.permute.xlu0 %1904 }
 0x212   : > { %v8668_v9 = vpop.permute.xlu1 %2769 }
 0x214   : > { %v2191_v46 = vpop.permute.xlu0 %2190 }
 0x216   : > { %v1624_v55 = vpop.permute.xlu1 %1623 }
 0x217   : > { %v1674_v16 = vsel %vm765_vm15, %v1672_v62, %v1624_v55  ;;  %v10611_v55 = vld [vmem:[#allocation33_spill] sm:$0xff]  ;;  %v1953_v62 = vsel %vm746_vm5, %v10612_v40, %v1905_v1 }
 0x218   : > { %v8684_v61 = vpop.permute.xlu0 %2729  ;;  %v3107_v10 = vrot.slane %v1674_v16, 2  ;;  %v2229_v49 = vsel %vm746_vm5, %v10611_v55, %v8636_v52 }
 0x219   : > { %v2231_v18 = vsel %vm750_vm6, %v2229_v49, %v8605_v29  ;;  %v10622_v49 = vld [vmem:[#allocation49_spill] sm:$0xff] }
 0x21a   : > { %v1920_v32 = vpop.permute.xlu1 %1919  ;;  %v2233_v54 = vsel %vm753_vm7, %v2231_v18, %v2191_v46 }
 0x21b   : > { %v2235_v16 = vsel %vm756_vm8, %v2233_v54, %v8620_v56  ;;  %v10623_v54 = vld [vmem:[#allocation34_spill] sm:$0xff] }
 0x21c   : > { %v710_v8 = vpop.permute.xlu0 %709  ;;  %v2214_v40 = vsel %vm746_vm5, %v10623_v54, %v8618_v17 }
 0x21d   : > { %v767_v2 = vsel %vm765_vm15, %v764_v0, %v710_v8  ;;  %v10615_v0 = vld [vmem:[#allocation37_spill] sm:$0xff]  ;;  %v2216_v30 = vsel %vm750_vm6, %v2214_v40, %v8609_v15  ;;  %v1940_v15 = vsel %vm750_vm6, %v1938_v25, %v8628_v60 }
 0x21e   : > { %v3123_v38 = vsel %vm3121_vm0, %v767_v2, %v3099_v63  ;;  %v2206_v31 = vpop.permute.xlu1 %2205  ;;  %v10616_v63 = vld [vmem:[#allocation19_spill] sm:$0xff]  ;;  %v10617_v8 = vld [vmem:[#allocation41_spill] sm:$0xff]  ;;  %v10619_v2 = vld [vmem:[#allocation44_spill] sm:$0xff] }
 0x21f   : > { %v3128_v45 = vsel %vm3126_vm2, %v3123_v38, %v3103_v23  ;;  %v2517_v29 = vsel %vm746_vm5, %v10616_v63, %v10615_v0  ;;  %v2534_v46 = vsel %vm750_vm6, %v2532_v6, %v10617_v8  ;;  %v10618_v23 = vld [vmem:[#allocation30_spill] sm:$0xff]  ;;  %v10620_v38 = vld [vmem:[#allocation45_spill] sm:$0xff] }
 0x220   : > { %v8704_v34 = vpop.permute.xlu0 %1879  ;;  %v3133_v33 = vsel %vm10504_vm3, %v3128_v45, %v3107_v10  ;;  %v2808_v1 = vsel %vm746_vm5, %v10618_v23, %v8603_v7  ;;  %v2519_v10 = vsel %vm750_vm6, %v2517_v29, %v10619_v2  ;;  %v2536_v56 = vsel %vm753_vm7, %v2534_v46, %v10620_v38  ;;  %v10625_v8 = vld [vmem:[#allocation42_spill] sm:$0xff] }
 0x221   : > { %3162 = vmatpush1.bf16.msra.mxu0 %v3133_v33  ;;  %v1955_v45 = vsel %vm750_vm6, %v1953_v62, %v8611_v3  ;;  %v10621_v33 = vld [vmem:[#allocation48_spill] sm:$0xff]  ;;  %v2521_v18 = vsel %vm753_vm7, %v2519_v10, %v10622_v49  ;;  %v2237_v7 = vsel %vm759_vm9, %v2235_v16, %v8654_v36  ;;  %v2810_v3 = vsel %vm750_vm6, %v2808_v1, %v8596_v37 }
 0x222   : > { %v2504_v43 = vpop.permute.xlu1 %2503  ;;  %v2538_v55 = vsel %vm756_vm8, %v2536_v56, %v10621_v33  ;;  %v2239_v62 = vsel %vm762_vm13, %v2237_v7, %v2206_v31  ;;  %v2812_v29 = vsel %vm753_vm7, %v2810_v3, %v8668_v9  ;;  %v1957_v17 = vsel %vm753_vm7, %v1955_v45, %v8634_v41 }
 0x223   : > { %v2540_v6 = vsel %vm759_vm9, %v2538_v55, %v2504_v43  ;;  %v1959_v37 = vsel %vm756_vm8, %v1957_v17, %v1920_v32  ;;  %v2793_v9 = vsel %vm746_vm5, %v10625_v8, %v8594_v39  ;;  %v2218_v41 = vsel %vm753_vm7, %v2216_v30, %v8630_v57 }
 0x224   : > { %v8707_v13 = vpop.permute.xlu0 %2165  ;;  %v2795_v39 = vsel %vm750_vm6, %v2793_v9, %v8684_v61 }
 0x226   : > { %v2775_v58 = vpop.permute.xlu1 %2774 }
 0x227   : > { %v2814_v31 = vsel %vm756_vm8, %v2812_v29, %v2775_v58 }
 0x228   : > { %v8709_v44 = vpop.permute.xlu0 %2463 }
 0x229   : > { %v2523_v38 = vsel %vm756_vm8, %v2521_v18, %v8709_v44 }
 0x22a   : > { %v1925_v21 = vpop.permute.xlu1 %1924 }
 0x22c   : > { %v2735_v51 = vpop.permute.xlu0 %2734 }
 0x22d   : > { %v2797_v60 = vsel %vm753_vm7, %v2795_v39, %v2735_v51 }
 0x22e   : > { %v2211_v26 = vpop.permute.xlu1 %2210 }
 0x22f   : > { %v2241_v36 = vsel %vm765_vm15, %v2239_v62, %v2211_v26  ;;  %v1961_v26 = vsel %vm759_vm9, %v1959_v37, %v1925_v21 }
 0x230   : > { %v8711_v50 = vpop.permute.xlu0 %1884  ;;  %v3112_v46 = vrot.slane %v2241_v36, 6 }
 0x232   : > { %v2509_v20 = vpop.permute.xlu1 %2508 }
 0x233   : > { %v2542_v16 = vsel %vm762_vm13, %v2540_v6, %v2509_v20 }
 0x234   : > { %v8713_v42 = vpop.permute.xlu0 %2170 }
 0x236   : > { %v2780_v4 = vpop.permute.xlu1 %2779 }
 0x237   : > { %v2816_v20 = vsel %vm759_vm9, %v2814_v31, %v2780_v4  ;;  %v2220_v4 = vsel %vm756_vm8, %v2218_v41, %v8632_v19 }
 0x238   : > { %v8715_v48 = vpop.permute.xlu0 %2468  ;;  %v2222_v10 = vsel %vm759_vm9, %v2220_v4, %v8707_v13  ;;  %v1942_v13 = vsel %vm753_vm7, %v1940_v15, %v8704_v34 }
 0x239   : > { %v2224_v45 = vsel %vm762_vm13, %v2222_v10, %v8713_v42  ;;  %v2525_v19 = vsel %vm759_vm9, %v2523_v38, %v8715_v48  ;;  %v1944_v42 = vsel %vm756_vm8, %v1942_v13, %v8711_v50 }
 0x23a   : > { %v1930_v53 = vpop.permute.xlu1 %1929 }
 0x23b   : > { %v1963_v32 = vsel %vm762_vm13, %v1961_v26, %v1930_v53 }
 0x23c   : > { %v2740_v28 = vpop.permute.xlu0 %2739 }
 0x23d   : > { %v2799_v61 = vsel %vm756_vm8, %v2797_v60, %v2740_v28 }
 0x23e   : > { %v8717_v5 = vpop.permute.xlu1 %2473 }
 0x23f   : > { %v2527_v44 = vsel %vm762_vm13, %v2525_v19, %v8717_v5 }
 0x240   : > { %v8719_v47 = vpop.permute.xlu0 %1889 }
 0x242   : > { %v2745_v27 = vpop.permute.xlu1 %2744 }
 0x243   : > { %v2801_v51 = vsel %vm759_vm9, %v2799_v61, %v2745_v27  ;;  %v1946_v27 = vsel %vm759_vm9, %v1944_v42, %v8719_v47 }
 0x244   : > { %v2176_v35 = vpop.permute.xlu0 %2175 }
 0x245   : > { %v2226_v28 = vsel %vm765_vm15, %v2224_v45, %v2176_v35 }
 0x246   : > { %v8734_v11 = vpop.permute.xlu1 %1894  ;;  %v3111_v40 = vrot.slane %v2226_v28, 6 }
 0x247   : > { %v1948_v34 = vsel %vm762_vm13, %v1946_v27, %v8734_v11 }
 0x248   : > { %v2514_v52 = vpop.permute.xlu0 %2513 }
 0x249   : > { %v2544_v43 = vsel %vm765_vm15, %v2542_v16, %v2514_v52 }
 0x24a   : > { %v2479_v0 = vpop.permute.xlu1 %2478  ;;  %v3116_v1 = vrot.slane %v2544_v43, 4 }
 0x24b   : > { %v2529_v48 = vsel %vm765_vm15, %v2527_v44, %v2479_v0 }
 0x24c   : > { %v2785_v63 = vpop.permute.xlu0 %2784  ;;  %v3115_v35 = vrot.slane %v2529_v48, 4 }
 0x24d   : > { %v2818_v58 = vsel %vm762_vm13, %v2816_v20, %v2785_v63 }
 0x24e   : > { %v2790_v52 = vpop.permute.xlu1 %2789 }
 0x24f   : > { %v2820_v57 = vsel %vm765_vm15, %v2818_v58, %v2790_v52 }
 0x250   : > { %v1935_v23 = vpop.permute.xlu0 %1934  ;;  %v3120_v2 = vrot.slane %v2820_v57, 2  ;;  %v3152_v57 = vld [vmem:[%s10454_s1] sm:$0x3] }
 0x251   : > { %v1965_v21 = vsel %vm765_vm15, %v1963_v32, %v1935_v23 }
 0x252   : > { %v3141_v53 = vsel %vm3121_vm0, %v1965_v21, %v3112_v46  ;;  %v2755_v33 = vpop.permute.xlu1 %2754 }
 0x253   : > { %v3145_v56 = vsel %vm3126_vm2, %v3141_v53, %v3116_v1 }
 0x254   : > { %v2750_v55 = vpop.permute.xlu0 %2749  ;;  %v3150_v49 = vsel %vm10504_vm3, %v3145_v56, %v3120_v2 }
 0x255   : > { %v2803_v18 = vsel %vm762_vm13, %v2801_v51, %v2750_v55  ;;  %3163 = vmatprep.subr.bf16.mxu0 %v3150_v49 }
 0x256   : > { %v2805_v54 = vsel %vm765_vm15, %v2803_v18, %v2755_v33  ;;  %v3036_v5 = vpop.permute.xlu1 %3035 }
 0x257   : > { %v3119_v25 = vrot.slane %v2805_v54, 2  ;;  %v3084_v16 = vsel %vm746_vm5, %v8501_v12, %v3036_v5 }
 0x258   : > { %v1900_v7 = vpop.permute.xlu0 %1899 }
 0x259   : > { %v1950_v22 = vsel %vm765_vm15, %v1948_v34, %v1900_v7 }
 0x25a   : > { %v3139_v3 = vsel %vm3121_vm0, %v1950_v22, %v3111_v40  ;;  %v3041_v62 = vpop.permute.xlu1 %3040 }
 0x25b   : > { %v3143_v50 = vsel %vm3126_vm2, %v3139_v3, %v3115_v35  ;;  %v3086_v30 = vsel %vm750_vm6, %v3084_v16, %v3041_v62 }
 0x25c   : > { %v3001_v6 = vpop.permute.xlu0 %3000  ;;  %v3147_v47 = vsel %vm10504_vm3, %v3143_v50, %v3119_v25  ;;  %vm3153_vm3 = vcmask 293888  }
 0x25d   : > { %3164 = vmatpush1.bf16.msra.mxu0 %v3147_v47  ;;  %v3069_v9 = vsel %vm746_vm5, %v8523_v59, %v3001_v6 }
 0x25e   : > { %v3046_v0 = vpop.permute.xlu1 %3045 }
 0x25f   : > { %v3088_v43 = vsel %vm753_vm7, %v3086_v30, %v3046_v0 }
 0x260   : > { %v3006_v63 = vpop.permute.xlu0 %3005 }
 0x261   : > { %v3071_v26 = vsel %vm750_vm6, %v3069_v9, %v3006_v63 }
 0x262   : > { %v3051_v29 = vpop.permute.xlu1 %3050 }
 0x263   : > { %v3090_v8 = vsel %vm756_vm8, %v3088_v43, %v3051_v29 }
 0x264   : > { %v3011_v17 = vpop.permute.xlu0 %3010 }
 0x265   : > { %v3073_v12 = vsel %vm753_vm7, %v3071_v26, %v3011_v17 }
 0x266   : > { %v3056_v11 = vpop.permute.xlu1 %3055 }
 0x267   : > { %v3092_v41 = vsel %vm759_vm9, %v3090_v8, %v3056_v11 }
 0x268   : > { %v3016_v36 = vpop.permute.xlu0 %3015 }
 0x269   : > { %v3075_v58 = vsel %vm756_vm8, %v3073_v12, %v3016_v36 }
 0x26a   : > { %v3061_v37 = vpop.permute.xlu1 %3060 }
 0x26b   : > { %v3094_v20 = vsel %vm762_vm13, %v3092_v41, %v3061_v37 }
 0x26c   : > { %v3021_v31 = vpop.permute.xlu0 %3020 }
 0x26d   : > { %v3077_v52 = vsel %vm759_vm9, %v3075_v58, %v3021_v31 }
 0x26e   : > { %v3066_v15 = vpop.permute.xlu1 %3065 }
 0x26f   : > { %v3096_v32 = vsel %vm765_vm15, %v3094_v20, %v3066_v15 }
 0x270   : > { %v3026_v46 = vpop.permute.xlu0 %3025  ;;  %6666 = vmatprep.subr.msk.bf16.mxu0 %vm3121_vm0, %v3096_v32 }
 0x271   : > { %v3079_v59 = vsel %vm762_vm13, %v3077_v52, %v3026_v46 }
 0x274   : > { %v3031_v23 = vpop.permute.xlu0 %3030 }
 0x275   : > { %v3081_v39 = vsel %vm765_vm15, %v3079_v59, %v3031_v23 }
 0x276   : > { %v3157_v1 = vsel %vm3121_vm0, %v3081_v39, 0 }
 0x277   : > { %3166 = vmatpush1.bf16.msra.mxu0 %v3157_v1 }
 0x27a   : > { %6667 = vmatmul.mubr.msk.bf16.vlgmr.msra.gmra.mrb[0].mxu0 %vm3153_vm3, %v3152_v57 }
 0x27f   : > { %v3214_v60 = vpop.permute.xlu1 %3213 }
 0x285   : > { %v3206_v21 = vpop.permute.xlu0 %3205 }
 0x34d   : > { %v3195_v4 = vpop.f32.mrb[0].mxu0 }
 0x34e   : > { %v3208_v2 = vmul.f32 %v3206_v21, %v3195_v4  ;;  %v3197_v53 = vpop.f32.mrb[1].mxu0 }
 0x34f   : > { %v3199_v10 = vpop.f32.mrb[2].mxu0  ;;  %v3209_v45 = vmul.f32 %v3206_v21, %v3197_v53 }
 0x350   : > { %v3216_v38 = vadd.f32 %v3214_v60, %v3208_v2  ;;  %v3200_v61 = vpop.f32.mrb[3].mxu0 }
 0x351   : > { %v3217_v19 = vadd.f32 %v3214_v60, %v3209_v45 }
 0x352   : > { %v3218_v56 = vmax.f32 %v3216_v38, 0.0 }
 0x353   : > { %v3219_v51 = vmax.f32 %v3217_v19, 0.0 }
 0x354   : > { %3224 = vrot.lane.b32.xlu0 %v3218_v56, %s7017_s15  ;;  %3221 = vrot.lane.b32.xlu1 %v3218_v56, %s7018_s16 }
 0x358   : > { %3230 = vrot.lane.b32.xlu0 %v3218_v56, %s7014_s12  ;;  %3227 = vrot.lane.b32.xlu1 %v3218_v56, %s7015_s13 }
 0x35c   : > { %3236 = vrot.lane.b32.xlu0 %v3218_v56, %s7012_s10  ;;  %3233 = vrot.lane.b32.xlu1 %v3218_v56, %s7013_s11 }
 0x360   : > { %3243 = vrot.lane.b32.xlu0 %v3219_v51, %s7018_s16  ;;  %3239 = vrot.lane.b32.xlu1 %v3218_v56, %s7016_s14 }
 0x364   : > { %3249 = vrot.lane.b32.xlu0 %v3219_v51, %s7015_s13  ;;  %3246 = vrot.lane.b32.xlu1 %v3219_v51, %s7017_s15 }
 0x368   : > { %3255 = vrot.lane.b32.xlu0 %v3219_v51, %s7013_s11  ;;  %3252 = vrot.lane.b32.xlu1 %v3219_v51, %s7014_s12 }
 0x36c   : > { %3261 = vrot.lane.b32.xlu0 %v3219_v51, %s7016_s14  ;;  %3258 = vrot.lane.b32.xlu1 %v3219_v51, %s7012_s10 }
 0x3c6   : > { %v3225_v33 = vpop.permute.xlu0 %3224  ;;  %v3222_v55 = vpop.permute.xlu1 %3221 }
 0x3c7   : > { %v3264_v42 = vcombine.low %v3218_v56, %v3225_v33 }
 0x3c9   : > { %v3271_v34 = vrot.slane %v3264_v42, %v7374_v24 }
 0x3ca   : > { %v3231_v49 = vpop.permute.xlu0 %3230  ;;  %v3228_v13 = vpop.permute.xlu1 %3227 }
 0x3cb   : > { %v3272_v44 = vcombine.low %v3222_v55, %v3228_v13 }
 0x3cd   : > { %v3279_v48 = vrot.slane %v3272_v44, %v7374_v24 }
 0x3ce   : > { %v3237_v28 = vpop.permute.xlu0 %3236  ;;  %v3234_v18 = vpop.permute.xlu1 %3233 }
 0x3cf   : > { %v3280_v27 = vcombine.low %v3231_v49, %v3237_v28  ;;  %v3296_v7 = vcombine.low %v3271_v34, %v3279_v48  ;;  %v3297_v35 = vcombine.high %v3271_v34, %v3279_v48 }
 0x3d1   : > { %v3287_v22 = vrot.slane %v3280_v27, %v7374_v24  ;;  %v3304_v63 = vrot.slane %v3296_v7, %v7578_v14  ;;  %v3311_v29 = vrot.slane %v3297_v35, %v7578_v14 }
 0x3d2   : > { %v3244_v54 = vpop.permute.xlu0 %3243  ;;  %v3240_v40 = vpop.permute.xlu1 %3239 }
 0x3d3   : > { %v3288_v5 = vcombine.low %v3234_v18, %v3240_v40 }
 0x3d5   : > { %v3295_v25 = vrot.slane %v3288_v5, %v7374_v24 }
 0x3d6   : > { %v3250_v3 = vpop.permute.xlu0 %3249  ;;  %v3247_v50 = vpop.permute.xlu1 %3246 }
 0x3d7   : > { %v3312_v62 = vcombine.low %v3287_v22, %v3295_v25  ;;  %v3313_v6 = vcombine.high %v3287_v22, %v3295_v25  ;;  %v3340_v47 = vcombine.low %v3244_v54, %v3250_v3  ;;  %v3332_v0 = vcombine.low %v3219_v51, %v3247_v50 }
 0x3d9   : > { %v3320_v17 = vrot.slane %v3312_v62, %v7578_v14  ;;  %v3327_v11 = vrot.slane %v3313_v6, %v7578_v14  ;;  %v3347_v43 = vrot.slane %v3340_v47, %v7374_v24  ;;  %v3339_v8 = vrot.slane %v3332_v0, %v7374_v24 }
 0x3da   : > { %v3256_v36 = vpop.permute.xlu0 %3255  ;;  %v3253_v16 = vpop.permute.xlu1 %3252 }
 0x3db   : > { %v3328_v30 = vcombine.low %v3304_v63, %v3320_v17  ;;  %v3329_v37 = vcombine.high %v3304_v63, %v3320_v17  ;;  %v3330_v31 = vcombine.low %v3311_v29, %v3327_v11  ;;  %v3331_v26 = vcombine.high %v3311_v29, %v3327_v11 }
 0x3dc   : > { %v3364_v52 = vcombine.low %v3339_v8, %v3347_v43  ;;  %v3365_v59 = vcombine.high %v3339_v8, %v3347_v43 }
 0x3dd   : > { %v6892_v9 = vpack.c.bf16 %v3328_v30, %v3328_v30  ;;  %v6894_v41 = vpack.c.bf16 %v3329_v37, %v3329_v37  ;;  %v6896_v20 = vpack.c.bf16 %v3330_v31, %v3330_v31  ;;  %v6898_v4 = vpack.c.bf16 %v3331_v26, %v3331_v26 }
 0x3de   : > { %v3262_v15 = vpop.permute.xlu0 %3261  ;;  %v3259_v46 = vpop.permute.xlu1 %3258  ;;  %v3372_v56 = vrot.slane %v3364_v52, %v7578_v14  ;;  %v3379_v45 = vrot.slane %v3365_v59, %v7578_v14  ;;  %v3528_v59 = vld [vmem:[#allocation2] sm:$0xf] }
 0x3df   : > { %v3356_v12 = vcombine.low %v3256_v36, %v3262_v15  ;;  %v3348_v32 = vcombine.low %v3253_v16, %v3259_v46  ;;  %v3425_v58 = vshrl.u32 %v6892_v9, 16  ;;  %v3442_v23 = vshrl.u32 %v6894_v41, 16 }
 0x3e0   : > { %v3428_v21 = vshll.u32 %v6892_v9, 16  ;;  %v3459_v2 = vshrl.u32 %v6896_v20, 16  ;;  %v3445_v61 = vshll.u32 %v6894_v41, 16  ;;  %v3476_v49 = vshrl.u32 %v6898_v4, 16 }
 0x3e1   : > { %v3363_v39 = vrot.slane %v3356_v12, %v7374_v24  ;;  %v3355_v1 = vrot.slane %v3348_v32, %v7374_v24  ;;  %v3427_v57 = vrot.slane %v3425_v58, 7  ;;  %v3444_v60 = vrot.slane %v3442_v23, 7 }
 0x3e2   : > { %v3461_v55 = vrot.slane %v3459_v2, 7  ;;  %v3462_v42 = vshll.u32 %v6896_v20, 16  ;;  %v3478_v34 = vrot.slane %v3476_v49, 7  ;;  %v3479_v25 = vshll.u32 %v6898_v4, 16 }
 0x3e3   : > { %v3380_v53 = vcombine.low %v3355_v1, %v3363_v39  ;;  %v3381_v10 = vcombine.high %v3355_v1, %v3363_v39  ;;  %v3430_v38 = vor.u32 %v3428_v21, %v3427_v57  ;;  %v3447_v33 = vor.u32 %v3445_v61, %v3444_v60 }
 0x3e4   : > { %v3464_v40 = vor.u32 %v3462_v42, %v3461_v55  ;;  %v3481_v50 = vor.u32 %v3479_v25, %v3478_v34  ;;  %v3431_v16 = vrot.slane %v3427_v57, 4  ;;  %v3448_v9 = vrot.slane %v3444_v60, 4  ;;  %v3535_v57 = vld [vmem:[#allocation2 + $0xc] sm:$0xf]  ;;  %v3542_v60 = vld [vmem:[#allocation2 + $0x18] sm:$0xf] }
 0x3e5   : > { %v3388_v19 = vrot.slane %v3380_v53, %v7578_v14  ;;  %v3395_v51 = vrot.slane %v3381_v10, %v7578_v14  ;;  %3492 = vrot.lane.b32.xlu1 %v3430_v38, %s7007_s30  ;;  %v3465_v15 = vrot.slane %v3461_v55, 4  ;;  %v3482_v58 = vrot.slane %v3478_v34, 4  ;;  %v3539_v38 = vld [vmem:[#allocation2 + $0x14] sm:$0x1]  ;;  %v3532_v42 = vld [vmem:[#allocation2 + $0x8] sm:$0x1] }
 0x3e7   : > { %v3396_v13 = vcombine.low %v3372_v56, %v3388_v19  ;;  %v3397_v44 = vcombine.high %v3372_v56, %v3388_v19  ;;  %v3398_v28 = vcombine.low %v3379_v45, %v3395_v51  ;;  %v3399_v18 = vcombine.high %v3379_v45, %v3395_v51  ;;  %v3549_v56 = vld [vmem:[#allocation2 + $0x24] sm:$0xf] }
 0x3e9   : > { %v6893_v48 = vpack.c.bf16 %v3396_v13, %v3396_v13  ;;  %v6895_v27 = vpack.c.bf16 %v3397_v44, %v3397_v44  ;;  %v6899_v54 = vpack.c.bf16 %v3399_v18, %v3399_v18  ;;  %3498 = vrot.lane.b32.xlu1 %v3447_v33, %s7007_s30  ;;  %v6897_v5 = vpack.c.bf16 %v3398_v28, %v3398_v28  ;;  %v3553_v28 = vld [vmem:[#allocation2 + $0x2c] sm:$0x1] }
 0x3eb   : > { %v3450_v7 = vshrl.u32 %v6895_v27, 16  ;;  %v3484_v35 = vshrl.u32 %v6899_v54, 16  ;;  %v3433_v22 = vshrl.u32 %v6893_v48, 16  ;;  %v3467_v0 = vshrl.u32 %v6897_v5, 16 }
 0x3ec   : > { %v3436_v63 = vshll.u32 %v6893_v48, 16  ;;  %v3453_v30 = vshll.u32 %v6895_v27, 16  ;;  %v3470_v41 = vshll.u32 %v6897_v5, 16  ;;  %v3487_v46 = vshll.u32 %v6899_v54, 16 }
 0x3ed   : > { %3504 = vrot.lane.b32.xlu1 %v3464_v40, %s7007_s30  ;;  %v3452_v3 = vrot.slane %v3450_v7, 7  ;;  %v3486_v6 = vrot.slane %v3484_v35, 7  ;;  %v3435_v47 = vrot.slane %v3433_v22, 7  ;;  %v3469_v11 = vrot.slane %v3467_v0, 7  ;;  %v3546_v22 = vld [vmem:[#allocation2 + $0x20] sm:$0x1] }
 0x3ef   : > { %v3457_v62 = vrot.slane %v3452_v3, 4  ;;  %v3491_v29 = vrot.slane %v3486_v6, 4  ;;  %v3440_v17 = vrot.slane %v3435_v47, 4  ;;  %v3438_v36 = vor.u32 %v3436_v63, %v3435_v47 }
 0x3f0   : > { %v3474_v37 = vrot.slane %v3469_v11, 4  ;;  %v3455_v8 = vor.u32 %v3453_v30, %v3452_v3  ;;  %v3472_v20 = vor.u32 %v3470_v41, %v3469_v11  ;;  %v3489_v32 = vor.u32 %v3487_v46, %v3486_v6 }
 0x3f1   : > { %3510 = vrot.lane.b32.xlu1 %v3481_v50, %s7007_s30  ;;  %3502 = vrot.lane.b32.xlu0 %v3457_v62, %s7007_s30  ;;  %v3439_v43 = vsel %vm7183_vm10, %v3431_v16, %v3438_v36 }
 0x3f2   : > { %v3456_v26 = vsel %vm7183_vm10, %v3448_v9, %v3455_v8  ;;  %v3473_v12 = vsel %vm7183_vm10, %v3465_v15, %v3472_v20  ;;  %v3490_v52 = vsel %vm7183_vm10, %v3482_v58, %v3489_v32  ;;  %vm10693_vm10 = vcmask 1045504  }
 0x3f5   : > { %3514 = vrot.lane.b32.xlu0 %v3491_v29, %s7007_s30  ;;  %3496 = vrot.lane.b32.xlu1 %v3440_v17, %s7007_s30 }
 0x3f9   : > { %3508 = vrot.lane.b32.xlu1 %v3474_v37, %s7007_s30  ;;  %3494 = vrot.lane.b32.xlu0 %v3439_v43, %s7007_s30 }
 0x3fd   : > { %3500 = vrot.lane.b32.xlu0 %v3456_v26, %s7007_s30 }
 0x401   : > { %3506 = vrot.lane.b32.xlu0 %v3473_v12, %s7007_s30 }
 0x405   : > { %3512 = vrot.lane.b32.xlu0 %v3490_v52, %s7007_s30 }
 0x457   : > { %v3493_v23 = vpop.permute.xlu1 %3492 }
 0x458   : > { %v3529_v1 = vsel %vm7232_vm12, %v3493_v23, %v3528_v59 }
 0x459   : > { %3530 = vst [vmem:[#allocation2] sm:$0xf] %v3529_v1 }
 0x45b   : > { %v3499_v21 = vpop.permute.xlu1 %3498 }
 0x45c   : > { %v3536_v4 = vsel %vm7232_vm12, %v3499_v21, %v3535_v57 }
 0x45d   : > { %3537 = vst [vmem:[#allocation2 + $0xc] sm:$0xf] %v3536_v4 }
 0x45f   : > { %v3505_v2 = vpop.permute.xlu1 %3504 }
 0x460   : > { %v3543_v53 = vsel %vm7232_vm12, %v3505_v2, %v3542_v60  ;;  %v8904_v10 = vld [vmem:[#allocation2] sm:$0xf] }
 0x461   : > { %3544 = vst [vmem:[#allocation2 + $0x18] sm:$0xf] %v3543_v53  ;;  %3832 = vrot.lane.b32.xlu0 %v8904_v10, %s7008_s8  ;;  %v3567_v13 = vshrl.u32 %v8904_v10, 16  ;;  %v4390_v44 = vshll.u32 %v8904_v10, 16  ;;  %v5280_v17 = vld [vmem:[#allocation2] sm:$0xe] }
 0x462   : > { %v6760_v26 = vrot.slane %v5280_v17, 9 }
 0x463   : > { %v3503_v61 = vpop.permute.xlu0 %3502  ;;  %v3511_v45 = vpop.permute.xlu1 %3510  ;;  %v4389_v34 = vrot.slane %v3567_v13, 4  ;;  %v4392_v5 = vrot.slane %v4390_v44, 5 }
 0x464   : > { %v3540_v51 = vsel %vm7241_vm14, %v3503_v61, %v3539_v38  ;;  %v3550_v33 = vsel %vm7232_vm12, %v3511_v45, %v3549_v56  ;;  %v8912_v55 = vld [vmem:[#allocation2 + $0xc] sm:$0xf]  ;;  %vm10720_vm12 = vmmov %vm10693_vm10 }
 0x465   : > { %3541 = vst [vmem:[#allocation2 + $0x14] sm:$0x1] %v3540_v51  ;;  %3551 = vst [vmem:[#allocation2 + $0x24] sm:$0xf] %v3550_v33  ;;  %3836 = vrot.lane.b32.xlu1 %v8912_v55, %s7008_s8  ;;  %v3566_v49 = vpack.i.b16 %v8912_v55, %v8904_v10  ;;  %v3568_v7 = vshrl.u32 %v8912_v55, 16  ;;  %v4410_v3 = vshll.u32 %v8912_v55, 16  ;;  %v4393_v63 = vor.u32 %v4392_v5, %v4389_v34 }
 0x466   : > { %v5281_v37 = vld [vmem:[#allocation2 + $0xc] sm:$0xe] }
 0x467   : > { %v3515_v18 = vpop.permute.xlu0 %3514  ;;  %v3497_v48 = vpop.permute.xlu1 %3496  ;;  %v4409_v11 = vrot.slane %v3568_v7, 4  ;;  %v4412_v36 = vrot.slane %v4410_v3, 5  ;;  %v8948_v16 = vrot.slane %v3566_v49, %v7374_v24  ;;  %v6761_v32 = vrot.slane %v5281_v37, 9 }
 0x468   : > { %v3554_v27 = vsel %vm7241_vm14, %v3515_v18, %v3553_v28  ;;  %v3533_v54 = vsel %vm7241_vm14, %v3497_v48, %v3532_v42  ;;  %v8924_v40 = vld [vmem:[#allocation2 + $0x18] sm:$0xf]  ;;  %v4394_v52 = vrot.slane %v4393_v63, 4 }
 0x469   : > { %3555 = vst [vmem:[#allocation2 + $0x2c] sm:$0x1] %v3554_v27  ;;  %3534 = vst [vmem:[#allocation2 + $0x8] sm:$0x1] %v3533_v54  ;;  %3840 = vrot.lane.b32.xlu0 %v8924_v40, %s7008_s8  ;;  %v3573_v50 = vshrl.u32 %v8924_v40, 16  ;;  %v4430_v0 = vshll.u32 %v8924_v40, 16  ;;  %v4413_v59 = vor.u32 %v4412_v36, %v4409_v11 }
 0x46a   : > { %v8964_v20 = vld [vmem:[#allocation2 + $0x18] sm:$0xe] }
 0x46b   : > { %v3495_v35 = vpop.permute.xlu0 %3494  ;;  %v3509_v25 = vpop.permute.xlu1 %3508  ;;  %v4429_v31 = vrot.slane %v3573_v50, 4  ;;  %v4432_v8 = vrot.slane %v4430_v0, 5  ;;  %v6762_v21 = vrot.slane %v8964_v20, 9  ;;  %v4414_v44 = vrot.slane %v4413_v59, 4 }
 0x46c   : > { %3531 = vst.msk [vmem:[#allocation2 + $0x4] sm:$0xf] %vm475_vm11, %v3495_v35  ;;  %v3547_v62 = vsel %vm7241_vm14, %v3509_v25, %v3546_v22  ;;  %v8936_v6 = vld [vmem:[#allocation2 + $0x24] sm:$0xf]  ;;  %v4385_v1 = vld [vmem:[#allocation2 + $0x14] sm:$0x1]  ;;  %vm10721_vm14 = vmmov %vm10693_vm10 }
 0x46d   : > { %3548 = vst [vmem:[#allocation2 + $0x20] sm:$0x1] %v3547_v62  ;;  %4108 = vrot.lane.b32.xlu0 %v8904_v10, %s7009_s9  ;;  %3844 = vrot.lane.b32.xlu1 %v8936_v6, %s7008_s8  ;;  %v3572_v47 = vpack.i.b16 %v8936_v6, %v8924_v40  ;;  %v3574_v43 = vshrl.u32 %v8936_v6, 16  ;;  %v4450_v9 = vshll.u32 %v8936_v6, 16  ;;  %v8974_v39 = vld [vmem:[#allocation2 + $0x24] sm:$0xe]  ;;  %v4433_v4 = vor.u32 %v4432_v8, %v4429_v31 }
 0x46e   : > { %v6763_v33 = vrot.slane %v8974_v39, 9  ;;  %v5304_v49 = vrot.slane %v4385_v1, 5  ;;  %v4424_v27 = vshll.u32 %v4385_v1, 16 }
 0x46f   : > { %v3501_v29 = vpop.permute.xlu0 %3500  ;;  %v8951_v30 = vrot.slane %v3572_v47, %v7374_v24  ;;  %v4449_v60 = vrot.slane %v3574_v43, 4  ;;  %v4452_v2 = vrot.slane %v4450_v9, 5  ;;  %v4434_v35 = vrot.slane %v4433_v4, 4 }
 0x470   : > { %3538 = vst.msk [vmem:[#allocation2 + $0x10] sm:$0xf] %vm475_vm11, %v3501_v29  ;;  %v8970_v58 = vld [vmem:[#allocation2 + $0x8] sm:$0x1]  ;;  %v9030_v31 = vld [vmem:[#allocation2 + $0x2c] sm:$0x1] }
 0x471   : > { %4116 = vrot.lane.b32.xlu0 %v8924_v40, %s7009_s9  ;;  %4112 = vrot.lane.b32.xlu1 %v8912_v55, %s7009_s9  ;;  %v3604_v41 = vcombine.low %v8948_v16, %v8951_v30  ;;  %v3605_v15 = vcombine.high %v8948_v16, %v8951_v30  ;;  %v5297_v56 = vrot.slane %v8970_v58, 5  ;;  %v4453_v22 = vor.u32 %v4452_v2, %v4449_v60 }
 0x472   : > { %v5318_v4 = vrot.slane %v9030_v31, 5  ;;  %v4426_v2 = vrot.slane %v4424_v27, 5  ;;  %v3569_v16 = vpack.i.b16 %v3568_v7, %v3567_v13 }
 0x473   : > { %v3507_v46 = vpop.permute.xlu0 %3506  ;;  %v8968_v12 = vld [vmem:[#allocation2 + $0x4] sm:$0xf] }
 0x474   : > { %3545 = vst.msk [vmem:[#allocation2 + $0x1c] sm:$0xf] %vm475_vm11, %v3507_v46  ;;  %v5294_v23 = vrot.slane %v8968_v12, 5  ;;  %v4395_v57 = vshll.u32 %v8968_v12, 16  ;;  %v3579_v28 = vshrl.u32 %v8968_v12, 16  ;;  %v3629_v40 = vrot.slane %v3569_v16, %v7374_v24 }
 0x475   : > { %3834 = vrot.lane.b32.xlu0 %v8968_v12, %s7008_s8  ;;  %4120 = vrot.lane.b32.xlu1 %v8936_v6, %s7009_s9 }
 0x476   : > { %v8986_v38 = vsel %vm7268_vm1, %v6760_v26, %v5294_v23  ;;  %v5296_v61 = vrot.slane %v5294_v23, 4  ;;  %v8989_v45 = vrot.slane %v4395_v57, 5  ;;  %v4400_v11 = vrot.slane %v3579_v28, 4 }
 0x477   : > { %v3513_v19 = vpop.permute.xlu0 %3512  ;;  %v8991_v51 = vld [vmem:[#allocation2 + $0x10] sm:$0xf]  ;;  %v5323_v54 = vshrl.u32 %v8986_v38, 16 }
 0x478   : > { %3552 = vst.msk [vmem:[#allocation2 + $0x28] sm:$0xf] %vm475_vm11, %v3513_v19  ;;  %v5301_v18 = vrot.slane %v8991_v51, 5  ;;  %v8999_v42 = vsel %vm7268_vm1, %v5296_v61, %v5297_v56  ;;  %v4415_v48 = vshll.u32 %v8991_v51, 16  ;;  %v9008_v5 = vsel %vm7481_vm4, %v4394_v52, %v8989_v45  ;;  %vm10694_vm11 = vmmov %vm10693_vm10 }
 0x479   : > { %3838 = vrot.lane.b32.xlu1 %v8991_v51, %s7008_s8  ;;  %v3580_v47 = vshrl.u32 %v8991_v51, 16  ;;  %v5335_v17 = vshrl.u32 %v8999_v42, 16  ;;  %v4471_v8 = vshrl.u32 %v9008_v5, 16  ;;  %v4404_v61 = vshll.u32 %v8970_v58, 16 }
 0x47a   : > { %v9012_v25 = vsel %vm7268_vm1, %v6761_v32, %v5301_v18  ;;  %v5303_v3 = vrot.slane %v5301_v18, 4  ;;  %v4417_v62 = vrot.slane %v4415_v48, 5  ;;  %v9042_v32 = vld [vmem:[#allocation2 + $0x20] sm:$0x1]  ;;  %v4454_v48 = vrot.slane %v4453_v22, 4 }
 0x47b   : > { %v9015_v0 = vld [vmem:[#allocation2 + $0x1c] sm:$0xf]  ;;  %v5322_v63 = vpack.i.b16 %v9012_v25, %v8986_v38  ;;  %v5324_v29 = vshrl.u32 %v9012_v25, 16  ;;  %v4420_v1 = vrot.slane %v3580_v47, 4  ;;  %v4401_v27 = vor.u32 %v4400_v11, %v8989_v45 }
 0x47c   : > { %3842 = vrot.lane.b32.xlu0 %v9015_v0, %s7008_s8  ;;  %v5308_v36 = vrot.slane %v9015_v0, 5  ;;  %v9028_v37 = vsel %vm7268_vm1, %v5303_v3, %v5304_v49  ;;  %v9035_v9 = vsel %vm7481_vm4, %v4414_v44, %v4417_v62  ;;  %v4435_v52 = vshll.u32 %v9015_v0, 16 }
 0x47d   : > { %v9037_v26 = vpack.i.b16 %v5324_v29, %v5323_v54  ;;  %v5336_v20 = vshrl.u32 %v9028_v37, 16  ;;  %v5334_v46 = vpack.i.b16 %v9028_v37, %v8999_v42  ;;  %v4470_v23 = vpack.i.b16 %v9035_v9, %v9008_v5 }
 0x47e   : > { %v5310_v59 = vrot.slane %v5308_v36, 4  ;;  %v4472_v39 = vshrl.u32 %v9035_v9, 16  ;;  %v9062_v56 = vsel %vm7268_vm1, %v6762_v21, %v5308_v36  ;;  %v5311_v49 = vrot.slane %v9042_v32, 5 }
 0x47f   : > { %v9050_v57 = vld [vmem:[#allocation2 + $0x28] sm:$0xf]  ;;  %v9053_v60 = vpack.i.b16 %v5336_v20, %v5335_v17  ;;  %v4437_v18 = vrot.slane %v4435_v52, 5  ;;  %v4421_v29 = vor.u32 %v4420_v1, %v4417_v62  ;;  %v5329_v17 = vshrl.u32 %v9062_v56, 16 }
 0x480   : > { %4110 = vrot.lane.b32.xlu0 %v8968_v12, %s7009_s9  ;;  %3846 = vrot.lane.b32.xlu1 %v9050_v57, %s7008_s8  ;;  %v5315_v19 = vrot.slane %v9050_v57, 5  ;;  %v9066_v44 = vpack.i.b16 %v4472_v39, %v4471_v8  ;;  %v4455_v58 = vshll.u32 %v9050_v57, 16  ;;  %v9076_v21 = vsel %vm7268_vm1, %v5310_v59, %v5311_v49 }
 0x481   : > { %v4422_v62 = vrot.slane %v4421_v29, 4  ;;  %v3586_v11 = vshrl.u32 %v9050_v57, 16  ;;  %v5341_v59 = vshrl.u32 %v9076_v21, 16  ;;  %v4406_v39 = vrot.slane %v4404_v61, 5 }
 0x482   : > { %v9072_v54 = vsel %vm7268_vm1, %v6763_v33, %v5315_v19  ;;  %v5317_v3 = vrot.slane %v5315_v19, 4  ;;  %v4457_v8 = vrot.slane %v4455_v58, 5  ;;  %v9092_v33 = vsel %vm7481_vm4, %v4434_v35, %v4437_v18 }
 0x483   : > { %v5328_v36 = vpack.i.b16 %v9072_v54, %v9062_v56  ;;  %v5330_v22 = vshrl.u32 %v9072_v54, 16  ;;  %v9103_v53 = vsel %vm7481_vm4, %v4422_v62, %v4426_v2  ;;  %v4460_v35 = vrot.slane %v3586_v11, 4 }
 0x484   : > { %4118 = vrot.lane.b32.xlu0 %v9015_v0, %s7009_s9  ;;  %4114 = vrot.lane.b32.xlu1 %v8991_v51, %s7009_s9  ;;  %v9088_v45 = vsel %vm7268_vm1, %v5317_v3, %v5318_v4  ;;  %v9099_v1 = vsel %vm7481_vm4, %v4454_v48, %v4457_v8  ;;  %v4402_v4 = vrot.slane %v4401_v27, 4  ;;  %v4477_v49 = vshrl.u32 %v9092_v33, 16 }
 0x485   : > { %v5331_v20 = vpack.i.b16 %v5330_v22, %v5329_v17  ;;  %v5342_v52 = vshrl.u32 %v9088_v45, 16  ;;  %v4476_v58 = vpack.i.b16 %v9099_v1, %v9092_v33  ;;  %v4464_v61 = vshll.u32 %v9030_v31, 16 }
 0x486   : > { %v4478_v2 = vshrl.u32 %v9099_v1, 16  ;;  %v4484_v48 = vshrl.u32 %v9103_v53, 16  ;;  %v4461_v3 = vor.u32 %v4460_v35, %v4457_v8  ;;  %v9119_v27 = vsel %vm7481_vm4, %v4402_v4, %v4406_v39 }
 0x487   : > { %v5343_v19 = vpack.i.b16 %v5342_v52, %v5341_v59  ;;  %v4483_v31 = vshrl.u32 %v9119_v27, 16  ;;  %v3585_v62 = vshrl.u32 %v9015_v0, 16  ;;  %v3578_v52 = vpack.i.b16 %v8991_v51, %v8968_v12 }
 0x488   : > { %5580 = vrot.lane.b32.xlu0 %v8986_v38, %s7008_s8  ;;  %4122 = vrot.lane.b32.xlu1 %v9050_v57, %s7009_s9  ;;  %v4479_v17 = vpack.i.b16 %v4478_v2, %v4477_v49  ;;  %v4462_v22 = vrot.slane %v4461_v3, 4  ;;  %v3584_v8 = vpack.i.b16 %v9050_v57, %v9015_v0  ;;  %v4466_v39 = vrot.slane %v4464_v61, 5 }
 0x489   : > { %v4485_v59 = vpack.i.b16 %v4484_v48, %v4483_v31  ;;  %v4440_v35 = vrot.slane %v3585_v62, 4  ;;  %v4444_v4 = vshll.u32 %v9042_v32, 16  ;;  %v9137_v49 = vrot.slane %v5328_v36, %v7374_v24 }
 0x48a   : > { %v9140_v2 = vrot.slane %v3578_v52, %v7374_v24  ;;  %v9143_v48 = vrot.slane %v3584_v8, %v7374_v24  ;;  %v5340_v3 = vpack.i.b16 %v9088_v45, %v9076_v21  ;;  %v9149_v61 = vsel %vm7481_vm4, %v4462_v22, %v4466_v39 }
 0x48b   : > { %v4441_v31 = vor.u32 %v4440_v35, %v4437_v18  ;;  %v9155_v32 = vrot.slane %v5322_v63, %v7374_v24  ;;  %v4446_v18 = vrot.slane %v4444_v4, 5  ;;  %v4490_v8 = vshrl.u32 %v9149_v61, 16 }
 0x48c   : > { %5588 = vrot.lane.b32.xlu0 %v9062_v56, %s7008_s8  ;;  %5584 = vrot.lane.b32.xlu1 %v9012_v25, %s7008_s8  ;;  %v3673_v36 = vcombine.high %v9140_v2, %v9143_v48  ;;  %v3672_v52 = vcombine.low %v9140_v2, %v9143_v48  ;;  %v9169_v39 = vrot.slane %v5340_v3, %v7374_v24 }
 0x48d   : > { %v4442_v22 = vrot.slane %v4441_v31, 4  ;;  %v5360_v63 = vcombine.low %v9155_v32, %v9137_v49  ;;  %v9187_v4 = vrot.slane %v5334_v46, %v7374_v24  ;;  %v9190_v34 = vrot.slane %v5343_v19, %v7374_v24 }
 0x48e   : > { %v9196_v31 = vrot.slane %v9037_v26, %v7374_v24  ;;  %v9205_v46 = vrot.slane %v4476_v58, %v7374_v24  ;;  %v3687_v10 = vrot.slane %v3673_v36, %v7578_v14  ;;  %v3587_v13 = vpack.i.b16 %v3586_v11, %v3585_v62 }
 0x48f   : > { %v9173_v35 = vsel %vm7481_vm4, %v4442_v22, %v4446_v18  ;;  %v9202_v22 = vrot.slane %v9053_v60, %v7374_v24  ;;  %v5429_v26 = vcombine.high %v9187_v4, %v9169_v39  ;;  %v9219_v60 = vrot.slane %v4470_v23, %v7374_v24 }
 0x490   : > { %5856 = vrot.lane.b32.xlu0 %v8986_v38, %s7009_s9  ;;  %5592 = vrot.lane.b32.xlu1 %v9072_v54, %s7008_s8  ;;  %v4489_v29 = vshrl.u32 %v9173_v35, 16  ;;  %v9177_v38 = vrot.slane %v5331_v20, %v7374_v24  ;;  %v5361_v20 = vcombine.high %v9155_v32, %v9137_v49  ;;  %v9228_v18 = vrot.slane %v4479_v17, %v7374_v24 }
 0x491   : > { %v4509_v19 = vcombine.high %v9219_v60, %v9205_v46  ;;  %v9240_v23 = vrot.slane %v9066_v44, %v7374_v24  ;;  %v6686_v7 = vcombine.low %v3687_v10, %v3687_v10  ;;  %v3581_v6 = vpack.i.b16 %v3580_v47, %v3579_v28 }
 0x492   : > { %v4491_v3 = vpack.i.b16 %v4490_v8, %v4489_v29  ;;  %v5395_v58 = vcombine.high %v9196_v31, %v9177_v38  ;;  %v9340_v0 = vrot.slane %v3672_v52, %v7578_v14  ;;  %v6906_v11 = vcombine.high %v3687_v10, %v3687_v10 }
 0x493   : > { %v4542_v17 = vcombine.low %v9240_v23, %v9228_v18  ;;  %v4543_v8 = vcombine.high %v9240_v23, %v9228_v18  ;;  %v3697_v12 = vrot.slane %v3581_v6, %v7374_v24  ;;  %v9360_v48 = vrot.slane %v5360_v63, %v7578_v14 }
 0x494   : > { %5860 = vrot.lane.b32.xlu0 %v9012_v25, %s7009_s9  ;;  %5586 = vrot.lane.b32.xlu1 %v9028_v37, %s7008_s8  ;;  %v5428_v25 = vcombine.low %v9187_v4, %v9169_v39  ;;  %v9243_v29 = vrot.slane %v4491_v3, %v7374_v24  ;;  %10632 = vst [vmem:[#allocation23_spill] sm:$0xff] %v9340_v0 }
 0x495   : > { %v6904_v28 = vcombine.high %v9340_v0, %v9340_v0  ;;  %10633 = vst [vmem:[#allocation24_spill] sm:$0xff] %v9360_v48  ;;  %v5375_v63 = vrot.slane %v5361_v20, %v7578_v14 }
 0x497   : > { %v6950_v10 = vcombine.high %v5375_v63, %v5375_v63  ;;  %v6767_v6 = vcombine.low %v5375_v63, %v5375_v63 }
 0x498   : > { %5864 = vrot.lane.b32.xlu0 %v9062_v56, %s7009_s9  ;;  %5594 = vrot.lane.b32.xlu1 %v9088_v45, %s7008_s8  ;;  %v5462_v56 = vcombine.low %v9202_v22, %v9190_v34 }
 0x49c   : > { %5868 = vrot.lane.b32.xlu0 %v9072_v54, %s7009_s9  ;;  %5858 = vrot.lane.b32.xlu1 %v8999_v42, %s7009_s9  ;;  %v9254_v54 = vrot.slane %v4485_v59, %v7374_v24 }
 0x49e   : > { %v4610_v44 = vcombine.low %v9254_v54, %v9243_v29  ;;  %v4611_v3 = vcombine.high %v9254_v54, %v9243_v29 }
 0x4a0   : > { %5862 = vrot.lane.b32.xlu1 %v9028_v37, %s7009_s9  ;;  %5582 = vrot.lane.b32.xlu0 %v8999_v42, %s7008_s8  ;;  %v9280_v42 = vrot.slane %v3604_v41, %v7578_v14 }
 0x4a2   : > { %10631 = vst [vmem:[#allocation28_spill] sm:$0xff] %v9280_v42  ;;  %v6900_v37 = vcombine.high %v9280_v42, %v9280_v42 }
 0x4a4   : > { %5866 = vrot.lane.b32.xlu1 %v9076_v21, %s7009_s9  ;;  %5590 = vrot.lane.b32.xlu0 %v9076_v21, %s7008_s8  ;;  %v3705_v21 = vrot.slane %v3587_v13, %v7374_v24 }
 0x4a6   : > { %v3707_v36 = vcombine.high %v3697_v12, %v3705_v21 }
 0x4a8   : > { %5870 = vrot.lane.b32.xlu1 %v9088_v45, %s7009_s9  ;;  %5004 = vrot.lane.b32.xlu0 %v9008_v5, %s7009_s9  ;;  %v3706_v45 = vcombine.low %v3697_v12, %v3705_v21  ;;  %v5409_v12 = vrot.slane %v5395_v58, %v7578_v14 }
 0x4ac   : > { %5008 = vrot.lane.b32.xlu1 %v9035_v9, %s7009_s9  ;;  %5012 = vrot.lane.b32.xlu0 %v9092_v33, %s7009_s9 }
 0x4b0   : > { %5016 = vrot.lane.b32.xlu1 %v9099_v1, %s7009_s9  ;;  %4728 = vrot.lane.b32.xlu0 %v9008_v5, %s7008_s8  ;;  %v3619_v5 = vrot.slane %v3605_v15, %v7578_v14 }
 0x4b2   : > { %v6679_v41 = vcombine.low %v3619_v5, %v3619_v5 }
 0x4b4   : > { %4732 = vrot.lane.b32.xlu1 %v9035_v9, %s7008_s8  ;;  %4736 = vrot.lane.b32.xlu0 %v9092_v33, %s7008_s8  ;;  %v3575_v9 = vpack.i.b16 %v3574_v43, %v3573_v50  ;;  %v6902_v43 = vcombine.high %v3619_v5, %v3619_v5 }
 0x4b6   : > { %v3637_v30 = vrot.slane %v3575_v9, %v7374_v24  ;;  %v3721_v9 = vrot.slane %v3707_v36, %v7578_v14 }
 0x4b8   : > { %4740 = vrot.lane.b32.xlu1 %v9099_v1, %s7008_s8  ;;  %3732 = vrot.lane.b32.xlu0 %v6900_v37, %s7012_s10  ;;  %v3638_v55 = vcombine.low %v3629_v40, %v3637_v30  ;;  %v3639_v57 = vcombine.high %v3629_v40, %v3637_v30  ;;  %v3714_v1 = vrot.slane %v3706_v45, %v7578_v14 }
 0x4b9   : > { %v6687_v40 = vcombine.low %v3721_v9, %v3721_v9  ;;  %v6907_v32 = vcombine.high %v3721_v9, %v3721_v9  ;;  %v6951_v45 = vcombine.high %v5409_v12, %v5409_v12 }
 0x4ba   : > { %v3646_v50 = vrot.slane %v3638_v55, %v7578_v14  ;;  %v3653_v47 = vrot.slane %v3639_v57, %v7578_v14  ;;  %v6683_v2 = vcombine.low %v3714_v1, %v3714_v1  ;;  %v6905_v5 = vcombine.high %v3714_v1, %v3714_v1 }
 0x4bb   : > { %v9385_v55 = vrot.slane %v5428_v25, %v7578_v14 }
 0x4bc   : > { %5010 = vrot.lane.b32.xlu1 %v9103_v53, %s7009_s9  ;;  %3742 = vrot.lane.b32.xlu0 %v6679_v41, %s7014_s12  ;;  %v6676_v15 = vcombine.low %v3646_v50, %v3646_v50  ;;  %v6901_v51 = vcombine.high %v3646_v50, %v3646_v50  ;;  %v6680_v33 = vcombine.low %v3653_v47, %v3653_v47 }
 0x4bd   : > { %v6903_v59 = vcombine.high %v3653_v47, %v3653_v47  ;;  %v6948_v41 = vcombine.high %v9360_v48, %v9360_v48  ;;  %10634 = vst [vmem:[#allocation26_spill] sm:$0xff] %v9385_v55  ;;  %v6952_v20 = vcombine.high %v9385_v55, %v9385_v55 }
 0x4c0   : > { %5018 = vrot.lane.b32.xlu1 %v9149_v61, %s7009_s9  ;;  %5006 = vrot.lane.b32.xlu0 %v9119_v27, %s7009_s9 }
 0x4c4   : > { %4734 = vrot.lane.b32.xlu1 %v9103_v53, %s7008_s8  ;;  %5014 = vrot.lane.b32.xlu0 %v9173_v35, %s7009_s9 }
 0x4c8   : > { %4742 = vrot.lane.b32.xlu1 %v9149_v61, %s7008_s8  ;;  %4730 = vrot.lane.b32.xlu0 %v9119_v27, %s7008_s8 }
 0x4cc   : > { %3777 = vrot.lane.b32.xlu1 %v6686_v7, %s7014_s12  ;;  %4738 = vrot.lane.b32.xlu0 %v9173_v35, %s7008_s8  ;;  %v5443_v7 = vrot.slane %v5429_v26, %v7578_v14  ;;  %s6811_s8 = sshll.u32 %s10723_s25, 3 }
 0x4ce   : > { %v6774_v57 = vcombine.low %v5443_v7, %v5443_v7  ;;  %v6954_v21 = vcombine.high %v5443_v7, %v5443_v7 }
 0x4d0   : > { %3727 = vrot.lane.b32.xlu1 %v6676_v15, %s7016_s14  ;;  %3752 = vrot.lane.b32.xlu0 %v6902_v43, %s7017_s15  ;;  %v10635_v43 = vcombine.low %v9196_v31, %v9177_v38  ;;  %v4488_v38 = vpack.i.b16 %v9149_v61, %v9173_v35 }
 0x4d2   : > { %v5402_v15 = vrot.slane %v10635_v43, %v7578_v14 }
 0x4d3   : > { %v9352_v62 = vpop.permute.xlu0 %3832 }
 0x4d4   : > { %3737 = vrot.lane.b32.xlu1 %v6901_v51, %s7013_s11  ;;  %3767 = vrot.lane.b32.xlu0 %v6904_v28, %s7012_s10  ;;  %v6764_v26 = vcombine.low %v5402_v15, %v5402_v15  ;;  %v6949_v47 = vcombine.high %v5402_v15, %v5402_v15 }
 0x4d7   : > { %v9362_v52 = vpop.permute.xlu1 %3836 }
 0x4d8   : > { %3747 = vrot.lane.b32.xlu1 %v6680_v33, %s7015_s13  ;;  %3787 = vrot.lane.b32.xlu0 %v6906_v11, %s7017_s15  ;;  %v5470_v33 = vrot.slane %v5462_v56, %v7578_v14  ;;  %v6768_v11 = vcombine.low %v5409_v12, %v5409_v12  ;;  %v4575_v56 = vrot.slane %v4488_v38, %v7374_v24 }
 0x4d9   : > { %v4550_v12 = vrot.slane %v4542_v17, %v7578_v14  ;;  %v3850_v17 = vpack.i.b16 %v9362_v52, %v9352_v62 }
 0x4da   : > { %v6771_v1 = vcombine.low %v5470_v33, %v5470_v33  ;;  %v6953_v35 = vcombine.high %v5470_v33, %v5470_v33 }
 0x4db   : > { %v9364_v37 = vpop.permute.xlu0 %3840 }
 0x4dc   : > { %3757 = vrot.lane.b32.xlu1 %v6903_v59, %s7018_s16  ;;  %3762 = vrot.lane.b32.xlu0 %v6683_v2, %s7016_s14  ;;  %v10636_v59 = vcombine.high %v9202_v22, %v9190_v34  ;;  %v10638_v34 = vpack.i.b16 %v9103_v53, %v9119_v27 }
 0x4de   : > { %v5477_v2 = vrot.slane %v10636_v59, %v7578_v14  ;;  %v4567_v22 = vrot.slane %v10638_v34, %v7374_v24 }
 0x4df   : > { %v9375_v16 = vpop.permute.xlu0 %4108  ;;  %v9377_v30 = vpop.permute.xlu1 %3844 }
 0x4e0   : > { %3772 = vrot.lane.b32.xlu1 %v6905_v5, %s7013_s11  ;;  %5488 = vrot.lane.b32.xlu0 %v6948_v41, %s7012_s10  ;;  %v6775_v5 = vcombine.low %v5477_v2, %v5477_v2  ;;  %v10637_v41 = vcombine.low %v9219_v60, %v9205_v46  ;;  %v4576_v53 = vcombine.low %v4567_v22, %v4575_v56 }
 0x4e1   : > { %v3856_v38 = vpack.i.b16 %v9377_v30, %v9364_v37 }
 0x4e2   : > { %v9452_v9 = vrot.slane %v10637_v41, %v7578_v14  ;;  %v9478_v46 = vrot.slane %v4576_v53, %v7578_v14 }
 0x4e3   : > { %v9387_v13 = vpop.permute.xlu1 %4112  ;;  %v9389_v49 = vpop.permute.xlu0 %4116  ;;  %v3887_v18 = vrot.slane %v3856_v38, %v7374_v24 }
 0x4e4   : > { %3782 = vrot.lane.b32.xlu1 %v6687_v40, %s7015_s13  ;;  %5508 = vrot.lane.b32.xlu0 %v6950_v10, %s7017_s15  ;;  %v6955_v10 = vcombine.high %v5477_v2, %v5477_v2  ;;  %v6924_v7 = vcombine.high %v9452_v9, %v9452_v9  ;;  %v4126_v41 = vpack.i.b16 %v9387_v13, %v9375_v16 }
 0x4e7   : > { %v9399_v50 = vpop.permute.xlu1 %4120  ;;  %v9403_v25 = vpop.permute.xlu0 %3834 }
 0x4e8   : > { %3792 = vrot.lane.b32.xlu1 %v6907_v32, %s7018_s16  ;;  %5523 = vrot.lane.b32.xlu0 %v6952_v20, %s7012_s10  ;;  %v4523_v32 = vrot.slane %v4509_v19, %v7578_v14  ;;  %v4577_v20 = vcombine.high %v4567_v22, %v4575_v56  ;;  %v6718_v56 = vcombine.low %v4550_v12, %v4550_v12 }
 0x4ea   : > { %v6926_v43 = vcombine.high %v4523_v32, %v4523_v32  ;;  %v4591_v15 = vrot.slane %v4577_v20, %v7578_v14 }
 0x4eb   : > { %v9411_v39 = vpop.permute.xlu1 %3838 }
 0x4ec   : > { %5498 = vrot.lane.b32.xlu1 %v6767_v6, %s7014_s12  ;;  %5533 = vrot.lane.b32.xlu0 %v6774_v57, %s7014_s12  ;;  %v6721_v57 = vcombine.low %v4523_v32, %v4523_v32  ;;  %v6930_v33 = vcombine.high %v4591_v15, %v4591_v15 }
 0x4ee   : > { %v9413_v4 = vpop.permute.xlu0 %3842 }
 0x4f0   : > { %5483 = vrot.lane.b32.xlu1 %v6764_v26, %s7016_s14  ;;  %5543 = vrot.lane.b32.xlu0 %v6954_v21, %s7017_s15  ;;  %v6728_v26 = vcombine.low %v4591_v15, %v4591_v15  ;;  %v6928_v21 = vcombine.high %v9478_v46, %v9478_v46 }
 0x4f2   : > { %v9421_v51 = vpop.permute.xlu0 %4110  ;;  %v9423_v28 = vpop.permute.xlu1 %3846 }
 0x4f4   : > { %5493 = vrot.lane.b32.xlu1 %v6949_v47, %s7013_s11  ;;  %5513 = vrot.lane.b32.xlu0 %v6951_v45, %s7018_s16 }
 0x4f6   : > { %v9433_v31 = vpop.permute.xlu0 %4118  ;;  %v9435_v58 = vpop.permute.xlu1 %4114 }
 0x4f7   : > { %v4138_v54 = vpack.i.b16 %v9435_v58, %v9421_v51 }
 0x4f8   : > { %5503 = vrot.lane.b32.xlu1 %v6768_v11, %s7015_s13  ;;  %5518 = vrot.lane.b32.xlu0 %v6771_v1, %s7016_s14  ;;  %v6925_v11 = vcombine.high %v4550_v12, %v4550_v12  ;;  %v4557_v1 = vrot.slane %v4543_v8, %v7578_v14  ;;  %v4132_v8 = vpack.i.b16 %v9399_v50, %v9389_v49 }
 0x4fa   : > { %v9444_v36 = vpop.permute.xlu0 %5580  ;;  %v9446_v61 = vpop.permute.xlu1 %4122  ;;  %v6722_v23 = vcombine.low %v4557_v1, %v4557_v1  ;;  %v4163_v32 = vrot.slane %v4132_v8, %v7374_v24  ;;  %v6927_v20 = vcombine.high %v4557_v1, %v4557_v1 }
 0x4fb   : > { %v4144_v15 = vpack.i.b16 %v9446_v61, %v9433_v31 }
 0x4fc   : > { %5528 = vrot.lane.b32.xlu1 %v6953_v35, %s7013_s11  ;;  %5538 = vrot.lane.b32.xlu0 %v6775_v5, %s7015_s13  ;;  %v4618_v35 = vrot.slane %v4610_v44, %v7578_v14  ;;  %v3879_v5 = vrot.slane %v3850_v17, %v7374_v24  ;;  %v3868_v17 = vpack.i.b16 %v9423_v28, %v9413_v4 }
 0x4fe   : > { %v9460_v63 = vpop.permute.xlu0 %5588  ;;  %v9462_v40 = vpop.permute.xlu1 %5584  ;;  %v6725_v44 = vcombine.low %v4618_v35, %v4618_v35  ;;  %v3888_v53 = vcombine.low %v3879_v5, %v3887_v18 }
 0x500   : > { %5548 = vrot.lane.b32.xlu1 %v6955_v10, %s7018_s16  ;;  %4636 = vrot.lane.b32.xlu0 %v6924_v7, %s7012_s10  ;;  %v3889_v10 = vcombine.high %v3879_v5, %v3887_v18  ;;  %v4625_v7 = vrot.slane %v4611_v3, %v7578_v14 }
 0x502   : > { %v9472_v27 = vpop.permute.xlu0 %5856  ;;  %v9474_v6 = vpop.permute.xlu1 %5592  ;;  %v3903_v29 = vrot.slane %v3889_v10, %v7578_v14  ;;  %v6729_v38 = vcombine.low %v4625_v7, %v4625_v7 }
 0x504   : > { %4656 = vrot.lane.b32.xlu1 %v6926_v43, %s7017_s15  ;;  %4646 = vrot.lane.b32.xlu0 %v6721_v57, %s7014_s12  ;;  %v4155_v43 = vrot.slane %v4126_v41, %v7374_v24  ;;  %v6693_v5 = vcombine.low %v3903_v29, %v3903_v29 }
 0x506   : > { %v9482_v19 = vpop.permute.xlu0 %5860  ;;  %v9484_v60 = vpop.permute.xlu1 %5586  ;;  %v4165_v12 = vcombine.high %v4155_v43, %v4163_v32  ;;  %v4164_v1 = vcombine.low %v4155_v43, %v4163_v32  ;;  %v3955_v43 = vrot.slane %v3868_v17, %v7374_v24 }
 0x508   : > { %4681 = vrot.lane.b32.xlu1 %v6728_v26, %s7014_s12  ;;  %4671 = vrot.lane.b32.xlu0 %v6928_v21, %s7012_s10  ;;  %v6929_v21 = vcombine.high %v4618_v35, %v4618_v35  ;;  %v4179_v41 = vrot.slane %v4165_v12, %v7578_v14 }
 0x50a   : > { %v9494_v47 = vpop.permute.xlu0 %5864  ;;  %v9496_v45 = vpop.permute.xlu1 %5594 }
 0x50c   : > { %4691 = vrot.lane.b32.xlu1 %v6930_v33, %s7017_s15  ;;  %4641 = vrot.lane.b32.xlu0 %v6925_v11, %s7013_s11  ;;  %v6931_v33 = vcombine.high %v4625_v7, %v4625_v7  ;;  %v9549_v11 = vrot.slane %v3888_v53, %v7578_v14  ;;  %v3858_v7 = vshrl.u32 %v9377_v30, 16  ;;  %v3857_v30 = vshrl.u32 %v9364_v37, 16 }
 0x50d   : > { %v4127_v37 = vshrl.u32 %v9375_v16, 16 }
 0x50e   : > { %v9508_v59 = vpop.permute.xlu0 %5868  ;;  %v9510_v2 = vpop.permute.xlu1 %5858  ;;  %v6908_v53 = vcombine.high %v9549_v11, %v9549_v11 }
 0x50f   : > { %v5887_v35 = vshrl.u32 %v9510_v2, 16 }
 0x510   : > { %4631 = vrot.lane.b32.xlu1 %v6718_v56, %s7016_s14  ;;  %4651 = vrot.lane.b32.xlu0 %v6722_v23, %s7015_s13  ;;  %v9554_v56 = vrot.slane %v4144_v15, %v7374_v24  ;;  %v3862_v23 = vpack.i.b16 %v9411_v39, %v9403_v25 }
 0x512   : > { %v9524_v34 = vpop.permute.xlu0 %5582  ;;  %v9526_v22 = vpop.permute.xlu1 %5862 }
 0x513   : > { %v5888_v3 = vshrl.u32 %v9526_v22, 16 }
 0x514   : > { %4666 = vrot.lane.b32.xlu1 %v6725_v44, %s7016_s14  ;;  %4661 = vrot.lane.b32.xlu0 %v6927_v20, %s7018_s16  ;;  %v4223_v44 = vrot.slane %v4138_v54, %v7374_v24  ;;  %v9579_v54 = vrot.slane %v4164_v1, %v7578_v14  ;;  %v4134_v1 = vshrl.u32 %v9399_v50, 16  ;;  %v4133_v50 = vshrl.u32 %v9389_v49, 16 }
 0x515   : > { %v5889_v10 = vpack.i.b16 %v5888_v3, %v5887_v35  ;;  %v3852_v3 = vshrl.u32 %v9362_v52, 16  ;;  %v3947_v35 = vrot.slane %v3862_v23, %v7374_v24 }
 0x516   : > { %v9538_v57 = vpop.permute.xlu0 %5590  ;;  %v9540_v26 = vpop.permute.xlu1 %5866  ;;  %v4233_v15 = vcombine.high %v4223_v44, %v9554_v56  ;;  %v4135_v48 = vpack.i.b16 %v4134_v1, %v4133_v50 }
 0x517   : > { %v5893_v32 = vshrl.u32 %v9540_v26, 16  ;;  %v3957_v52 = vcombine.high %v3947_v35, %v3955_v43 }
 0x518   : > { %4676 = vrot.lane.b32.xlu1 %v6929_v21, %s7013_s11  ;;  %4696 = vrot.lane.b32.xlu0 %v6931_v33, %s7018_s16 }
 0x51a   : > { %v9557_v18 = vpop.permute.xlu0 %5004  ;;  %v9559_v8 = vpop.permute.xlu1 %5870 }
 0x51b   : > { %v5894_v20 = vshrl.u32 %v9559_v8, 16 }
 0x51c   : > { %4686 = vrot.lane.b32.xlu1 %v6729_v38, %s7015_s13  ;;  %4026 = vrot.lane.b32.xlu0 %v6693_v5, %s7014_s12  ;;  %v6707_v38 = vcombine.low %v4179_v41, %v4179_v41  ;;  %v9585_v5 = vrot.slane %v5889_v10, %v7374_v24 }
 0x51d   : > { %v5895_v21 = vpack.i.b16 %v5894_v20, %v5893_v32  ;;  %v3851_v32 = vshrl.u32 %v9352_v62, 16  ;;  %v3859_v20 = vpack.i.b16 %v3858_v7, %v3857_v30  ;;  %v3956_v62 = vcombine.low %v3947_v35, %v3955_v43 }
 0x51e   : > { %v9574_v12 = vpop.permute.xlu0 %5012  ;;  %v9576_v33 = vpop.permute.xlu1 %5008  ;;  %v6910_v7 = vcombine.high %v3903_v29, %v3903_v29  ;;  %v4128_v30 = vshrl.u32 %v9387_v13, 16  ;;  %v3971_v29 = vrot.slane %v3957_v52, %v7578_v14  ;;  %v4232_v13 = vcombine.low %v4223_v44, %v9554_v56 }
 0x51f   : > { %v9588_v17 = vrot.slane %v5895_v21, %v7374_v24  ;;  %v6916_v21 = vcombine.high %v9579_v54, %v9579_v54  ;;  %v3853_v55 = vpack.i.b16 %v3852_v3, %v3851_v32  ;;  %v6918_v43 = vcombine.high %v4179_v41, %v4179_v41 }
 0x520   : > { %4016 = vrot.lane.b32.xlu1 %v6908_v53, %s7012_s10  ;;  %4302 = vrot.lane.b32.xlu0 %v6707_v38, %s7014_s12  ;;  %v4247_v53 = vrot.slane %v4233_v15, %v7578_v14  ;;  %v3921_v38 = vrot.slane %v3859_v20, %v7374_v24  ;;  %v9617_v3 = vrot.slane %v3956_v62, %v7578_v14 }
 0x521   : > { %v3913_v49 = vrot.slane %v3853_v55, %v7374_v24  ;;  %v4129_v35 = vpack.i.b16 %v4128_v30, %v4127_v37  ;;  %v4197_v32 = vrot.slane %v4135_v48, %v7374_v24  ;;  %v6914_v52 = vcombine.high %v3971_v29, %v3971_v29 }
 0x522   : > { %v9596_v23 = vpop.permute.xlu0 %4728  ;;  %v9598_v10 = vpop.permute.xlu1 %5016  ;;  %v6714_v15 = vcombine.low %v4247_v53, %v4247_v53  ;;  %v6912_v55 = vcombine.high %v9617_v3, %v9617_v3  ;;  %v9629_v56 = vrot.slane %v4232_v13, %v7578_v14  ;;  %v4146_v37 = vshrl.u32 %v9446_v61, 16 }
 0x523   : > { %v3922_v16 = vcombine.low %v3913_v49, %v3921_v38  ;;  %v4189_v41 = vrot.slane %v4129_v35, %v7374_v24  ;;  %v4145_v30 = vshrl.u32 %v9433_v31, 16  ;;  %v3870_v61 = vshrl.u32 %v9423_v28, 16 }
 0x524   : > { %4292 = vrot.lane.b32.xlu1 %v6916_v21, %s7012_s10  ;;  %4036 = vrot.lane.b32.xlu0 %v6910_v7, %s7017_s15  ;;  %10639 = vst [vmem:[#allocation21_spill] sm:$0xff] %v9629_v56  ;;  %v6922_v7 = vcombine.high %v4247_v53, %v4247_v53  ;;  %v6920_v50 = vcombine.high %v9629_v56, %v9629_v56 }
 0x525   : > { %v3930_v44 = vrot.slane %v3922_v16, %v7578_v14  ;;  %v4198_v48 = vcombine.low %v4189_v41, %v4197_v32  ;;  %v4147_v35 = vpack.i.b16 %v4146_v37, %v4145_v30  ;;  %v6700_v31 = vcombine.low %v3971_v29, %v3971_v29 }
 0x526   : > { %v9609_v0 = vpop.permute.xlu0 %4736  ;;  %v9611_v42 = vpop.permute.xlu1 %4732  ;;  %v4199_v29 = vcombine.high %v4189_v41, %v4197_v32 }
 0x527   : > { %v6690_v13 = vcombine.low %v3930_v44, %v3930_v44  ;;  %v4265_v37 = vrot.slane %v4147_v35, %v7374_v24 }
 0x528   : > { %4337 = vrot.lane.b32.xlu1 %v6714_v15, %s7014_s12  ;;  %4312 = vrot.lane.b32.xlu0 %v6918_v43, %s7017_s15  ;;  %v4140_v15 = vshrl.u32 %v9435_v58, 16  ;;  %v4139_v43 = vshrl.u32 %v9421_v51, 16  ;;  %v3864_v58 = vshrl.u32 %v9411_v39, 16  ;;  %v3863_v51 = vshrl.u32 %v9403_v25, 16 }
 0x529   : > { %v4213_v32 = vrot.slane %v4199_v29, %v7578_v14 }
 0x52a   : > { %v9622_v20 = vpop.permute.xlu0 %3732  ;;  %v9624_v1 = vpop.permute.xlu1 %4740  ;;  %v4141_v56 = vpack.i.b16 %v4140_v15, %v4139_v43 }
 0x52c   : > { %4071 = vrot.lane.b32.xlu1 %v6914_v52, %s7017_s15  ;;  %4051 = vrot.lane.b32.xlu0 %v6912_v55, %s7012_s10  ;;  %v4206_v52 = vrot.slane %v4198_v48, %v7578_v14  ;;  %v3923_v55 = vcombine.high %v3913_v49, %v3921_v38  ;;  %v4257_v48 = vrot.slane %v4141_v56, %v7374_v24 }
 0x52e   : > { %v9636_v21 = vpop.permute.xlu0 %3742  ;;  %v9638_v62 = vpop.permute.xlu1 %5010  ;;  %v6704_v38 = vcombine.low %v4206_v52, %v4206_v52  ;;  %v6917_v49 = vcombine.high %v4206_v52, %v4206_v52  ;;  %v3937_v39 = vrot.slane %v3923_v55, %v7578_v14  ;;  %v4266_v15 = vcombine.low %v4257_v48, %v4265_v37 }
 0x52f   : > { %v4267_v29 = vcombine.high %v4257_v48, %v4265_v37  ;;  %v5604_v37 = vpack.i.b16 %v9474_v6, %v9460_v63 }
 0x530   : > { %4347 = vrot.lane.b32.xlu1 %v6922_v7, %s7017_s15  ;;  %4327 = vrot.lane.b32.xlu0 %v6920_v50, %s7012_s10  ;;  %v3869_v7 = vshrl.u32 %v9413_v4, 16  ;;  %v3865_v4 = vpack.i.b16 %v3864_v58, %v3863_v51  ;;  %v6694_v35 = vcombine.low %v3937_v39, %v3937_v39  ;;  %v4274_v58 = vrot.slane %v4266_v15, %v7578_v14 }
 0x531   : > { %v6708_v51 = vcombine.low %v4213_v32, %v4213_v32 }
 0x532   : > { %v9648_v16 = vpop.permute.xlu0 %5006  ;;  %v9650_v53 = vpop.permute.xlu1 %5018  ;;  %v3871_v28 = vpack.i.b16 %v3870_v61, %v3869_v7  ;;  %v6909_v61 = vcombine.high %v3930_v44, %v3930_v44  ;;  %v3981_v41 = vrot.slane %v3865_v4, %v7374_v24  ;;  %v5606_v44 = vshrl.u32 %v9474_v6, 16 }
 0x533   : > { %v5610_v6 = vpack.i.b16 %v9484_v60, %v9524_v34 }
 0x534   : > { %4011 = vrot.lane.b32.xlu1 %v6690_v13, %s7016_s14  ;;  %4061 = vrot.lane.b32.xlu0 %v6700_v31, %s7014_s12  ;;  %v3989_v25 = vrot.slane %v3871_v28, %v7374_v24  ;;  %v6911_v31 = vcombine.high %v3937_v39, %v3937_v39  ;;  %v5605_v28 = vshrl.u32 %v9460_v63, 16  ;;  %v6711_v39 = vcombine.low %v4274_v58, %v4274_v58 }
 0x536   : > { %v9659_v50 = vpop.permute.xlu0 %5014  ;;  %v9661_v30 = vpop.permute.xlu1 %4734  ;;  %v3991_v56 = vcombine.high %v3981_v41, %v3989_v25  ;;  %v3990_v7 = vcombine.low %v3981_v41, %v3989_v25  ;;  %v5599_v25 = vshrl.u32 %v9444_v36, 16 }
 0x538   : > { %4287 = vrot.lane.b32.xlu1 %v6704_v38, %s7016_s14  ;;  %4297 = vrot.lane.b32.xlu0 %v6917_v49, %s7013_s11  ;;  %v5600_v38 = vshrl.u32 %v9462_v40, 16  ;;  %v4005_v15 = vrot.slane %v3991_v56, %v7578_v14  ;;  %v3998_v41 = vrot.slane %v3990_v7, %v7578_v14  ;;  %v4281_v56 = vrot.slane %v4267_v29, %v7578_v14 }
 0x53a   : > { %v9668_v13 = vpop.permute.xlu0 %4730  ;;  %v9670_v43 = vpop.permute.xlu1 %4742  ;;  %v6697_v7 = vcombine.low %v3998_v41, %v3998_v41 }
 0x53c   : > { %4021 = vrot.lane.b32.xlu1 %v6909_v61, %s7013_s11  ;;  %4031 = vrot.lane.b32.xlu0 %v6694_v35, %s7015_s13  ;;  %v5607_v61 = vpack.i.b16 %v5606_v44, %v5605_v28  ;;  %v6919_v35 = vcombine.high %v4213_v32, %v4213_v32  ;;  %v5616_v32 = vpack.i.b16 %v9496_v45, %v9538_v57 }
 0x53d   : > { %v5598_v28 = vpack.i.b16 %v9462_v40, %v9444_v36  ;;  %v6913_v36 = vcombine.high %v3998_v41, %v3998_v41 }
 0x53e   : > { %v9676_v52 = vpop.permute.xlu0 %4738  ;;  %v9678_v55 = vpop.permute.xlu1 %3777  ;;  %v5669_v44 = vrot.slane %v5607_v61, %v7374_v24 }
 0x53f   : > { %10640 = vst [vmem:[#allocation20_spill] sm:$0xff] %v9678_v55  ;;  %v5627_v40 = vrot.slane %v5598_v28, %v7374_v24 }
 0x540   : > { %4041 = vrot.lane.b32.xlu1 %v6911_v31, %s7018_s16  ;;  %4307 = vrot.lane.b32.xlu0 %v6708_v51, %s7015_s13  ;;  %v5601_v31 = vpack.i.b16 %v5600_v38, %v5599_v25  ;;  %v5635_v38 = vrot.slane %v5604_v37, %v7374_v24  ;;  %v6715_v25 = vcombine.low %v4281_v56, %v4281_v56 }
 0x542   : > { %v9686_v49 = vpop.permute.xlu0 %3752  ;;  %v9688_v4 = vpop.permute.xlu1 %3727  ;;  %v5661_v63 = vrot.slane %v5601_v31, %v7374_v24  ;;  %v5636_v31 = vcombine.low %v5627_v40, %v5635_v38  ;;  %v5637_v28 = vcombine.high %v5627_v40, %v5635_v38 }
 0x543   : > { %10641 = vst [vmem:[#allocation14_spill] sm:$0xff] %v9686_v49  ;;  %v6701_v49 = vcombine.low %v4005_v15, %v4005_v15 }
 0x544   : > { %4322 = vrot.lane.b32.xlu1 %v6711_v39, %s7016_s14  ;;  %4317 = vrot.lane.b32.xlu0 %v6919_v35, %s7018_s16  ;;  %v5670_v61 = vcombine.low %v5661_v63, %v5669_v44  ;;  %v9718_v35 = vrot.slane %v5616_v32, %v7374_v24  ;;  %v5651_v40 = vrot.slane %v5637_v28, %v7578_v14 }
 0x546   : > { %v9697_v48 = vpop.permute.xlu0 %3767  ;;  %v9699_v51 = vpop.permute.xlu1 %3737  ;;  %v9733_v41 = vrot.slane %v5670_v61, %v7578_v14  ;;  %v5892_v61 = vpack.i.b16 %v9559_v8, %v9540_v26 }
 0x548   : > { %4066 = vrot.lane.b32.xlu1 %v6701_v49, %s7015_s13  ;;  %4046 = vrot.lane.b32.xlu0 %v6697_v7, %s7016_s14  ;;  %v9723_v49 = vrot.slane %v5610_v6, %v7374_v24  ;;  %v5880_v6 = vpack.i.b16 %v9508_v59, %v9494_v47 }
 0x54a   : > { %v9713_v29 = vpop.permute.xlu0 %3787  ;;  %v9715_v39 = vpop.permute.xlu1 %3747  ;;  %v5705_v32 = vcombine.high %v9723_v49, %v9718_v35 }
 0x54b   : > { %10642 = vst [vmem:[#allocation25_spill] sm:$0xff] %v9713_v29  ;;  %10643 = vst [vmem:[#allocation29_spill] sm:$0xff] %v9715_v39  ;;  %v6915_v29 = vcombine.high %v4005_v15, %v4005_v15  ;;  %v6921_v39 = vcombine.high %v4274_v58, %v4274_v58  ;;  %v6923_v15 = vcombine.high %v4281_v56, %v4281_v56 }
 0x54c   : > { %4342 = vrot.lane.b32.xlu1 %v6715_v25, %s7015_s13  ;;  %4056 = vrot.lane.b32.xlu0 %v6913_v36, %s7013_s11  ;;  %v5671_v58 = vcombine.high %v5661_v63, %v5669_v44  ;;  %v9751_v38 = vrot.slane %v5705_v32, %v7578_v14  ;;  %v5886_v56 = vpack.i.b16 %v9526_v22, %v9510_v2 }
 0x54d   : > { %v5911_v44 = vrot.slane %v5880_v6, %v7374_v24  ;;  %v5979_v32 = vrot.slane %v5892_v61, %v7374_v24 }
 0x54e   : > { %v9726_v37 = vpop.permute.xlu0 %3762  ;;  %v9728_v7 = vpop.permute.xlu1 %3757  ;;  %v6788_v2 = vcombine.low %v9751_v38, %v9751_v38  ;;  %v5685_v22 = vrot.slane %v5671_v58, %v7578_v14  ;;  %v5612_v58 = vshrl.u32 %v9484_v60, 16 }
 0x54f   : > { %10644 = vst [vmem:[#allocation16_spill] sm:$0xff] %v9728_v7  ;;  %v9744_v7 = vrot.slane %v5636_v31, %v7578_v14  ;;  %v5617_v31 = vshrl.u32 %v9538_v57, 16 }
 0x550   : > { %4076 = vrot.lane.b32.xlu1 %v6915_v29, %s7018_s16  ;;  %4332 = vrot.lane.b32.xlu0 %v6921_v39, %s7013_s11  ;;  %v6778_v29 = vcombine.low %v9733_v41, %v9733_v41  ;;  %v5874_v39 = vpack.i.b16 %v9482_v19, %v9472_v27  ;;  %v6959_v60 = vcombine.high %v5685_v22, %v5685_v22 }
 0x551   : > { %10646 = vst [vmem:[#allocation18_spill] sm:$0xff] %v9744_v7  ;;  %v6956_v8 = vcombine.high %v9744_v7, %v9744_v7 }
 0x552   : > { %v9739_v25 = vpop.permute.xlu0 %5488  ;;  %v9741_v36 = vpop.permute.xlu1 %3772  ;;  %v5903_v6 = vrot.slane %v5874_v39, %v7374_v24 }
 0x553   : > { %10645 = vst [vmem:[#allocation31_spill] sm:$0xff] %v9739_v25  ;;  %v6781_v25 = vcombine.low %v5651_v40, %v5651_v40 }
 0x554   : > { %4352 = vrot.lane.b32.xlu1 %v6923_v15, %s7018_s16  ;;  %5759 = vrot.lane.b32.xlu0 %v6778_v29, %s7016_s14  ;;  %v5618_v15 = vshrl.u32 %v9496_v45, 16  ;;  %v5611_v29 = vshrl.u32 %v9524_v34, 16  ;;  %v5912_v57 = vcombine.low %v5903_v6, %v5911_v44  ;;  %v5913_v34 = vcombine.high %v5903_v6, %v5911_v44 }
 0x555   : > { %v5882_v44 = vshrl.u32 %v9508_v59, 16  ;;  %v5876_v59 = vshrl.u32 %v9482_v19, 16 }
 0x556   : > { %v9760_v63 = vpop.permute.xlu0 %5508  ;;  %v9762_v26 = vpop.permute.xlu1 %3782  ;;  %v5619_v7 = vpack.i.b16 %v5618_v15, %v5617_v31  ;;  %v5613_v45 = vpack.i.b16 %v5612_v58, %v5611_v29 }
 0x557   : > { %10647 = vst [vmem:[#allocation22_spill] sm:$0xff] %v9760_v63  ;;  %10648 = vst [vmem:[#allocation27_spill] sm:$0xff] %v9762_v26  ;;  %v5971_v63 = vrot.slane %v5886_v56, %v7374_v24  ;;  %v6782_v26 = vcombine.low %v5685_v22, %v5685_v22 }
 0x558   : > { %5764 = vrot.lane.b32.xlu1 %v6956_v8, %s7012_s10  ;;  %5809 = vrot.lane.b32.xlu0 %v6788_v2, %s7014_s12  ;;  %v6958_v8 = vcombine.high %v5651_v40, %v5651_v40  ;;  %v9788_v2 = vrot.slane %v5912_v57, %v7578_v14 }
 0x559   : > { %v5980_v39 = vcombine.low %v5971_v63, %v5979_v32 }
 0x55a   : > { %v9778_v28 = vpop.permute.xlu0 %5523  ;;  %v9780_v61 = vpop.permute.xlu1 %3792  ;;  %10652 = vst [vmem:[#allocation51_spill] sm:$0xff] %v9788_v2 }
 0x55b   : > { %10649 = vst [vmem:[#allocation15_spill] sm:$0xff] %v9778_v28  ;;  %10650 = vst [vmem:[#allocation32_spill] sm:$0xff] %v9780_v61  ;;  %v5737_v28 = vrot.slane %v5619_v7, %v7374_v24  ;;  %v5981_v61 = vcombine.high %v5971_v63, %v5979_v32  ;;  %v9794_v31 = vrot.slane %v5980_v39, %v7578_v14 }
 0x55c   : > { %5774 = vrot.lane.b32.xlu1 %v6781_v25, %s7014_s12  ;;  %5779 = vrot.lane.b32.xlu0 %v6782_v26, %s7015_s13  ;;  %v5729_v25 = vrot.slane %v5613_v45, %v7374_v24  ;;  %v5704_v26 = vcombine.low %v9723_v49, %v9718_v35  ;;  %v6964_v7 = vcombine.high %v9788_v2, %v9788_v2  ;;  %v5881_v35 = vshrl.u32 %v9494_v47, 16 }
 0x55d   : > { %10654 = vst [vmem:[#allocation50_spill] sm:$0xff] %v9794_v31  ;;  %v9807_v63 = vrot.slane %v5913_v34, %v7578_v14  ;;  %v6968_v6 = vcombine.high %v9794_v31, %v9794_v31  ;;  %v9814_v15 = vrot.slane %v5981_v61, %v7578_v14  ;;  %v5875_v49 = vshrl.u32 %v9472_v27, 16 }
 0x55e   : > { %v9785_v56 = vpop.permute.xlu1 %5498  ;;  %v9791_v55 = vpop.permute.xlu0 %5533  ;;  %v5738_v32 = vcombine.low %v5729_v25, %v5737_v28  ;;  %v5883_v29 = vpack.i.b16 %v5882_v44, %v5881_v35  ;;  %v9826_v39 = vrot.slane %v5704_v26, %v7578_v14  ;;  %v5739_v61 = vcombine.high %v5729_v25, %v5737_v28 }
 0x55f   : > { %10651 = vst [vmem:[#allocation35_spill] sm:$0xff] %v9785_v56  ;;  %10653 = vst [vmem:[#allocation43_spill] sm:$0xff] %v9791_v55  ;;  %v6795_v58 = vcombine.low %v9807_v63, %v9807_v63  ;;  %v6802_v19 = vcombine.low %v9814_v15, %v9814_v15  ;;  %v5877_v34 = vpack.i.b16 %v5876_v59, %v5875_v49  ;;  %v5030_v55 = vshrl.u32 %v9598_v10, 16 }
 0x560   : > { %5784 = vrot.lane.b32.xlu1 %v6958_v8, %s7017_s15  ;;  %5789 = vrot.lane.b32.xlu0 %v6959_v60, %s7018_s16  ;;  %10658 = vst [vmem:[#allocation33_spill] sm:$0xff] %v9826_v39  ;;  %v9833_v47 = vrot.slane %v5738_v32, %v7578_v14  ;;  %v5945_v27 = vrot.slane %v5883_v29, %v7374_v24 }
 0x561   : > { %v6960_v28 = vcombine.high %v9826_v39, %v9826_v39  ;;  %v5753_v44 = vrot.slane %v5739_v61, %v7578_v14  ;;  %v5937_v26 = vrot.slane %v5877_v34, %v7374_v24  ;;  %v6014_v59 = vcombine.low %v9585_v5, %v9588_v17 }
 0x562   : > { %v9802_v40 = vpop.permute.xlu1 %5483  ;;  %v9809_v22 = vpop.permute.xlu0 %5543  ;;  %v6961_v25 = vcombine.high %v9833_v47, %v9833_v47  ;;  %v4752_v35 = vpack.i.b16 %v9624_v1, %v9609_v0 }
 0x563   : > { %10655 = vst [vmem:[#allocation47_spill] sm:$0xff] %v9802_v40  ;;  %10656 = vst [vmem:[#allocation40_spill] sm:$0xff] %v9809_v22  ;;  %v6789_v29 = vcombine.low %v5753_v44, %v5753_v44 }
 0x564   : > { %6040 = vrot.lane.b32.xlu1 %v6964_v7, %s7012_s10  ;;  %6075 = vrot.lane.b32.xlu0 %v6968_v6, %s7012_s10  ;;  %v5946_v7 = vcombine.low %v5937_v26, %v5945_v27  ;;  %v6957_v6 = vcombine.high %v9733_v41, %v9733_v41  ;;  %v6962_v41 = vcombine.high %v9751_v38, %v9751_v38 }
 0x565   : > { %v9870_v34 = vrot.slane %v4752_v35, %v7374_v24  ;;  %v4758_v38 = vpack.i.b16 %v9661_v30, %v9668_v13  ;;  %v5028_v35 = vpack.i.b16 %v9598_v10, %v9574_v12 }
 0x566   : > { %v9821_v57 = vpop.permute.xlu1 %5493  ;;  %v9828_v45 = vpop.permute.xlu0 %5513 }
 0x567   : > { %10657 = vst [vmem:[#allocation46_spill] sm:$0xff] %v9821_v57  ;;  %10659 = vst [vmem:[#allocation36_spill] sm:$0xff] %v9828_v45  ;;  %v6022_v45 = vrot.slane %v6014_v59, %v7578_v14  ;;  %v5040_v59 = vpack.i.b16 %v9650_v53, %v9659_v50 }
 0x568   : > { %6050 = vrot.lane.b32.xlu1 %v6795_v58, %s7014_s12  ;;  %6085 = vrot.lane.b32.xlu0 %v6802_v19, %s7014_s12  ;;  %v4746_v58 = vpack.i.b16 %v9611_v42, %v9596_v23  ;;  %v5954_v19 = vrot.slane %v5946_v7, %v7578_v14  ;;  %v5947_v7 = vcombine.high %v5937_v26, %v5945_v27 }
 0x569   : > { %v5022_v27 = vpack.i.b16 %v9576_v33, %v9557_v18  ;;  %v5034_v26 = vpack.i.b16 %v9638_v62, %v9648_v16 }
 0x56a   : > { %v9838_v8 = vpop.permute.xlu1 %5503  ;;  %v9842_v60 = vpop.permute.xlu0 %5518  ;;  %v6792_v22 = vcombine.low %v5954_v19, %v5954_v19  ;;  %v6965_v56 = vcombine.high %v5954_v19, %v5954_v19 }
 0x56b   : > { %10660 = vst [vmem:[#allocation38_spill] sm:$0xff] %v9838_v8  ;;  %10661 = vst [vmem:[#allocation17_spill] sm:$0xff] %v9842_v60  ;;  %v5024_v60 = vshrl.u32 %v9576_v33, 16  ;;  %v5051_v19 = vrot.slane %v5022_v27, %v7374_v24  ;;  %v4754_v33 = vshrl.u32 %v9624_v1, 16 }
 0x56c   : > { %5799 = vrot.lane.b32.xlu1 %v6960_v28, %s7012_s10  ;;  %5804 = vrot.lane.b32.xlu0 %v6961_v25, %s7013_s11  ;;  %v4764_v28 = vpack.i.b16 %v9670_v43, %v9676_v52 }
 0x56e   : > { %v9850_v32 = vpop.permute.xlu1 %5528  ;;  %v9858_v49 = vpop.permute.xlu0 %5538 }
 0x56f   : > { %10662 = vst [vmem:[#allocation37_spill] sm:$0xff] %v9850_v32  ;;  %10663 = vst [vmem:[#allocation19_spill] sm:$0xff] %v9858_v49  ;;  %v6799_v49 = vcombine.low %v6022_v45, %v6022_v45  ;;  %v9913_v32 = vrot.slane %v5947_v7, %v7578_v14  ;;  %v9930_v7 = vrot.slane %v5034_v26, %v7374_v24 }
 0x570   : > { %5769 = vrot.lane.b32.xlu1 %v6957_v6, %s7013_s11  ;;  %5814 = vrot.lane.b32.xlu0 %v6789_v29, %s7015_s13  ;;  %v6963_v6 = vcombine.high %v5753_v44, %v5753_v44  ;;  %v9879_v29 = vrot.slane %v4746_v58, %v7374_v24  ;;  %v9893_v58 = vrot.slane %v4764_v28, %v7374_v24 }
 0x571   : > { %v9908_v28 = vrot.slane %v5028_v35, %v7374_v24  ;;  %v5029_v35 = vshrl.u32 %v9574_v12, 16  ;;  %v6796_v12 = vcombine.low %v9913_v32, %v9913_v32 }
 0x572   : > { %v9864_v61 = vpop.permute.xlu1 %5548  ;;  %v9874_v25 = vpop.permute.xlu0 %4636  ;;  %v4785_v44 = vcombine.high %v9879_v29, %v9870_v34  ;;  %v4784_v39 = vcombine.low %v9879_v29, %v9870_v34 }
 0x573   : > { %10664 = vst [vmem:[#allocation41_spill] sm:$0xff] %v9864_v61  ;;  %v5031_v40 = vpack.i.b16 %v5030_v55, %v5029_v35  ;;  %v4748_v35 = vshrl.u32 %v9611_v42, 16 }
 0x574   : > { %5819 = vrot.lane.b32.xlu1 %v6962_v41, %s7017_s15  ;;  %5824 = vrot.lane.b32.xlu0 %v6963_v6, %s7018_s16  ;;  %v9903_v6 = vrot.slane %v4758_v38, %v7374_v24  ;;  %v9923_v10 = vrot.slane %v4785_v44, %v7578_v14 }
 0x575   : > { %v9952_v1 = vrot.slane %v5031_v40, %v7374_v24 }
 0x576   : > { %v9886_v61 = vpop.permute.xlu1 %4656  ;;  %v9895_v41 = vpop.permute.xlu0 %4646  ;;  %v4853_v38 = vcombine.high %v9903_v6, %v9893_v58  ;;  %v6934_v26 = vcombine.high %v9923_v10, %v9923_v10 }
 0x578   : > { %6035 = vrot.lane.b32.xlu1 %v6792_v22, %s7016_s14  ;;  %6070 = vrot.lane.b32.xlu0 %v6799_v49, %s7016_s14  ;;  %v9916_v22 = vrot.slane %v5040_v59, %v7374_v24  ;;  %v6969_v49 = vcombine.high %v6022_v45, %v6022_v45  ;;  %v5023_v59 = vshrl.u32 %v9557_v18, 16  ;;  %v5060_v45 = vcombine.low %v5051_v19, %v9908_v28 }
 0x579   : > { %v4867_v18 = vrot.slane %v4853_v38, %v7578_v14  ;;  %v6785_v38 = vcombine.low %v9833_v47, %v9833_v47  ;;  %v5061_v47 = vcombine.high %v5051_v19, %v9908_v28 }
 0x57a   : > { %v9910_v8 = vpop.permute.xlu1 %4681  ;;  %v9920_v57 = vpop.permute.xlu0 %4671  ;;  %v5025_v55 = vpack.i.b16 %v5024_v60, %v5023_v59  ;;  %v9961_v60 = vrot.slane %v5060_v45, %v7578_v14 }
 0x57c   : > { %6045 = vrot.lane.b32.xlu1 %v6965_v56, %s7013_s11  ;;  %6080 = vrot.lane.b32.xlu0 %v6969_v49, %s7013_s11  ;;  %v5129_v56 = vcombine.high %v9930_v7, %v9916_v22  ;;  %v4753_v49 = vshrl.u32 %v9609_v0, 16  ;;  %10665 = vst [vmem:[#allocation30_spill] sm:$0xff] %v9961_v60  ;;  %v4747_v0 = vshrl.u32 %v9596_v23, 16  ;;  %v6940_v45 = vcombine.high %v9961_v60, %v9961_v60 }
 0x57d   : > { %v4759_v60 = vshrl.u32 %v9668_v13, 16 }
 0x57e   : > { %v9935_v44 = vpop.permute.xlu1 %4691  ;;  %v9942_v27 = vpop.permute.xlu0 %4641  ;;  %v4755_v59 = vpack.i.b16 %v4754_v33, %v4753_v49  ;;  %v9967_v40 = vrot.slane %v5129_v56, %v7578_v14  ;;  %v4749_v34 = vpack.i.b16 %v4748_v35, %v4747_v0  ;;  %v9982_v33 = vrot.slane %v4784_v39, %v7578_v14 }
 0x57f   : > { %v5035_v35 = vshrl.u32 %v9648_v16, 16  ;;  %v5042_v39 = vshrl.u32 %v9650_v53, 16  ;;  %v4765_v16 = vshrl.u32 %v9676_v52, 16  ;;  %v4760_v52 = vshrl.u32 %v9661_v30, 16 }
 0x580   : > { %6055 = vrot.lane.b32.xlu1 %v6796_v12, %s7015_s13  ;;  %4932 = vrot.lane.b32.xlu0 %v6934_v26, %s7017_s15  ;;  %v6742_v12 = vcombine.low %v4867_v18, %v4867_v18  ;;  %v9970_v26 = vrot.slane %v5025_v55, %v7374_v24  ;;  %10666 = vst [vmem:[#allocation44_spill] sm:$0xff] %v9982_v33  ;;  %v5041_v55 = vshrl.u32 %v9659_v50, 16 }
 0x581   : > { %v9985_v56 = vrot.slane %v4755_v59, %v7374_v24  ;;  %v6946_v28 = vcombine.high %v9967_v40, %v9967_v40  ;;  %v9994_v19 = vrot.slane %v4749_v34, %v7374_v24  ;;  %v6932_v50 = vcombine.high %v9982_v33, %v9982_v33 }
 0x582   : > { %v9956_v31 = vpop.permute.xlu1 %4631  ;;  %v9964_v42 = vpop.permute.xlu0 %4651  ;;  %v5094_v23 = vcombine.low %v9970_v26, %v9952_v1  ;;  %v4766_v33 = vshrl.u32 %v9670_v43, 16  ;;  %v4761_v43 = vpack.i.b16 %v4760_v52, %v4759_v60  ;;  %v6735_v30 = vcombine.low %v9923_v10, %v9923_v10 }
 0x583   : > { %v4818_v34 = vcombine.low %v9994_v19, %v9985_v56 }
 0x584   : > { %5794 = vrot.lane.b32.xlu1 %v6785_v38, %s7016_s14  ;;  %4957 = vrot.lane.b32.xlu0 %v6742_v12, %s7014_s12  ;;  %v5036_v38 = vshrl.u32 %v9638_v62, 16  ;;  %v5102_v59 = vrot.slane %v5094_v23, %v7578_v14  ;;  %v5075_v12 = vrot.slane %v5061_v47, %v7578_v14 }
 0x586   : > { %v9977_v29 = vpop.permute.xlu1 %4666  ;;  %v9988_v49 = vpop.permute.xlu0 %4661  ;;  %v5037_v62 = vpack.i.b16 %v5036_v38, %v5035_v35  ;;  %v6746_v47 = vcombine.low %v5102_v59, %v5102_v59  ;;  %v6749_v2 = vcombine.low %v5075_v12, %v5075_v12  ;;  %v5128_v35 = vcombine.low %v9930_v7, %v9916_v22 }
 0x587   : > { %v4852_v22 = vcombine.low %v9903_v6, %v9893_v58  ;;  %v6942_v60 = vcombine.high %v5075_v12, %v5075_v12 }
 0x588   : > { %5188 = vrot.lane.b32.xlu1 %v6940_v45, %s7012_s10  ;;  %5243 = vrot.lane.b32.xlu0 %v6946_v28, %s7017_s15  ;;  %v5043_v45 = vpack.i.b16 %v5042_v39, %v5041_v55  ;;  %v6938_v28 = vcombine.high %v4867_v18, %v4867_v18  ;;  %v4767_v39 = vpack.i.b16 %v4766_v33, %v4765_v16 }
 0x589   : > { %v4826_v18 = vrot.slane %v4818_v34, %v7578_v14  ;;  %v5153_v13 = vrot.slane %v5037_v62, %v7374_v24  ;;  %v10042_v10 = vrot.slane %v5128_v35, %v7578_v14  ;;  %v6941_v62 = vcombine.high %v5102_v59, %v5102_v59 }
 0x58a   : > { %v10000_v0 = vpop.permute.xlu1 %4676  ;;  %v10009_v53 = vpop.permute.xlu0 %4696  ;;  %v5161_v55 = vrot.slane %v5043_v45, %v7374_v24  ;;  %v10054_v6 = vrot.slane %v4852_v22, %v7578_v14 }
 0x58b   : > { %10667 = vst [vmem:[#allocation45_spill] sm:$0xff] %v10009_v53  ;;  %v6732_v34 = vcombine.low %v4826_v18, %v4826_v18  ;;  %10668 = vst [vmem:[#allocation48_spill] sm:$0xff] %v10042_v10  ;;  %v6944_v58 = vcombine.high %v10042_v10, %v10042_v10 }
 0x58c   : > { %4912 = vrot.lane.b32.xlu1 %v6932_v50, %s7012_s10  ;;  %4967 = vrot.lane.b32.xlu0 %v6938_v28, %s7017_s15  ;;  %v5162_v33 = vcombine.low %v5153_v13, %v5161_v55  ;;  %v4885_v50 = vrot.slane %v4767_v39, %v7374_v24  ;;  %10669 = vst [vmem:[#allocation49_spill] sm:$0xff] %v10054_v6 }
 0x58d   : > { %v6936_v35 = vcombine.high %v10054_v6, %v10054_v6 }
 0x58e   : > { %v10015_v23 = vpop.permute.xlu1 %4686  ;;  %v10019_v53 = vpop.permute.xlu0 %4026 }
 0x590   : > { %5198 = vrot.lane.b32.xlu1 %v6749_v2, %s7014_s12  ;;  %5183 = vrot.lane.b32.xlu0 %v6746_v47, %s7016_s14  ;;  %v4877_v2 = vrot.slane %v4761_v43, %v7374_v24  ;;  %v5170_v47 = vrot.slane %v5162_v33, %v7578_v14 }
 0x592   : > { %v10027_v38 = vpop.permute.xlu1 %4016  ;;  %v10032_v45 = vpop.permute.xlu0 %4302  ;;  %v4886_v16 = vcombine.low %v4877_v2, %v4885_v50  ;;  %v6753_v39 = vcombine.low %v5170_v47, %v5170_v47 }
 0x594   : > { %4922 = vrot.lane.b32.xlu1 %v6735_v30, %s7014_s12  ;;  %4907 = vrot.lane.b32.xlu0 %v6732_v34, %s7016_s14  ;;  %v4894_v43 = vrot.slane %v4886_v16, %v7578_v14  ;;  %v5095_v34 = vcombine.high %v9970_v26, %v9952_v1  ;;  %v5163_v16 = vcombine.high %v5153_v13, %v5161_v55 }
 0x595   : > { %v4887_v26 = vcombine.high %v4877_v2, %v4885_v50 }
 0x596   : > { %v10039_v7 = vpop.permute.xlu1 %4292  ;;  %v10044_v28 = vpop.permute.xlu0 %4036  ;;  %v6739_v33 = vcombine.low %v4894_v43, %v4894_v43  ;;  %v5109_v1 = vrot.slane %v5095_v34, %v7578_v14  ;;  %v6937_v10 = vcombine.high %v4894_v43, %v4894_v43 }
 0x598   : > { %5208 = vrot.lane.b32.xlu1 %v6942_v60, %s7017_s15  ;;  %5193 = vrot.lane.b32.xlu0 %v6941_v62, %s7013_s11  ;;  %v6756_v60 = vcombine.low %v9967_v40, %v9967_v40  ;;  %v5177_v40 = vrot.slane %v5163_v16, %v7578_v14  ;;  %v6750_v13 = vcombine.low %v5109_v1, %v5109_v1 }
 0x59a   : > { %v10049_v52 = vpop.permute.xlu1 %4337  ;;  %v10056_v12 = vpop.permute.xlu0 %4312 }
 0x59c   : > { %5223 = vrot.lane.b32.xlu1 %v6944_v58, %s7012_s10  ;;  %5218 = vrot.lane.b32.xlu0 %v6753_v39, %s7016_s14  ;;  %v6945_v58 = vcombine.high %v5170_v47, %v5170_v47  ;;  %v4819_v39 = vcombine.high %v9994_v19, %v9985_v56  ;;  %v6757_v56 = vcombine.low %v5177_v40, %v5177_v40 }
 0x59d   : > { %v4901_v19 = vrot.slane %v4887_v26, %v7578_v14  ;;  %v10670_v26 = vcombine.high %v9585_v5, %v9588_v17  ;;  %v4715_v5 = vsel %vm746_vm5, %v9478_v46, %v9977_v29  ;;  %v10672_v46 = vld [vmem:[#allocation23_spill] sm:$0xff] }
 0x59e   : > { %v10061_v59 = vpop.permute.xlu1 %4071  ;;  %v10065_v30 = vpop.permute.xlu0 %4051  ;;  %v4833_v47 = vrot.slane %v4819_v39, %v7578_v14  ;;  %v3811_v29 = vsel %vm746_vm5, %v10672_v46, %v9726_v37 }
 0x59f   : > { %v6743_v43 = vcombine.low %v4901_v19, %v4901_v19 }
 0x5a0   : > { %4947 = vrot.lane.b32.xlu1 %v6936_v35, %s7012_s10  ;;  %4942 = vrot.lane.b32.xlu0 %v6739_v33, %s7016_s14  ;;  %v6933_v33 = vcombine.high %v4826_v18, %v4826_v18  ;;  %v6736_v50 = vcombine.low %v4833_v47, %v4833_v47 }
 0x5a2   : > { %v10071_v22 = vpop.permute.xlu1 %4347  ;;  %v10075_v62 = vpop.permute.xlu0 %4327 }
 0x5a4   : > { %5233 = vrot.lane.b32.xlu1 %v6756_v60, %s7014_s12  ;;  %5228 = vrot.lane.b32.xlu0 %v6945_v58, %s7013_s11  ;;  %v6943_v58 = vcombine.high %v5109_v1, %v5109_v1 }
 0x5a6   : > { %v4012_v35 = vpop.permute.xlu1 %4011  ;;  %v10082_v6 = vpop.permute.xlu0 %4061 }
 0x5a7   : > { %v4080_v34 = vsel %vm746_vm5, %v9549_v11, %v4012_v35  ;;  %v6935_v35 = vcombine.high %v4833_v47, %v4833_v47 }
 0x5a8   : > { %4917 = vrot.lane.b32.xlu1 %v6933_v33, %s7013_s11  ;;  %4952 = vrot.lane.b32.xlu0 %v6937_v10, %s7013_s11  ;;  %v4700_v10 = vsel %vm746_vm5, %v9452_v9, %v9956_v31  ;;  %v6947_v33 = vcombine.high %v5177_v40, %v5177_v40  ;;  %v4082_v11 = vsel %vm750_vm6, %v4080_v34, %v10027_v38  ;;  %v10671_v40 = vld [vmem:[#allocation28_spill] sm:$0xff] }
 0x5aa   : > { %v4288_v55 = vpop.permute.xlu1 %4287  ;;  %v4298_v60 = vpop.permute.xlu0 %4297 }
 0x5ab   : > { %v4356_v9 = vsel %vm746_vm5, %v9579_v54, %v4288_v55  ;;  %v3796_v55 = vsel %vm746_vm5, %v10671_v40, %v9688_v4  ;;  %v10682_v40 = vld [vmem:[#allocation27_spill] sm:$0xff] }
 0x5ac   : > { %5203 = vrot.lane.b32.xlu1 %v6750_v13, %s7015_s13  ;;  %5238 = vrot.lane.b32.xlu0 %v6757_v56, %s7015_s13  ;;  %v6029_v13 = vrot.slane %v10670_v26, %v7578_v14  ;;  %v4702_v56 = vsel %vm750_vm6, %v4700_v10, %v9874_v25  ;;  %v4358_v54 = vsel %vm750_vm6, %v4356_v9, %v10039_v7  ;;  %v10674_v10 = vld [vmem:[#allocation4_spill] sm:$0xff] }
 0x5ad   : > { %v4704_v25 = vsel %vm753_vm7, %v4702_v56, %v9942_v27  ;;  %v4717_v27 = vsel %vm750_vm6, %v4715_v5, %v9920_v57  ;;  %v4360_v47 = vsel %vm753_vm7, %v4358_v54, %v4298_v60  ;;  %v3798_v57 = vsel %vm750_vm6, %v3796_v55, %v9622_v20  ;;  %v10677_v60 = vld [vmem:[#allocation6_spill] sm:$0xff]  ;;  %v10680_v54 = vld [vmem:[#allocation21_spill] sm:$0xff] }
 0x5ae   : > { %v4022_v18 = vpop.permute.xlu1 %4021  ;;  %v4032_v2 = vpop.permute.xlu0 %4031  ;;  %v6803_v38 = vcombine.low %v6029_v13, %v6029_v13  ;;  %v4706_v7 = vsel %vm756_vm8, %v4704_v25, %v9895_v41  ;;  %v4719_v4 = vsel %vm753_vm7, %v4717_v27, %v10000_v0  ;;  %v6970_v41 = vcombine.high %v9814_v15, %v9814_v15  ;;  %v10676_v0 = vld [vmem:[#allocation5_spill] sm:$0xff]  ;;  %v10679_v25 = vld [vmem:[#allocation20_spill] sm:$0xff] }
 0x5af   : > { %v4084_v31 = vsel %vm753_vm7, %v4082_v11, %v4022_v18  ;;  %v10678_v26 = vcombine.low %v10676_v0, %v10677_v60  ;;  %v3800_v56 = vsel %vm753_vm7, %v3798_v57, %v9699_v51  ;;  %v3813_v9 = vsel %vm750_vm6, %v3811_v29, %v9697_v48 }
 0x5b0   : > { %4927 = vrot.lane.b32.xlu1 %v6736_v50, %s7015_s13  ;;  %4962 = vrot.lane.b32.xlu0 %v6743_v43, %s7015_s13  ;;  %v4086_v18 = vsel %vm756_vm8, %v4084_v31, %v10019_v53  ;;  %v6939_v50 = vcombine.high %v4901_v19, %v4901_v19  ;;  %v10673_v43 = vld [vmem:[#allocation3_spill] sm:$0xff]  ;;  %v3815_v15 = vsel %vm753_vm7, %v3813_v9, %v9741_v36 }
 0x5b1   : > { %v10675_v34 = vcombine.low %v10673_v43, %v10674_v10  ;;  %v10150_v19 = vrot.slane %v10678_v26, %v7374_v24  ;;  %v4721_v11 = vsel %vm756_vm8, %v4719_v4, %v9910_v8  ;;  %v4362_v51 = vsel %vm756_vm8, %v4360_v47, %v10032_v45  ;;  %v6233_v26 = vld [vmem:[%s10458_s5] sm:$0xf] }
 0x5b2   : > { %v4042_v16 = vpop.permute.xlu1 %4041  ;;  %v4308_v39 = vpop.permute.xlu0 %4307  ;;  %v4723_v48 = vsel %vm759_vm9, %v4721_v11, %v10015_v23  ;;  %v3802_v8 = vsel %vm756_vm8, %v3800_v56, %v9636_v21  ;;  %v6967_v23 = vcombine.high %v9913_v32, %v9913_v32  ;;  %v10686_v56 = vld [vmem:[#allocation16_spill] sm:$0xff] }
 0x5b3   : > { %v10139_v37 = vrot.slane %v10675_v34, %v7374_v24  ;;  %v10683_v34 = vld [vmem:[#allocation45_spill] sm:$0xff] }
 0x5b4   : > { %5213 = vrot.lane.b32.xlu1 %v6943_v58, %s7018_s16  ;;  %5248 = vrot.lane.b32.xlu0 %v6947_v33, %s7018_s16  ;;  %v4088_v58 = vsel %vm759_vm9, %v4086_v18, %v4032_v2  ;;  %v4708_v2 = vsel %vm759_vm9, %v4706_v7, %v9964_v42  ;;  %v6966_v42 = vcombine.high %v9807_v63, %v9807_v63 }
 0x5b5   : > { %v4090_v31 = vsel %vm762_vm13, %v4088_v58, %v10044_v28  ;;  %v4710_v28 = vsel %vm762_vm13, %v4708_v2, %v9886_v61  ;;  %v10681_v61 = vld [vmem:[#allocation29_spill] sm:$0xff]  ;;  %v10684_v58 = vld [vmem:[#allocation14_spill] sm:$0xff] }
 0x5b6   : > { %v4323_v17 = vpop.permute.xlu1 %4322  ;;  %v4318_v1 = vpop.permute.xlu0 %4317  ;;  %v4092_v32 = vsel %vm765_vm15, %v4090_v31, %v4042_v16  ;;  %v10207_v16 = vld [vmem:[%s7110_s29 + $0x18] sm:$0xff]  ;;  %v4712_v27 = vsel %vm765_vm15, %v4710_v28, %v9988_v49 }
 0x5b7   : > { %v4371_v63 = vsel %vm746_vm5, %v10680_v54, %v4323_v17  ;;  %v3804_v17 = vsel %vm759_vm9, %v3802_v8, %v10681_v61  ;;  %v6134_v47 = vrot.slane %v4092_v32, 6  ;;  %v10689_v8 = vld [vmem:[#allocation7_spill] sm:$0xff]  ;;  %v10691_v54 = vld [vmem:[#allocation18_spill] sm:$0xff] }
 0x5b8   : > { %4937 = vrot.lane.b32.xlu1 %v6935_v35, %s7018_s16  ;;  %6090 = vrot.lane.b32.xlu0 %v6803_v38, %s7015_s13  ;;  %v6971_v35 = vcombine.high %v6029_v13, %v6029_v13  ;;  %v3806_v49 = vsel %vm762_vm13, %v3804_v17, %v10684_v58 }
 0x5b9   : > { %v3808_v9 = vsel %vm765_vm15, %v3806_v49, %v10686_v56 }
 0x5ba   : > { %v4067_v53 = vpop.permute.xlu1 %4066  ;;  %v4047_v33 = vpop.permute.xlu0 %4046 }
 0x5bb   : > { %v4095_v20 = vsel %vm746_vm5, %v9617_v3, %v4047_v33  ;;  %v4364_v3 = vsel %vm759_vm9, %v4362_v51, %v4308_v39  ;;  %v3817_v39 = vsel %vm756_vm8, %v3815_v15, %v10679_v25  ;;  %v10685_v33 = vld [vmem:[#allocation25_spill] sm:$0xff] }
 0x5bc   : > { %4972 = vrot.lane.b32.xlu1 %v6939_v50, %s7018_s16  ;;  %6095 = vrot.lane.b32.xlu0 %v6970_v41, %s7017_s15  ;;  %v4097_v45 = vsel %vm750_vm6, %v4095_v20, %v10065_v30  ;;  %v4725_v30 = vsel %vm762_vm13, %v4723_v48, %v9935_v44  ;;  %v4366_v13 = vsel %vm762_vm13, %v4364_v3, %v10056_v12  ;;  %v6241_v12 = vld [vmem:[%s10459_s6] sm:$0xf]  ;;  %v10687_v20 = vld [vmem:[#allocation32_spill] sm:$0xff]  ;;  %v6142_v48 = vrot.slane %v4712_v27, 2 }
 0x5bd   : > { %v3819_v55 = vsel %vm759_vm9, %v3817_v39, %v10682_v40  ;;  %v4368_v18 = vsel %vm765_vm15, %v4366_v13, %v4318_v1  ;;  %v4373_v1 = vsel %vm750_vm6, %v4371_v63, %v10075_v62  ;;  %v4727_v57 = vsel %vm765_vm15, %v4725_v30, %v10683_v34 }
 0x5be   : > { %v4343_v36 = vpop.permute.xlu1 %4342  ;;  %v4057_v5 = vpop.permute.xlu0 %4056  ;;  %v3821_v41 = vsel %vm762_vm13, %v3819_v55, %v10685_v33  ;;  %v6138_v62 = vrot.slane %v4368_v18, 4  ;;  %v6143_v31 = vrot.slane %v4727_v57, 2 }
 0x5bf   : > { %v4099_v21 = vsel %vm753_vm7, %v4097_v45, %v4057_v5  ;;  %v3823_v15 = vsel %vm765_vm15, %v3821_v41, %v10687_v20 }
 0x5c0   : > { %6060 = vrot.lane.b32.xlu1 %v6966_v42, %s7017_s15  ;;  %v4101_v38 = vsel %vm756_vm8, %v4099_v21, %v10082_v6  ;;  %6100 = vrot.lane.b32.xlu0 %v6971_v35, %s7018_s16  ;;  %v10210_v6 = vld [vmem:[%s7110_s29 + $0x38] sm:$0xff] }
 0x5c1   : > { %v4103_v44 = vsel %vm759_vm9, %v4101_v38, %v4067_v53  ;;  %v6333_v29 = vcombine.low %v10207_v16, %v10210_v6  ;;  %v10688_v42 = vld [vmem:[#allocation8_spill] sm:$0xff]  ;;  %v6334_v40 = vcombine.high %v10207_v16, %v10210_v6  ;;  %v10695_v16 = vcombine.high %v10673_v43, %v10674_v10 }
 0x5c2   : > { %v4077_v46 = vpop.permute.xlu1 %4076  ;;  %v4333_v7 = vpop.permute.xlu0 %4332  ;;  %v4105_v4 = vsel %vm762_vm13, %v4103_v44, %v10061_v59  ;;  %v10690_v45 = vcombine.low %v10688_v42, %v10689_v8  ;;  %v7019_v44 = vmov 0.0   ;;  %v10696_v43 = vcombine.high %v10688_v42, %v10689_v8 }
 0x5c3   : > { %v4375_v53 = vsel %vm753_vm7, %v4373_v1, %v4333_v7  ;;  %v4107_v50 = vsel %vm765_vm15, %v4105_v4, %v4077_v46  ;;  %v6341_v25 = vrot.slane %v6333_v29, %v7374_v24  ;;  %v6280_v6 = vrot.slane %v10695_v16, %v7374_v24 }
 0x5c4   : > { %6065 = vrot.lane.b32.xlu1 %v6967_v23, %s7018_s16  ;;  %v4377_v59 = vsel %vm756_vm8, %v4375_v53, %v10049_v52  ;;  %6244 = vperm.xlu0 %6994, %v6241_v12   ;;  %v6135_v2 = vrot.slane %v4107_v50, 6  ;;  %v6325_v5 = vrot.slane %v10690_v45, %v7374_v24  ;;  %v6157_v23 = vsel %vm3121_vm0, %v3808_v9, %v6134_v47 }
 0x5c5   : > { %v4379_v11 = vsel %vm759_vm9, %v4377_v59, %v4343_v36  ;;  %v6281_v36 = vcombine.low %v10150_v19, %v10139_v37  ;;  %v6161_v28 = vsel %vm3126_vm2, %v6157_v23, %v6138_v62  ;;  %v6332_v10 = vrot.slane %v10696_v43, %v7374_v24 }
 0x5c6   : > { %v4353_v51 = vpop.permute.xlu1 %4352  ;;  %v5760_v3 = vpop.permute.xlu0 %5759  ;;  %v4381_v52 = vsel %vm762_vm13, %v4379_v11, %v10071_v22  ;;  %v6282_v22 = vcombine.high %v10150_v19, %v10139_v37  ;;  %v6159_v30 = vsel %vm3121_vm0, %v3823_v15, %v6135_v2  ;;  %v6349_v32 = vcombine.low %v6325_v5, %v6341_v25 }
 0x5c7   : > { %v4383_v35 = vsel %vm765_vm15, %v4381_v52, %v4353_v51  ;;  %v5828_v63 = vsel %vm746_vm5, %v10691_v54, %v5760_v3  ;;  %v10257_v13 = vrot.slane %v6281_v36, %v7578_v14  ;;  %v10692_v37 = vcombine.high %v10676_v0, %v10677_v60 }
 0x5c8   : > { %6236 = vperm.xlu1 %6995, %v6233_v26   ;;  %v6139_v39 = vrot.slane %v4383_v35, 4  ;;  %v10271_v18 = vrot.slane %v6349_v32, %v7578_v14  ;;  %v6350_v12 = vcombine.high %v6325_v5, %v6341_v25  ;;  %v6165_v29 = vsel %vm10694_vm11, %v6161_v28, %v6142_v48 }
 0x5c9   : > { %v6264_v19 = vrot.slane %v10692_v37, %v7374_v24  ;;  %v6313_v46 = vcombine.high %v10257_v13, %v7019_v44  ;;  %v6296_v27 = vrot.slane %v6282_v22, %v7578_v14  ;;  %v6348_v53 = vrot.slane %v6334_v40, %v7374_v24  ;;  %v10698_v22 = vld [vmem:[#allocation50_spill] sm:$0xff] }
 0x5ca   : > { %v5765_v21 = vpop.permute.xlu1 %5764  ;;  %v10259_v38 = vpop.permute.xlu0 %5809  ;;  %v6163_v17 = vsel %vm3126_vm2, %v6159_v30, %v6139_v39  ;;  %v6381_v60 = vcombine.high %v10271_v18, %v7019_v44  ;;  %v6364_v47 = vrot.slane %v6350_v12, %v7578_v14  ;;  %v10697_v39 = vld [vmem:[#allocation51_spill] sm:$0xff] }
 0x5cb   : > { %v5830_v61 = vsel %vm750_vm6, %v5828_v63, %v5765_v21  ;;  %v6168_v55 = vsel %vm10693_vm10, %v6163_v17, %v6143_v31  ;;  %v6297_v1 = vcombine.low %v6264_v19, %v6280_v6  ;;  %v6298_v4 = vcombine.high %v6264_v19, %v6280_v6 }
 0x5cc   : > { %6192 = vmatprep.subr.bf16.mxu1 %v6168_v55  ;;  %6386 = vrot.lane.b32.xlu1 %v6313_v46, %s7016_s14  ;;  %v6314_v34 = vcombine.high %v6296_v27, %v7019_v44  ;;  %v6382_v58 = vcombine.high %v6364_v47, %v7019_v44  ;;  %v6365_v49 = vcombine.low %v6332_v10, %v6348_v53 }
 0x5cd   : > { %6193 = vmatpush1.bf16.msra.mxu1 %v6165_v29  ;;  %6414 = vrot.lane.b32.xlu0 %v6381_v60, %s7016_s14  ;;  %v6305_v41 = vrot.slane %v6297_v1, %v7578_v14  ;;  %v6366_v20 = vcombine.high %v6332_v10, %v6348_v53  ;;  %v6312_v2 = vrot.slane %v6298_v4, %v7578_v14  ;;  %v10699_v29 = vld [vmem:[#allocation33_spill] sm:$0xff] }
 0x5ce   : > { %v5775_v0 = vpop.permute.xlu1 %5774  ;;  %v5780_v7 = vpop.permute.xlu0 %5779  ;;  %v6373_v59 = vrot.slane %v6365_v49, %v7578_v14 }
 0x5cf   : > { %v6315_v26 = vcombine.high %v6305_v41, %v7019_v44  ;;  %v6380_v51 = vrot.slane %v6366_v20, %v7578_v14  ;;  %v6316_v3 = vcombine.high %v6312_v2, %v7019_v44 }
 0x5d0   : > { %6390 = vrot.lane.b32.xlu1 %v6296_v27, %s7012_s10  ;;  %v6383_v9 = vcombine.high %v6373_v59, %v7019_v44 }
 0x5d1   : > { %6418 = vrot.lane.b32.xlu0 %v6364_v47, %s7012_s10  ;;  %v6384_v8 = vcombine.high %v6380_v51, %v7019_v44 }
 0x5d2   : > { %v5785_v50 = vpop.permute.xlu1 %5784  ;;  %v5790_v57 = vpop.permute.xlu0 %5789 }
 0x5d4   : > { %6394 = vrot.lane.b32.xlu1 %v6314_v34, %s7013_s11 }
 0x5d5   : > { %6422 = vrot.lane.b32.xlu0 %v6382_v58, %s7013_s11  ;;  %s278_s11 = scalar_lea.vmem %s10460_s7, %s6811_s8 }
 0x5d6   : > { %v6041_v33 = vpop.permute.xlu1 %6040  ;;  %v6076_v62 = vpop.permute.xlu0 %6075 }
 0x5d8   : > { %6398 = vrot.lane.b32.xlu1 %v6305_v41, %s7014_s12 }
 0x5d9   : > { %6426 = vrot.lane.b32.xlu0 %v6373_v59, %s7014_s12 }
 0x5da   : > { %v6051_v24 = vpop.permute.xlu1 %6050  ;;  %v6086_v56 = vpop.permute.xlu0 %6085 }
 0x5dc   : > { %6402 = vrot.lane.b32.xlu1 %v6315_v26, %s7015_s13  ;;  %v10700_v26 = vld [vmem:[#allocation47_spill] sm:$0xff] }
 0x5dd   : > { %6430 = vrot.lane.b32.xlu0 %v6383_v9, %s7015_s13 }
 0x5de   : > { %v5800_v15 = vpop.permute.xlu1 %5799  ;;  %v5805_v11 = vpop.permute.xlu0 %5804 }
 0x5e0   : > { %6406 = vrot.lane.b32.xlu1 %v6312_v2, %s7017_s15  ;;  %v10703_v2 = vld [vmem:[#allocation26_spill] sm:$0xff] }
 0x5e1   : > { %6434 = vrot.lane.b32.xlu0 %v6380_v51, %s7017_s15 }
 0x5e2   : > { %v5770_v48 = vpop.permute.xlu1 %5769  ;;  %v5815_v52 = vpop.permute.xlu0 %5814 }
 0x5e3   : > { %v5832_v31 = vsel %vm753_vm7, %v5830_v61, %v5770_v48  ;;  %v10704_v48 = vld [vmem:[#allocation30_spill] sm:$0xff] }
 0x5e4   : > { %v5834_v42 = vsel %vm756_vm8, %v5832_v31, %v5775_v0  ;;  %6410 = vrot.lane.b32.xlu1 %v6316_v3, %s7018_s16 }
 0x5e5   : > { %v5836_v45 = vsel %vm759_vm9, %v5834_v42, %v5780_v7  ;;  %6438 = vrot.lane.b32.xlu0 %v6384_v8, %s7018_s16  ;;  %v10706_v42 = vld [vmem:[#allocation46_spill] sm:$0xff] }
 0x5e6   : > { %v5838_v5 = vsel %vm762_vm13, %v5836_v45, %v5785_v50  ;;  %v5820_v35 = vpop.permute.xlu1 %5819  ;;  %v5825_v14 = vpop.permute.xlu0 %5824  ;;  %v10707_v45 = vld [vmem:[#allocation15_spill] sm:$0xff] }
 0x5e7   : > { %v10309_v23 = vsel %vm765_vm15, %v5838_v5, %v5790_v57 }
 0x5ea   : > { %v6036_v25 = vpop.permute.xlu1 %6035  ;;  %v6071_v36 = vpop.permute.xlu0 %6070 }
 0x5eb   : > { %v6104_v28 = vsel %vm746_vm5, %v10697_v39, %v6036_v25  ;;  %v6119_v54 = vsel %vm746_vm5, %v10698_v22, %v6071_v36  ;;  %v10709_v36 = vld [vmem:[#allocation44_spill] sm:$0xff] }
 0x5ec   : > { %v6106_v63 = vsel %vm750_vm6, %v6104_v28, %v6041_v33  ;;  %v6121_v21 = vsel %vm750_vm6, %v6119_v54, %v6076_v62  ;;  %v10710_v22 = vld [vmem:[#allocation48_spill] sm:$0xff] }
 0x5ee   : > { %v6046_v30 = vpop.permute.xlu1 %6045  ;;  %v6081_v32 = vpop.permute.xlu0 %6080 }
 0x5ef   : > { %v6108_v61 = vsel %vm753_vm7, %v6106_v63, %v6046_v30  ;;  %v6123_v17 = vsel %vm753_vm7, %v6121_v21, %v6081_v32  ;;  %v10711_v30 = vld [vmem:[#allocation35_spill] sm:$0xff] }
 0x5f0   : > { %v6110_v40 = vsel %vm756_vm8, %v6108_v61, %v6051_v24  ;;  %v10322_v37 = vsel %vm756_vm8, %v6123_v17, %v6086_v56  ;;  %v10701_v56 = vld [vmem:[#allocation24_spill] sm:$0xff]  ;;  %v10712_v61 = vld [vmem:[#allocation38_spill] sm:$0xff] }
 0x5f1   : > { %v5552_v9 = vsel %vm746_vm5, %v10701_v56, %v10700_v26 }
 0x5f2   : > { %v6056_v19 = vpop.permute.xlu1 %6055  ;;  %v10324_v55 = vpop.permute.xlu0 %4932 }
 0x5f3   : > { %v10327_v44 = vsel %vm759_vm9, %v6110_v40, %v6056_v19  ;;  %v10713_v40 = vld [vmem:[#allocation43_spill] sm:$0xff] }
 0x5f6   : > { %v5795_v46 = vpop.permute.xlu1 %5794  ;;  %v10329_v12 = vpop.permute.xlu0 %4957 }
 0x5f7   : > { %v5843_v16 = vsel %vm746_vm5, %v10699_v29, %v5795_v46 }
 0x5f8   : > { %v5845_v6 = vsel %vm750_vm6, %v5843_v16, %v5800_v15  ;;  %v10702_v15 = vld [vmem:[#allocation17_spill] sm:$0xff] }
 0x5f9   : > { %v5847_v0 = vsel %vm753_vm7, %v5845_v6, %v5805_v11  ;;  %v5567_v11 = vsel %vm746_vm5, %v10703_v2, %v10702_v15  ;;  %v10714_v6 = vld [vmem:[#allocation49_spill] sm:$0xff] }
 0x5fa   : > { %v5849_v60 = vsel %vm756_vm8, %v5847_v0, %v10259_v38  ;;  %v5189_v27 = vpop.permute.xlu1 %5188  ;;  %v5244_v1 = vpop.permute.xlu0 %5243  ;;  %v5569_v5 = vsel %vm750_vm6, %v5567_v11, %v10707_v45  ;;  %v10717_v11 = vld [vmem:[#allocation40_spill] sm:$0xff] }
 0x5fb   : > { %v5851_v7 = vsel %vm759_vm9, %v5849_v60, %v5815_v52  ;;  %v10705_v52 = vld [vmem:[#allocation31_spill] sm:$0xff] }
 0x5fc   : > { %v5853_v4 = vsel %vm762_vm13, %v5851_v7, %v5820_v35  ;;  %v5554_v31 = vsel %vm750_vm6, %v5552_v9, %v10705_v52 }
 0x5fd   : > { %v10340_v47 = vsel %vm765_vm15, %v5853_v4, %v5825_v14  ;;  %v5556_v8 = vsel %vm753_vm7, %v5554_v31, %v10706_v42  ;;  %v10708_v14 = vld [vmem:[#allocation37_spill] sm:$0xff] }
 0x5fe   : > { %v4913_v43 = vpop.permute.xlu1 %4912  ;;  %v10342_v10 = vpop.permute.xlu0 %4967  ;;  %v5571_v25 = vsel %vm753_vm7, %v5569_v5, %v10708_v14  ;;  %v5558_v32 = vsel %vm756_vm8, %v5556_v8, %v10711_v30  ;;  %v10719_v5 = vld [vmem:[#allocation41_spill] sm:$0xff]  ;;  %v6154_v30 = vrot.slane %v10309_v23, 2 }
 0x5ff   : > { %v5560_v17 = vsel %vm759_vm9, %v5558_v32, %v10712_v61  ;;  %v5573_v19 = vsel %vm756_vm8, %v5571_v25, %v10713_v40 }
 0x602   : > { %v5199_v53 = vpop.permute.xlu1 %5198  ;;  %v5184_v50 = vpop.permute.xlu0 %5183 }
 0x603   : > { %v5252_v3 = vsel %vm746_vm5, %v10704_v48, %v5184_v50 }
 0x604   : > { %v5254_v28 = vsel %vm750_vm6, %v5252_v3, %v5189_v27 }
 0x606   : > { %v4923_v34 = vpop.permute.xlu1 %4922  ;;  %v4908_v57 = vpop.permute.xlu0 %4907 }
 0x607   : > { %v4976_v39 = vsel %vm746_vm5, %v10709_v36, %v4908_v57  ;;  %v10715_v57 = vld [vmem:[#allocation22_spill] sm:$0xff] }
 0x608   : > { %v4978_v29 = vsel %vm750_vm6, %v4976_v39, %v4913_v43 }
 0x60a   : > { %v5209_v58 = vpop.permute.xlu1 %5208  ;;  %v5194_v49 = vpop.permute.xlu0 %5193 }
 0x60b   : > { %v5256_v21 = vsel %vm753_vm7, %v5254_v28, %v5194_v49  ;;  %v5562_v49 = vsel %vm762_vm13, %v5560_v17, %v10715_v57 }
 0x60c   : > { %v5258_v7 = vsel %vm756_vm8, %v5256_v21, %v5199_v53 }
 0x60e   : > { %v5224_v33 = vpop.permute.xlu1 %5223  ;;  %v5219_v38 = vpop.permute.xlu0 %5218 }
 0x60f   : > { %v5267_v54 = vsel %vm746_vm5, %v10710_v22, %v5219_v38  ;;  %v10716_v38 = vld [vmem:[#allocation19_spill] sm:$0xff] }
 0x610   : > { %v5269_v46 = vsel %vm750_vm6, %v5267_v54, %v5224_v33  ;;  %v5575_v33 = vsel %vm759_vm9, %v5573_v19, %v10716_v38  ;;  %v6155_v54 = vrot.slane %v10340_v47, 2 }
 0x611   : > { %v5577_v48 = vsel %vm762_vm13, %v5575_v33, %v10717_v11 }
 0x612   : > { %v4948_v41 = vpop.permute.xlu1 %4947  ;;  %v4943_v62 = vpop.permute.xlu0 %4942 }
 0x613   : > { %v4991_v0 = vsel %vm746_vm5, %v10714_v6, %v4943_v62 }
 0x614   : > { %v4993_v43 = vsel %vm750_vm6, %v4991_v0, %v4948_v41  ;;  %v10718_v41 = vld [vmem:[#allocation36_spill] sm:$0xff] }
 0x616   : > { %v5234_v59 = vpop.permute.xlu1 %5233  ;;  %v5229_v24 = vpop.permute.xlu0 %5228 }
 0x617   : > { %v5271_v60 = vsel %vm753_vm7, %v5269_v46, %v5229_v24 }
 0x618   : > { %v5273_v26 = vsel %vm756_vm8, %v5271_v60, %v5234_v59  ;;  %v5564_v59 = vsel %vm765_vm15, %v5562_v49, %v10718_v41 }
 0x61a   : > { %v4918_v20 = vpop.permute.xlu1 %4917  ;;  %v4953_v51 = vpop.permute.xlu0 %4952 }
 0x61b   : > { %v4980_v27 = vsel %vm753_vm7, %v4978_v29, %v4918_v20  ;;  %v4995_v56 = vsel %vm753_vm7, %v4993_v43, %v4953_v51 }
 0x61c   : > { %v4982_v62 = vsel %vm756_vm8, %v4980_v27, %v4923_v34  ;;  %v4997_v34 = vsel %vm756_vm8, %v4995_v56, %v10329_v12  ;;  %v6150_v12 = vrot.slane %v5564_v59, 4 }
 0x61e   : > { %v5204_v35 = vpop.permute.xlu1 %5203  ;;  %v5239_v63 = vpop.permute.xlu0 %5238 }
 0x61f   : > { %v5260_v50 = vsel %vm759_vm9, %v5258_v7, %v5204_v35  ;;  %v5275_v53 = vsel %vm759_vm9, %v5273_v26, %v5239_v63  ;;  %v5579_v35 = vsel %vm765_vm15, %v5577_v48, %v10719_v5 }
 0x620   : > { %v5262_v15 = vsel %vm762_vm13, %v5260_v50, %v5209_v58  ;;  %v5277_v51 = vsel %vm762_vm13, %v5275_v53, %v5244_v1  ;;  %v6151_v36 = vrot.slane %v5579_v35, 4 }
 0x622   : > { %v4928_v16 = vpop.permute.xlu1 %4927  ;;  %v4963_v4 = vpop.permute.xlu0 %4962 }
 0x623   : > { %v4984_v9 = vsel %vm759_vm9, %v4982_v62, %v4928_v16  ;;  %v4999_v31 = vsel %vm759_vm9, %v4997_v34, %v4963_v4  ;;  %v6184_v16 = vld [vmem:[%s10457_s4] sm:$0x3] }
 0x624   : > { %v4986_v3 = vsel %vm762_vm13, %v4984_v9, %v10324_v55  ;;  %v5001_v1 = vsel %vm762_vm13, %v4999_v31, %v10342_v10 }
 0x626   : > { %v5214_v24 = vpop.permute.xlu1 %5213  ;;  %v5249_v20 = vpop.permute.xlu0 %5248 }
 0x627   : > { %v5264_v2 = vsel %vm765_vm15, %v5262_v15, %v5214_v24  ;;  %v5279_v58 = vsel %vm765_vm15, %v5277_v51, %v5249_v20 }
 0x628   : > { %v6146_v42 = vrot.slane %v5264_v2, 6  ;;  %v6147_v25 = vrot.slane %v5279_v58, 6 }
 0x62a   : > { %v4938_v52 = vpop.permute.xlu1 %4937  ;;  %v6091_v8 = vpop.permute.xlu0 %6090 }
 0x62b   : > { %v4988_v45 = vsel %vm765_vm15, %v4986_v3, %v4938_v52  ;;  %v6127_v32 = vsel %vm759_vm9, %v10322_v37, %v6091_v8 }
 0x62c   : > { %v6171_v14 = vsel %vm3121_vm0, %v4988_v45, %v6146_v42 }
 0x62d   : > { %v6175_v63 = vsel %vm3126_vm2, %v6171_v14, %v6150_v12 }
 0x62e   : > { %v4973_v55 = vpop.permute.xlu1 %4972  ;;  %v6096_v39 = vpop.permute.xlu0 %6095  ;;  %v6179_v19 = vsel %vm10721_vm14, %v6175_v63, %v6154_v30 }
 0x62f   : > { %v5003_v28 = vsel %vm765_vm15, %v5001_v1, %v4973_v55  ;;  %v6129_v17 = vsel %vm762_vm13, %v6127_v32, %v6096_v39 }
 0x630   : > { %v6173_v22 = vsel %vm3121_vm0, %v5003_v28, %v6147_v25 }
 0x631   : > { %v6177_v21 = vsel %vm3126_vm2, %v6173_v22, %v6151_v36 }
 0x632   : > { %v6061_v61 = vpop.permute.xlu1 %6060  ;;  %v6182_v10 = vsel %vm10720_vm12, %v6177_v21, %v6155_v54  ;;  %v6101_v40 = vpop.permute.xlu0 %6100 }
 0x633   : > { %6194 = vmatprep.subr.bf16.mxu1 %v6182_v10  ;;  %v6131_v47 = vsel %vm765_vm15, %v6129_v17, %v6101_v40  ;;  %v6114_v23 = vsel %vm762_vm13, %v10327_v44, %v6061_v61 }
 0x634   : > { %6195 = vmatpush1.bf16.msra.mxu1 %v6179_v19 }
 0x635   : > { %6806 = vmatprep.subr.msk.bf16.mxu1 %vm3121_vm0, %v6131_v47 }
 0x636   : > { %v6066_v46 = vpop.permute.xlu1 %6065 }
 0x637   : > { %v6116_v37 = vsel %vm765_vm15, %v6114_v23, %v6066_v46 }
 0x638   : > { %v6188_v29 = vsel %vm3121_vm0, %v6116_v37, 0 }
 0x639   : > { %6197 = vmatpush1.bf16.msra.mxu1 %v6188_v29 }
 0x63c   : > { %6807 = vmatmul.mubr.msk.bf16.vlgmr.msra.gmra.mrb[0].mxu1 %vm3153_vm3, %v6184_v16 }
 0x643   : > { %v6245_v0 = vpop.permute.xlu0 %6244 }
 0x647   : > { %v6237_v6 = vpop.permute.xlu1 %6236  ;;  %v6415_v27 = vpop.permute.xlu0 %6414 }
 0x648   : > { %v6448_v33 = vsel %vm746_vm5, %v10271_v18, %v6415_v27 }
 0x64b   : > { %v6387_v60 = vpop.permute.xlu1 %6386  ;;  %v6419_v4 = vpop.permute.xlu0 %6418 }
 0x64c   : > { %v6441_v38 = vsel %vm746_vm5, %v10257_v13, %v6387_v60  ;;  %v6449_v62 = vsel %vm750_vm6, %v6448_v33, %v6419_v4 }
 0x64f   : > { %v6391_v7 = vpop.permute.xlu1 %6390  ;;  %v6423_v44 = vpop.permute.xlu0 %6422 }
 0x650   : > { %v6442_v43 = vsel %vm750_vm6, %v6441_v38, %v6391_v7  ;;  %v6450_v53 = vsel %vm753_vm7, %v6449_v62, %v6423_v44 }
 0x653   : > { %v6395_v50 = vpop.permute.xlu1 %6394  ;;  %v6427_v49 = vpop.permute.xlu0 %6426 }
 0x654   : > { %v6443_v56 = vsel %vm753_vm7, %v6442_v43, %v6395_v50  ;;  %v6451_v15 = vsel %vm756_vm8, %v6450_v53, %v6427_v49 }
 0x657   : > { %v6399_v57 = vpop.permute.xlu1 %6398  ;;  %v6431_v24 = vpop.permute.xlu0 %6430 }
 0x658   : > { %v6444_v9 = vsel %vm756_vm8, %v6443_v56, %v6399_v57  ;;  %v6452_v18 = vsel %vm759_vm9, %v6451_v15, %v6431_v24 }
 0x65b   : > { %v6403_v26 = vpop.permute.xlu1 %6402  ;;  %v6435_v2 = vpop.permute.xlu0 %6434 }
 0x65c   : > { %v6445_v13 = vsel %vm759_vm9, %v6444_v9, %v6403_v26  ;;  %v6453_v51 = vsel %vm762_vm13, %v6452_v18, %v6435_v2 }
 0x65f   : > { %v6407_v20 = vpop.permute.xlu1 %6406  ;;  %v6439_v3 = vpop.permute.xlu0 %6438 }
 0x660   : > { %v6446_v48 = vsel %vm762_vm13, %v6445_v13, %v6407_v20  ;;  %v6454_v5 = vsel %vm765_vm15, %v6453_v51, %v6439_v3 }
 0x663   : > { %v6411_v41 = vpop.permute.xlu1 %6410 }
 0x664   : > { %v6447_v8 = vsel %vm765_vm15, %v6446_v48, %v6411_v41 }
 0x70f   : > { %v6226_v11 = vpop.f32.mrb[0].mxu1 }
 0x710   : > { %v6239_v59 = vmul.f32 %v6237_v6, %v6226_v11  ;;  %v6228_v34 = vpop.f32.mrb[1].mxu1 }
 0x711   : > { %v6240_v52 = vmul.f32 %v6237_v6, %v6228_v34  ;;  %v6230_v31 = vpop.f32.mrb[2].mxu1 }
 0x712   : > { %v6247_v58 = vadd.f32 %v6245_v0, %v6239_v59  ;;  %v6231_v42 = vpop.f32.mrb[3].mxu1 }
 0x713   : > { %v6248_v45 = vadd.f32 %v6245_v0, %v6240_v52 }
 0x714   : > { %v6455_v35 = vadd.f32 %v6447_v8, %v6247_v58 }
 0x715   : > { %v6456_v14 = vadd.f32 %v6454_v5, %v6248_v45 }
 0x716   : > { %v6457_v12 = vmax.f32 %v6455_v35, 0.0 }
 0x717   : > { %v6458_v25 = vmax.f32 %v6456_v14, 0.0 }
 0x719   : > { %v6461_v1 = vcombine.low %v6457_v12, %v6458_v25 }
 0x71b   : > { %6463 = vst [vmem:[%s278_s11] sm:$0xff] %v6461_v1 }
 0x71c PF: > { %s17_s24 = sadd.s32 1, %s7004_s24  }
 0x71d   : > { %p14_p4 = scmp.ge.s32.totalorder %s17_s24, 4  }
 0x71f   :  { %16 = sbr.rel (!%p14_p4) target bundleno = 1 (0x1), region = 78 }

</bundles_post_ra>
